<compile_context>
chip_gen: v7x
topology: tpu7x:2x2x1
jax: 0.10.0
libtpu: 0.0.40
codegen_flags: <defaults>
</compile_context>

<pallas_src>
import math
import jax
import jax.numpy as jnp
from jax.experimental import pallas as pl
from jax.experimental.pallas import tpu as pltpu

# ---------------- config (mini bert-base-cased) ----------------
HIDDEN = 128
NUM_HEADS = 2
HEAD_DIM = HIDDEN // NUM_HEADS
NUM_LAYERS = 2
INTERMEDIATE = 4 * HIDDEN
VOCAB = 128
MAX_POS = 64
TYPE_VOCAB = 2
N_CLASSES = 8
FC_PAD = 128            # lane-dense classifier output width (sliced to N_CLASSES)
LN_EPS = 1e-12

# TODO(synk): pretrained 'bert-base-cased' weights cannot be loaded here; weights
# are deterministic random (std=0.02) with the same parameter structure.
# Dropout layers are eval-mode identities and therefore omitted.
# TODO(synk): bf16 matmul inputs (v6e MXU) skipped to keep f32 numerics identical
# across generations; flip matmul operand dtypes to bf16 for v6e if desired.


# ---------------- Pallas kernels ----------------
def _ln_kernel(x_ref, g_ref, b_ref, o_ref):
    x = x_ref[...]
    mu = jnp.mean(x, axis=-1, keepdims=True)
    xc = x - mu
    var = jnp.mean(xc * xc, axis=-1, keepdims=True)
    o_ref[...] = xc * jax.lax.rsqrt(var + LN_EPS) * g_ref[...] + b_ref[...]


def _linear_kernel(x_ref, w_ref, b_ref, o_ref):
    o_ref[...] = (
        jnp.dot(x_ref[...], w_ref[...], preferred_element_type=jnp.float32)
        + b_ref[...]
    )


def _gelu_tanh(y):
    # TODO(synk): HF BERT uses exact erf-GELU; tanh approximation used for
    # Mosaic-safe lowering (tanh runs on the EUP).
    return 0.5 * y * (1.0 + jnp.tanh(0.7978845608028654 * (y + 0.044715 * y * y * y)))


def _make_encoder_layer_kernel(scale):
    def kernel(x_ref, bias_ref,
               wqkv_ref, bqkv_ref, wo_ref, bo_ref, ln1g_ref, ln1b_ref,
               wi_ref, bi_ref, wo2_ref, bo2_ref, ln2g_ref, ln2b_ref,
               o_ref):
        x = x_ref[0]          # [S, H]
        bias = bias_ref[0]    # [1, S]  additive attention bias for this batch
        s_len = x.shape[0]
        del s_len  # shapes are static; kept for clarity

        # --- fused QKV projection: one MXU pass, lane-dense [S, 3H] output ---
        qkv = (
            jnp.dot(x, wqkv_ref[...], preferred_element_type=jnp.float32)
            + bqkv_ref[...]
        )

        # --- multi-head self-attention, heads Python-unrolled ---
        # attn accumulates ctx_h @ Wo[h] directly (no concatenate needed).
        attn = bo_ref[...]    # [1, H], broadcasts on first add
        for h in range(NUM_HEADS):
            lo = h * HEAD_DIM
            q = qkv[:, lo:lo + HEAD_DIM]
            k = qkv[:, HIDDEN + lo:HIDDEN + lo + HEAD_DIM]
            v = qkv[:, 2 * HIDDEN + lo:2 * HIDDEN + lo + HEAD_DIM]
            s = jax.lax.dot_general(
                q, k, (((1,), (1,)), ((), ())), preferred_element_type=jnp.float32
            ) * scale
            s = s + bias
            s = s - jnp.max(s, axis=-1, keepdims=True)
            p = jnp.exp(s)
            p = p * pl.reciprocal(jnp.sum(p, axis=-1, keepdims=True), approx=True)
            ctx = jnp.dot(p, v, preferred_element_type=jnp.float32)        # [S, Dh]
            attn = attn + jnp.dot(
                ctx, wo_ref[lo:lo + HEAD_DIM, :], preferred_element_type=jnp.float32
            )

        # --- residual + LayerNorm 1 ---
        x1 = attn + x
        mu = jnp.mean(x1, axis=-1, keepdims=True)
        xc = x1 - mu
        var = jnp.mean(xc * xc, axis=-1, keepdims=True)
        x1 = xc * jax.lax.rsqrt(var + LN_EPS) * ln1g_ref[...] + ln1b_ref[...]

        # --- feed-forward (GELU) ---
        yi = (
            jnp.dot(x1, wi_ref[...], preferred_element_type=jnp.float32)
            + bi_ref[...]
        )
        yi = _gelu_tanh(yi)
        ffn = (
            jnp.dot(yi, wo2_ref[...], preferred_element_type=jnp.float32)
            + bo2_ref[...]
        )

        # --- residual + LayerNorm 2 ---
        x2 = ffn + x1
        mu2 = jnp.mean(x2, axis=-1, keepdims=True)
        xc2 = x2 - mu2
        var2 = jnp.mean(xc2 * xc2, axis=-1, keepdims=True)
        o_ref[0] = xc2 * jax.lax.rsqrt(var2 + LN_EPS) * ln2g_ref[...] + ln2b_ref[...]

    return kernel


# ---------------- Pallas wrappers ----------------
def layernorm(x2d, g2d, b2d):
    M, H = x2d.shape
    return pl.pallas_call(
        _ln_kernel,
        out_shape=jax.ShapeDtypeStruct((M, H), jnp.float32),
        grid=(1,),
        in_specs=[
            pl.BlockSpec((M, H), lambda i: (0, 0)),
            pl.BlockSpec((1, H), lambda i: (0, 0)),
            pl.BlockSpec((1, H), lambda i: (0, 0)),
        ],
        out_specs=pl.BlockSpec((M, H), lambda i: (0, 0)),
    )(x2d, g2d, b2d)


def classifier(x2d, w_pad, b_pad):
    M, K = x2d.shape
    N = w_pad.shape[1]  # lane-dense (128) — unmasked vst on the store path
    return pl.pallas_call(
        _linear_kernel,
        out_shape=jax.ShapeDtypeStruct((M, N), jnp.float32),
        grid=(1,),
        in_specs=[
            pl.BlockSpec((M, K), lambda i: (0, 0)),
            pl.BlockSpec((K, N), lambda i: (0, 0)),
            pl.BlockSpec((1, N), lambda i: (0, 0)),
        ],
        out_specs=pl.BlockSpec((M, N), lambda i: (0, 0)),
    )(x2d, w_pad, b_pad)


def encoder_layer(x3d, attn_bias, lp):
    B, S, H = x3d.shape
    scale = 1.0 / math.sqrt(HEAD_DIM)
    rep = lambda b: (0, 0)  # weights revisited across the batch grid (no re-DMA)
    return pl.pallas_call(
        _make_encoder_layer_kernel(scale),
        out_shape=jax.ShapeDtypeStruct((B, S, H), jnp.float32),
        grid=(B,),
        in_specs=[
            pl.BlockSpec((1, S, H), lambda b: (b, 0, 0)),       # x
            pl.BlockSpec((1, 1, S), lambda b: (b, 0, 0)),       # additive bias
            pl.BlockSpec((H, 3 * H), rep),                      # wqkv
            pl.BlockSpec((1, 3 * H), rep),                      # bqkv
            pl.BlockSpec((H, H), rep),                          # wo
            pl.BlockSpec((1, H), rep),                          # bo
            pl.BlockSpec((1, H), rep),                          # ln1 gamma
            pl.BlockSpec((1, H), rep),                          # ln1 beta
            pl.BlockSpec((H, INTERMEDIATE), rep),               # wi
            pl.BlockSpec((1, INTERMEDIATE), rep),               # bi
            pl.BlockSpec((INTERMEDIATE, H), rep),               # wo2
            pl.BlockSpec((1, H), rep),                          # bo2
            pl.BlockSpec((1, H), rep),                          # ln2 gamma
            pl.BlockSpec((1, H), rep),                          # ln2 beta
        ],
        out_specs=pl.BlockSpec((1, S, H), lambda b: (b, 0, 0)),
        compiler_params=pltpu.CompilerParams(dimension_semantics=("parallel",)),
    )(
        x3d, attn_bias,
        lp["wqkv"], lp["bqkv"], lp["wo"], lp["bo"], lp["ln1_g"], lp["ln1_b"],
        lp["wi"], lp["bi"], lp["wo2"], lp["bo2"], lp["ln2_g"], lp["ln2_b"],
    )


# ---------------- parameters ----------------
def _dense_init(key, shape, std=0.02):
    return (std * jax.random.normal(key, shape)).astype(jnp.float32)


def init_params(key):
    keys = iter(jax.random.split(key, 8 + NUM_LAYERS * 8))
    p = {
        "word_emb": _dense_init(next(keys), (VOCAB, HIDDEN)),
        "pos_emb": _dense_init(next(keys), (MAX_POS, HIDDEN)),
        "type_emb": _dense_init(next(keys), (TYPE_VOCAB, HIDDEN)),
        "emb_ln_g": jnp.ones((HIDDEN,), jnp.float32),
        "emb_ln_b": jnp.zeros((HIDDEN,), jnp.float32),
        "fc_w": _dense_init(next(keys), (HIDDEN, N_CLASSES)),
        "fc_b": jnp.zeros((N_CLASSES,), jnp.float32),
        "layers": [],
    }
    for _ in range(NUM_LAYERS):
        p["layers"].append(
            dict(
                wq=_dense_init(next(keys), (HIDDEN, HIDDEN)), bq=jnp.zeros((HIDDEN,), jnp.float32),
                wk=_dense_init(next(keys), (HIDDEN, HIDDEN)), bk=jnp.zeros((HIDDEN,), jnp.float32),
                wv=_dense_init(next(keys), (HIDDEN, HIDDEN)), bv=jnp.zeros((HIDDEN,), jnp.float32),
                wo=_dense_init(next(keys), (HIDDEN, HIDDEN)), bo=jnp.zeros((HIDDEN,), jnp.float32),
                ln1_g=jnp.ones((HIDDEN,), jnp.float32), ln1_b=jnp.zeros((HIDDEN,), jnp.float32),
                wi=_dense_init(next(keys), (HIDDEN, INTERMEDIATE)), bi=jnp.zeros((INTERMEDIATE,), jnp.float32),
                wo2=_dense_init(next(keys), (INTERMEDIATE, HIDDEN)), bo2=jnp.zeros((HIDDEN,), jnp.float32),
                ln2_g=jnp.ones((HIDDEN,), jnp.float32), ln2_b=jnp.zeros((HIDDEN,), jnp.float32),
            )
        )
    return p


def prepare_params(p):
    """Pack parameters into the fused-kernel layout (done once, outside kernels)."""
    prep = {
        "word_emb": p["word_emb"],
        "pos_emb": p["pos_emb"],
        "type_emb": p["type_emb"],
        "emb_ln_g": p["emb_ln_g"].reshape(1, HIDDEN),
        "emb_ln_b": p["emb_ln_b"].reshape(1, HIDDEN),
        # lane-dense (padded) classifier weights; real logits are lanes [:N_CLASSES]
        "fc_w_pad": jnp.zeros((HIDDEN, FC_PAD), jnp.float32).at[:, :N_CLASSES].set(p["fc_w"]),
        "fc_b_pad": jnp.zeros((1, FC_PAD), jnp.float32).at[0, :N_CLASSES].set(p["fc_b"]),
        "layers": [],
    }
    for lp in p["layers"]:
        prep["layers"].append(
            dict(
                wqkv=jnp.concatenate([lp["wq"], lp["wk"], lp["wv"]], axis=1),
                bqkv=jnp.concatenate([lp["bq"], lp["bk"], lp["bv"]]).reshape(1, 3 * HIDDEN),
                wo=lp["wo"], bo=lp["bo"].reshape(1, HIDDEN),
                ln1_g=lp["ln1_g"].reshape(1, HIDDEN), ln1_b=lp["ln1_b"].reshape(1, HIDDEN),
                wi=lp["wi"], bi=lp["bi"].reshape(1, INTERMEDIATE),
                wo2=lp["wo2"], bo2=lp["bo2"].reshape(1, HIDDEN),
                ln2_g=lp["ln2_g"].reshape(1, HIDDEN), ln2_b=lp["ln2_b"].reshape(1, HIDDEN),
            )
        )
    return prep


# ---------------- model ----------------
def bert_ner_forward(prep, input_ids, attention_mask):
    B, S = input_ids.shape

    # Embeddings (gather is plain-JAX glue); token_type_ids default to 0 as in HF.
    x = (
        prep["word_emb"][input_ids]
        + prep["pos_emb"][jnp.arange(S)][None, :, :]
        + prep["type_emb"][0][None, None, :]
    )
    x2d = x.reshape(B * S, HIDDEN).astype(jnp.float32)
    x2d = layernorm(x2d, prep["emb_ln_g"], prep["emb_ln_b"])
    x3d = x2d.reshape(B, S, HIDDEN)

    # HF extended attention mask precomputed once as an additive bias [B, 1, S].
    attn_bias = ((1.0 - attention_mask.astype(jnp.float32)) * (-10000.0)).reshape(B, 1, S)

    for lp in prep["layers"]:
        x3d = encoder_layer(x3d, attn_bias, lp)

    # Token-classification head (lane-dense padded output, sliced back to 8 classes).
    logits_pad = classifier(x3d.reshape(B * S, HIDDEN), prep["fc_w_pad"], prep["fc_b_pad"])
    return logits_pad[:, :N_CLASSES].reshape(B, S, N_CLASSES)


if __name__ == "__main__":
    key = jax.random.PRNGKey(0)
    k_param, k_ids = jax.random.split(key)

    B, S = 2, 16
    params = init_params(k_param)
    prep = prepare_params(params)

    input_ids = jax.random.randint(k_ids, (B, S), 0, VOCAB, dtype=jnp.int32)
    attention_mask = jnp.ones((B, S), jnp.int32).at[1, S - 4 :].set(0)  # pad tail of seq 1

    fwd = jax.jit(bert_ner_forward)
    logits = fwd(prep, input_ids, attention_mask)
    logits = jax.block_until_ready(logits)

    assert logits.shape == (B, S, N_CLASSES)
    assert bool(jnp.all(jnp.isfinite(logits)))
    print("KERNEL_OK")
</pallas_src>

<mosaic_0001>
module attributes {stable_mosaic.version = 11 : i64} {
  func.func @_linear_kernel(%arg0: i32, %arg1: memref<32x128xf32, #tpu.memory_space<vmem>>, %arg2: memref<128x128xf32, #tpu.memory_space<vmem>>, %arg3: memref<1x128xf32, #tpu.memory_space<vmem>>, %arg4: memref<32x128xf32, #tpu.memory_space<vmem>>) attributes {dimension_semantics = [#tpu.dimension_semantics<arbitrary>], iteration_bounds = array<i64: 1>, scalar_prefetch = 0 : i64, scratch_operands = 0 : i64, tpu.core_type = #tpu.core_type<tc>, window_params = [{pipeline_mode = #tpu.pipeline_mode<synchronous>, transform_indices = @transform_0, window_bounds = array<i64: 32, 128>}, {pipeline_mode = #tpu.pipeline_mode<synchronous>, transform_indices = @transform_1, window_bounds = array<i64: 128, 128>}, {pipeline_mode = #tpu.pipeline_mode<synchronous>, transform_indices = @transform_2, window_bounds = array<i64: 1, 128>}, {pipeline_mode = #tpu.pipeline_mode<synchronous>, transform_indices = @transform_3, window_bounds = array<i64: 32, 128>}]} {
    %c0 = arith.constant 0 : index
    %c0_0 = arith.constant 0 : index
    %0 = vector.load %arg1[%c0, %c0_0] : memref<32x128xf32, #tpu.memory_space<vmem>>, vector<32x128xf32>
    %c0_1 = arith.constant 0 : index
    %c0_2 = arith.constant 0 : index
    %1 = vector.load %arg2[%c0_1, %c0_2] : memref<128x128xf32, #tpu.memory_space<vmem>>, vector<128x128xf32>
    %cst = arith.constant dense<0.000000e+00> : vector<32x128xf32>
    %2 = tpu.matmul %0, %1, %cst {dimension_numbers = #tpu.dot_dimension_numbers<[1], [0], [0], [1], [0, 0, 1, 1], [], []>} : vector<32x128xf32>, vector<128x128xf32>, vector<32x128xf32> -> vector<32x128xf32>
    %c0_3 = arith.constant 0 : index
    %c0_4 = arith.constant 0 : index
    %3 = vector.load %arg3[%c0_3, %c0_4] : memref<1x128xf32, #tpu.memory_space<vmem>>, vector<1x128xf32>
    %4 = vector.broadcast %3 : vector<1x128xf32> to vector<32x128xf32>
    %5 = arith.addf %2, %4 : vector<32x128xf32>
    %c0_5 = arith.constant 0 : index
    %c0_6 = arith.constant 0 : index
    %6 = vector.load %arg4[%c0_5, %c0_6] : memref<32x128xf32, #tpu.memory_space<vmem>>, vector<32x128xf32>
    tpu.vector_store %arg4[%c0_5, %c0_6], %5 {strides = array<i32>} : memref<32x128xf32, #tpu.memory_space<vmem>>, vector<32x128xf32>,
    return
  }
  func.func @transform_0(%arg0: i32) -> (i32, i32) {
    %c0_i32 = arith.constant 0 : i32
    %c0_i32_0 = arith.constant 0 : i32
    %c0_i32_1 = arith.constant 0 : i32
    return %c0_i32, %c0_i32_0 : i32, i32
  }
  func.func @transform_1(%arg0: i32) -> (i32, i32) {
    %c0_i32 = arith.constant 0 : i32
    %c0_i32_0 = arith.constant 0 : i32
    %c0_i32_1 = arith.constant 0 : i32
    return %c0_i32, %c0_i32_0 : i32, i32
  }
  func.func @transform_2(%arg0: i32) -> (i32, i32) {
    %c0_i32 = arith.constant 0 : i32
    %c0_i32_0 = arith.constant 0 : i32
    %c0_i32_1 = arith.constant 0 : i32
    return %c0_i32, %c0_i32_0 : i32, i32
  }
  func.func @transform_3(%arg0: i32) -> (i32, i32) {
    %c0_i32 = arith.constant 0 : i32
    %c0_i32_0 = arith.constant 0 : i32
    %c0_i32_1 = arith.constant 0 : i32
    return %c0_i32, %c0_i32_0 : i32, i32
  }
}

module attributes {stable_mosaic.version = 11 : i64} {
  func.func @kernel(%arg0: i32, %arg1: memref<1x16x128xf32, #tpu.memory_space<vmem>>, %arg2: memref<1x1x16xf32, #tpu.memory_space<vmem>>, %arg3: memref<128x384xf32, #tpu.memory_space<vmem>>, %arg4: memref<1x384xf32, #tpu.memory_space<vmem>>, %arg5: memref<128x128xf32, #tpu.memory_space<vmem>>, %arg6: memref<1x128xf32, #tpu.memory_space<vmem>>, %arg7: memref<1x128xf32, #tpu.memory_space<vmem>>, %arg8: memref<1x128xf32, #tpu.memory_space<vmem>>, %arg9: memref<128x512xf32, #tpu.memory_space<vmem>>, %arg10: memref<1x512xf32, #tpu.memory_space<vmem>>, %arg11: memref<512x128xf32, #tpu.memory_space<vmem>>, %arg12: memref<1x128xf32, #tpu.memory_space<vmem>>, %arg13: memref<1x128xf32, #tpu.memory_space<vmem>>, %arg14: memref<1x128xf32, #tpu.memory_space<vmem>>, %arg15: memref<1x16x128xf32, #tpu.memory_space<vmem>>) attributes {dimension_semantics = [#tpu.dimension_semantics<parallel>], iteration_bounds = array<i64: 2>, scalar_prefetch = 0 : i64, scratch_operands = 0 : i64, tpu.core_type = #tpu.core_type<tc>, window_params = [{transform_indices = @transform_0, window_bounds = array<i64: 1, 16, 128>}, {transform_indices = @transform_1, window_bounds = array<i64: 1, 1, 16>}, {pipeline_mode = #tpu.pipeline_mode<synchronous>, transform_indices = @transform_2, window_bounds = array<i64: 128, 384>}, {pipeline_mode = #tpu.pipeline_mode<synchronous>, transform_indices = @transform_3, window_bounds = array<i64: 1, 384>}, {pipeline_mode = #tpu.pipeline_mode<synchronous>, transform_indices = @transform_4, window_bounds = array<i64: 128, 128>}, {pipeline_mode = #tpu.pipeline_mode<synchronous>, transform_indices = @transform_5, window_bounds = array<i64: 1, 128>}, {pipeline_mode = #tpu.pipeline_mode<synchronous>, transform_indices = @transform_6, window_bounds = array<i64: 1, 128>}, {pipeline_mode = #tpu.pipeline_mode<synchronous>, transform_indices = @transform_7, window_bounds = array<i64: 1, 128>}, {pipeline_mode = #tpu.pipeline_mode<synchronous>, transform_indices = @transform_8, window_bounds = array<i64: 128, 512>}, {pipeline_mode = #tpu.pipeline_mode<synchronous>, transform_indices = @transform_9, window_bounds = array<i64: 1, 512>}, {pipeline_mode = #tpu.pipeline_mode<synchronous>, transform_indices = @transform_10, window_bounds = array<i64: 512, 128>}, {pipeline_mode = #tpu.pipeline_mode<synchronous>, transform_indices = @transform_11, window_bounds = array<i64: 1, 128>}, {pipeline_mode = #tpu.pipeline_mode<synchronous>, transform_indices = @transform_12, window_bounds = array<i64: 1, 128>}, {pipeline_mode = #tpu.pipeline_mode<synchronous>, transform_indices = @transform_13, window_bounds = array<i64: 1, 128>}, {transform_indices = @transform_14, window_bounds = array<i64: 1, 16, 128>}]} {
    %c0 = arith.constant 0 : index
    %c0_0 = arith.constant 0 : index
    %c0_1 = arith.constant 0 : index
    %0 = vector.load %arg1[%c0, %c0_0, %c0_1] : memref<1x16x128xf32, #tpu.memory_space<vmem>>, vector<1x16x128xf32>
    %1 = vector.shape_cast %0 : vector<1x16x128xf32> to vector<16x128xf32>
    %c0_2 = arith.constant 0 : index
    %c0_3 = arith.constant 0 : index
    %c0_4 = arith.constant 0 : index
    %2 = vector.load %arg2[%c0_2, %c0_3, %c0_4] : memref<1x1x16xf32, #tpu.memory_space<vmem>>, vector<1x1x16xf32>
    %3 = vector.shape_cast %2 : vector<1x1x16xf32> to vector<1x16xf32>
    %c0_5 = arith.constant 0 : index
    %c0_6 = arith.constant 0 : index
    %4 = vector.load %arg3[%c0_5, %c0_6] : memref<128x384xf32, #tpu.memory_space<vmem>>, vector<128x384xf32>
    %cst = arith.constant dense<0.000000e+00> : vector<16x384xf32>
    %5 = tpu.matmul %1, %4, %cst {dimension_numbers = #tpu.dot_dimension_numbers<[1], [0], [0], [1], [0, 0, 1, 1], [], []>} : vector<16x128xf32>, vector<128x384xf32>, vector<16x384xf32> -> vector<16x384xf32>
    %c0_7 = arith.constant 0 : index
    %c0_8 = arith.constant 0 : index
    %6 = vector.load %arg4[%c0_7, %c0_8] : memref<1x384xf32, #tpu.memory_space<vmem>>, vector<1x384xf32>
    %7 = vector.broadcast %6 : vector<1x384xf32> to vector<16x384xf32>
    %8 = arith.addf %5, %7 : vector<16x384xf32>
    %c0_9 = arith.constant 0 : index
    %c0_10 = arith.constant 0 : index
    %9 = vector.load %arg6[%c0_9, %c0_10] : memref<1x128xf32, #tpu.memory_space<vmem>>, vector<1x128xf32>
    %10 = vector.extract_strided_slice %8 {offsets = [0, 0], sizes = [16, 64], strides = [1, 1]} : vector<16x384xf32> to vector<16x64xf32>
    %11 = vector.extract_strided_slice %8 {offsets = [0, 128], sizes = [16, 64], strides = [1, 1]} : vector<16x384xf32> to vector<16x64xf32>
    %12 = vector.extract_strided_slice %8 {offsets = [0, 256], sizes = [16, 64], strides = [1, 1]} : vector<16x384xf32> to vector<16x64xf32>
    %cst_11 = arith.constant dense<0.000000e+00> : vector<16x16xf32>
    %13 = tpu.matmul %10, %11, %cst_11 {dimension_numbers = #tpu.dot_dimension_numbers<[1], [1], [0], [0], [0, 0, 1, 0], [], []>} : vector<16x64xf32>, vector<16x64xf32>, vector<16x16xf32> -> vector<16x16xf32>
    %cst_12 = arith.constant 1.250000e-01 : f32
    %14 = vector.broadcast %cst_12 : f32 to vector<16x16xf32>
    %15 = arith.mulf %13, %14 : vector<16x16xf32>
    %16 = vector.broadcast %3 : vector<1x16xf32> to vector<16x16xf32>
    %17 = arith.addf %15, %16 : vector<16x16xf32>
    %cst_13 = arith.constant dense<0xFF800000> : vector<16xf32>
    %18 = vector.multi_reduction <maximumf>, %17, %cst_13 [1] : vector<16x16xf32> to vector<16xf32>
    %19 = vector.shape_cast %18 : vector<16xf32> to vector<16x1xf32>
    %20 = vector.broadcast %19 : vector<16x1xf32> to vector<16x16xf32>
    %21 = arith.subf %17, %20 : vector<16x16xf32>
    %22 = math.exp %21 : vector<16x16xf32>
    %cst_14 = arith.constant dense<0.000000e+00> : vector<16xf32>
    %23 = vector.multi_reduction <add>, %22, %cst_14 [1] : vector<16x16xf32> to vector<16xf32>
    %24 = vector.shape_cast %23 : vector<16xf32> to vector<16x1xf32>
    %25 = tpu.reciprocal %24 {approx = true} : vector<16x1xf32> -> vector<16x1xf32>
    %26 = vector.broadcast %25 : vector<16x1xf32> to vector<16x16xf32>
    %27 = arith.mulf %22, %26 : vector<16x16xf32>
    %cst_15 = arith.constant dense<0.000000e+00> : vector<16x64xf32>
    %28 = tpu.matmul %27, %12, %cst_15 {dimension_numbers = #tpu.dot_dimension_numbers<[1], [0], [0], [1], [0, 0, 1, 1], [], []>} : vector<16x16xf32>, vector<16x64xf32>, vector<16x64xf32> -> vector<16x64xf32>
    %c0_16 = arith.constant 0 : index
    %c0_17 = arith.constant 0 : index
    %29 = vector.load %arg5[%c0_16, %c0_17] : memref<128x128xf32, #tpu.memory_space<vmem>>, vector<64x128xf32>
    %cst_18 = arith.constant dense<0.000000e+00> : vector<16x128xf32>
    %30 = tpu.matmul %28, %29, %cst_18 {dimension_numbers = #tpu.dot_dimension_numbers<[1], [0], [0], [1], [0, 0, 1, 1], [], []>} : vector<16x64xf32>, vector<64x128xf32>, vector<16x128xf32> -> vector<16x128xf32>
    %31 = vector.broadcast %9 : vector<1x128xf32> to vector<16x128xf32>
    %32 = arith.addf %31, %30 : vector<16x128xf32>
    %33 = vector.extract_strided_slice %8 {offsets = [0, 64], sizes = [16, 64], strides = [1, 1]} : vector<16x384xf32> to vector<16x64xf32>
    %34 = vector.extract_strided_slice %8 {offsets = [0, 192], sizes = [16, 64], strides = [1, 1]} : vector<16x384xf32> to vector<16x64xf32>
    %35 = vector.extract_strided_slice %8 {offsets = [0, 320], sizes = [16, 64], strides = [1, 1]} : vector<16x384xf32> to vector<16x64xf32>
    %cst_19 = arith.constant dense<0.000000e+00> : vector<16x16xf32>
    %36 = tpu.matmul %33, %34, %cst_19 {dimension_numbers = #tpu.dot_dimension_numbers<[1], [1], [0], [0], [0, 0, 1, 0], [], []>} : vector<16x64xf32>, vector<16x64xf32>, vector<16x16xf32> -> vector<16x16xf32>
    %cst_20 = arith.constant 1.250000e-01 : f32
    %37 = vector.broadcast %cst_20 : f32 to vector<16x16xf32>
    %38 = arith.mulf %36, %37 : vector<16x16xf32>
    %39 = vector.broadcast %3 : vector<1x16xf32> to vector<16x16xf32>
    %40 = arith.addf %38, %39 : vector<16x16xf32>
    %cst_21 = arith.constant dense<0xFF800000> : vector<16xf32>
    %41 = vector.multi_reduction <maximumf>, %40, %cst_21 [1] : vector<16x16xf32> to vector<16xf32>
    %42 = vector.shape_cast %41 : vector<16xf32> to vector<16x1xf32>
    %43 = vector.broadcast %42 : vector<16x1xf32> to vector<16x16xf32>
    %44 = arith.subf %40, %43 : vector<16x16xf32>
    %45 = math.exp %44 : vector<16x16xf32>
    %cst_22 = arith.constant dense<0.000000e+00> : vector<16xf32>
    %46 = vector.multi_reduction <add>, %45, %cst_22 [1] : vector<16x16xf32> to vector<16xf32>
    %47 = vector.shape_cast %46 : vector<16xf32> to vector<16x1xf32>
    %48 = tpu.reciprocal %47 {approx = true} : vector<16x1xf32> -> vector<16x1xf32>
    %49 = vector.broadcast %48 : vector<16x1xf32> to vector<16x16xf32>
    %50 = arith.mulf %45, %49 : vector<16x16xf32>
    %cst_23 = arith.constant dense<0.000000e+00> : vector<16x64xf32>
    %51 = tpu.matmul %50, %35, %cst_23 {dimension_numbers = #tpu.dot_dimension_numbers<[1], [0], [0], [1], [0, 0, 1, 1], [], []>} : vector<16x16xf32>, vector<16x64xf32>, vector<16x64xf32> -> vector<16x64xf32>
    %c64 = arith.constant 64 : index
    %c0_24 = arith.constant 0 : index
    %52 = vector.load %arg5[%c64, %c0_24] : memref<128x128xf32, #tpu.memory_space<vmem>>, vector<64x128xf32>
    %cst_25 = arith.constant dense<0.000000e+00> : vector<16x128xf32>
    %53 = tpu.matmul %51, %52, %cst_25 {dimension_numbers = #tpu.dot_dimension_numbers<[1], [0], [0], [1], [0, 0, 1, 1], [], []>} : vector<16x64xf32>, vector<64x128xf32>, vector<16x128xf32> -> vector<16x128xf32>
    %54 = arith.addf %32, %53 : vector<16x128xf32>
    %55 = arith.addf %54, %1 : vector<16x128xf32>
    %cst_26 = arith.constant dense<0.000000e+00> : vector<16xf32>
    %56 = vector.multi_reduction <add>, %55, %cst_26 [1] : vector<16x128xf32> to vector<16xf32>
    %57 = vector.shape_cast %56 : vector<16xf32> to vector<16x1xf32>
    %cst_27 = arith.constant 1.280000e+02 : f32
    %58 = vector.broadcast %cst_27 : f32 to vector<16x1xf32>
    %59 = arith.divf %57, %58 : vector<16x1xf32>
    %60 = vector.broadcast %59 : vector<16x1xf32> to vector<16x128xf32>
    %61 = arith.subf %55, %60 : vector<16x128xf32>
    %62 = arith.mulf %61, %61 : vector<16x128xf32>
    %cst_28 = arith.constant dense<0.000000e+00> : vector<16xf32>
    %63 = vector.multi_reduction <add>, %62, %cst_28 [1] : vector<16x128xf32> to vector<16xf32>
    %64 = vector.shape_cast %63 : vector<16xf32> to vector<16x1xf32>
    %cst_29 = arith.constant 1.280000e+02 : f32
    %65 = vector.broadcast %cst_29 : f32 to vector<16x1xf32>
    %66 = arith.divf %64, %65 : vector<16x1xf32>
    %cst_30 = arith.constant 9.99999996E-13 : f32
    %67 = vector.broadcast %cst_30 : f32 to vector<16x1xf32>
    %68 = arith.addf %66, %67 : vector<16x1xf32>
    %69 = math.rsqrt %68 : vector<16x1xf32>
    %70 = vector.broadcast %69 : vector<16x1xf32> to vector<16x128xf32>
    %71 = arith.mulf %61, %70 : vector<16x128xf32>
    %c0_31 = arith.constant 0 : index
    %c0_32 = arith.constant 0 : index
    %72 = vector.load %arg7[%c0_31, %c0_32] : memref<1x128xf32, #tpu.memory_space<vmem>>, vector<1x128xf32>
    %73 = vector.broadcast %72 : vector<1x128xf32> to vector<16x128xf32>
    %74 = arith.mulf %71, %73 : vector<16x128xf32>
    %c0_33 = arith.constant 0 : index
    %c0_34 = arith.constant 0 : index
    %75 = vector.load %arg8[%c0_33, %c0_34] : memref<1x128xf32, #tpu.memory_space<vmem>>, vector<1x128xf32>
    %76 = vector.broadcast %75 : vector<1x128xf32> to vector<16x128xf32>
    %77 = arith.addf %74, %76 : vector<16x128xf32>
    %c0_35 = arith.constant 0 : index
    %c0_36 = arith.constant 0 : index
    %78 = vector.load %arg9[%c0_35, %c0_36] : memref<128x512xf32, #tpu.memory_space<vmem>>, vector<128x512xf32>
    %cst_37 = arith.constant dense<0.000000e+00> : vector<16x512xf32>
    %79 = tpu.matmul %77, %78, %cst_37 {dimension_numbers = #tpu.dot_dimension_numbers<[1], [0], [0], [1], [0, 0, 1, 1], [], []>} : vector<16x128xf32>, vector<128x512xf32>, vector<16x512xf32> -> vector<16x512xf32>
    %c0_38 = arith.constant 0 : index
    %c0_39 = arith.constant 0 : index
    %80 = vector.load %arg10[%c0_38, %c0_39] : memref<1x512xf32, #tpu.memory_space<vmem>>, vector<1x512xf32>
    %81 = vector.broadcast %80 : vector<1x512xf32> to vector<16x512xf32>
    %82 = arith.addf %79, %81 : vector<16x512xf32>
    %cst_40 = arith.constant 5.000000e-01 : f32
    %83 = vector.broadcast %cst_40 : f32 to vector<16x512xf32>
    %84 = arith.mulf %83, %82 : vector<16x512xf32>
    %cst_41 = arith.constant 4.471500e-02 : f32
    %85 = vector.broadcast %cst_41 : f32 to vector<16x512xf32>
    %86 = arith.mulf %85, %82 : vector<16x512xf32>
    %87 = arith.mulf %86, %82 : vector<16x512xf32>
    %88 = arith.mulf %87, %82 : vector<16x512xf32>
    %89 = arith.addf %82, %88 : vector<16x512xf32>
    %cst_42 = arith.constant 0.797884583 : f32
    %90 = vector.broadcast %cst_42 : f32 to vector<16x512xf32>
    %91 = arith.mulf %90, %89 : vector<16x512xf32>
    %92 = math.tanh %91 : vector<16x512xf32>
    %cst_43 = arith.constant 1.000000e+00 : f32
    %93 = vector.broadcast %cst_43 : f32 to vector<16x512xf32>
    %94 = arith.addf %93, %92 : vector<16x512xf32>
    %95 = arith.mulf %84, %94 : vector<16x512xf32>
    %c0_44 = arith.constant 0 : index
    %c0_45 = arith.constant 0 : index
    %96 = vector.load %arg11[%c0_44, %c0_45] : memref<512x128xf32, #tpu.memory_space<vmem>>, vector<512x128xf32>
    %cst_46 = arith.constant dense<0.000000e+00> : vector<16x128xf32>
    %97 = tpu.matmul %95, %96, %cst_46 {dimension_numbers = #tpu.dot_dimension_numbers<[1], [0], [0], [1], [0, 0, 1, 1], [], []>} : vector<16x512xf32>, vector<512x128xf32>, vector<16x128xf32> -> vector<16x128xf32>
    %c0_47 = arith.constant 0 : index
    %c0_48 = arith.constant 0 : index
    %98 = vector.load %arg12[%c0_47, %c0_48] : memref<1x128xf32, #tpu.memory_space<vmem>>, vector<1x128xf32>
    %99 = vector.broadcast %98 : vector<1x128xf32> to vector<16x128xf32>
    %100 = arith.addf %97, %99 : vector<16x128xf32>
    %101 = arith.addf %100, %77 : vector<16x128xf32>
    %cst_49 = arith.constant dense<0.000000e+00> : vector<16xf32>
    %102 = vector.multi_reduction <add>, %101, %cst_49 [1] : vector<16x128xf32> to vector<16xf32>
    %103 = vector.shape_cast %102 : vector<16xf32> to vector<16x1xf32>
    %cst_50 = arith.constant 1.280000e+02 : f32
    %104 = vector.broadcast %cst_50 : f32 to vector<16x1xf32>
    %105 = arith.divf %103, %104 : vector<16x1xf32>
    %106 = vector.broadcast %105 : vector<16x1xf32> to vector<16x128xf32>
    %107 = arith.subf %101, %106 : vector<16x128xf32>
    %108 = arith.mulf %107, %107 : vector<16x128xf32>
    %cst_51 = arith.constant dense<0.000000e+00> : vector<16xf32>
    %109 = vector.multi_reduction <add>, %108, %cst_51 [1] : vector<16x128xf32> to vector<16xf32>
    %110 = vector.shape_cast %109 : vector<16xf32> to vector<16x1xf32>
    %cst_52 = arith.constant 1.280000e+02 : f32
    %111 = vector.broadcast %cst_52 : f32 to vector<16x1xf32>
    %112 = arith.divf %110, %111 : vector<16x1xf32>
    %cst_53 = arith.constant 9.99999996E-13 : f32
    %113 = vector.broadcast %cst_53 : f32 to vector<16x1xf32>
    %114 = arith.addf %112, %113 : vector<16x1xf32>
    %115 = math.rsqrt %114 : vector<16x1xf32>
    %116 = vector.broadcast %115 : vector<16x1xf32> to vector<16x128xf32>
    %117 = arith.mulf %107, %116 : vector<16x128xf32>
    %c0_54 = arith.constant 0 : index
    %c0_55 = arith.constant 0 : index
    %118 = vector.load %arg13[%c0_54, %c0_55] : memref<1x128xf32, #tpu.memory_space<vmem>>, vector<1x128xf32>
    %119 = vector.broadcast %118 : vector<1x128xf32> to vector<16x128xf32>
    %120 = arith.mulf %117, %119 : vector<16x128xf32>
    %c0_56 = arith.constant 0 : index
    %c0_57 = arith.constant 0 : index
    %121 = vector.load %arg14[%c0_56, %c0_57] : memref<1x128xf32, #tpu.memory_space<vmem>>, vector<1x128xf32>
    %122 = vector.broadcast %121 : vector<1x128xf32> to vector<16x128xf32>
    %123 = arith.addf %120, %122 : vector<16x128xf32>
    %c0_58 = arith.constant 0 : index
    %c0_59 = arith.constant 0 : index
    %c0_60 = arith.constant 0 : index
    %124 = vector.load %arg15[%c0_58, %c0_59, %c0_60] : memref<1x16x128xf32, #tpu.memory_space<vmem>>, vector<1x16x128xf32>
    %125 = vector.shape_cast %124 : vector<1x16x128xf32> to vector<16x128xf32>
    %126 = vector.shape_cast %123 : vector<16x128xf32> to vector<1x16x128xf32>
    tpu.vector_store %arg15[%c0_58, %c0_59, %c0_60], %126 {strides = array<i32>} : memref<1x16x128xf32, #tpu.memory_space<vmem>>, vector<1x16x128xf32>,
    return
  }
  func.func @transform_0(%arg0: i32) -> (i32, i32, i32) {
    %c0_i32 = arith.constant 0 : i32
    %c0_i32_0 = arith.constant 0 : i32
    %c0_i32_1 = arith.constant 0 : i32
    return %arg0, %c0_i32, %c0_i32_0 : i32, i32, i32
  }
  func.func @transform_1(%arg0: i32) -> (i32, i32, i32) {
    %c0_i32 = arith.constant 0 : i32
    %c0_i32_0 = arith.constant 0 : i32
    %c0_i32_1 = arith.constant 0 : i32
    return %arg0, %c0_i32, %c0_i32_0 : i32, i32, i32
  }
  func.func @transform_2(%arg0: i32) -> (i32, i32) {
    %c0_i32 = arith.constant 0 : i32
    %c0_i32_0 = arith.constant 0 : i32
    %c0_i32_1 = arith.constant 0 : i32
    return %c0_i32, %c0_i32_0 : i32, i32
  }
  func.func @transform_3(%arg0: i32) -> (i32, i32) {
    %c0_i32 = arith.constant 0 : i32
    %c0_i32_0 = arith.constant 0 : i32
    %c0_i32_1 = arith.constant 0 : i32
    return %c0_i32, %c0_i32_0 : i32, i32
  }
  func.func @transform_4(%arg0: i32) -> (i32, i32) {
    %c0_i32 = arith.constant 0 : i32
    %c0_i32_0 = arith.constant 0 : i32
    %c0_i32_1 = arith.constant 0 : i32
    return %c0_i32, %c0_i32_0 : i32, i32
  }
  func.func @transform_5(%arg0: i32) -> (i32, i32) {
    %c0_i32 = arith.constant 0 : i32
    %c0_i32_0 = arith.constant 0 : i32
    %c0_i32_1 = arith.constant 0 : i32
    return %c0_i32, %c0_i32_0 : i32, i32
  }
  func.func @transform_6(%arg0: i32) -> (i32, i32) {
    %c0_i32 = arith.constant 0 : i32
    %c0_i32_0 = arith.constant 0 : i32
    %c0_i32_1 = arith.constant 0 : i32
    return %c0_i32, %c0_i32_0 : i32, i32
  }
  func.func @transform_7(%arg0: i32) -> (i32, i32) {
    %c0_i32 = arith.constant 0 : i32
    %c0_i32_0 = arith.constant 0 : i32
    %c0_i32_1 = arith.constant 0 : i32
    return %c0_i32, %c0_i32_0 : i32, i32
  }
  func.func @transform_8(%arg0: i32) -> (i32, i32) {
    %c0_i32 = arith.constant 0 : i32
    %c0_i32_0 = arith.constant 0 : i32
    %c0_i32_1 = arith.constant 0 : i32
    return %c0_i32, %c0_i32_0 : i32, i32
  }
  func.func @transform_9(%arg0: i32) -> (i32, i32) {
    %c0_i32 = arith.constant 0 : i32
    %c0_i32_0 = arith.constant 0 : i32
    %c0_i32_1 = arith.constant 0 : i32
    return %c0_i32, %c0_i32_0 : i32, i32
  }
  func.func @transform_10(%arg0: i32) -> (i32, i32) {
    %c0_i32 = arith.constant 0 : i32
    %c0_i32_0 = arith.constant 0 : i32
    %c0_i32_1 = arith.constant 0 : i32
    return %c0_i32, %c0_i32_0 : i32, i32
  }
  func.func @transform_11(%arg0: i32) -> (i32, i32) {
    %c0_i32 = arith.constant 0 : i32
    %c0_i32_0 = arith.constant 0 : i32
    %c0_i32_1 = arith.constant 0 : i32
    return %c0_i32, %c0_i32_0 : i32, i32
  }
  func.func @transform_12(%arg0: i32) -> (i32, i32) {
    %c0_i32 = arith.constant 0 : i32
    %c0_i32_0 = arith.constant 0 : i32
    %c0_i32_1 = arith.constant 0 : i32
    return %c0_i32, %c0_i32_0 : i32, i32
  }
  func.func @transform_13(%arg0: i32) -> (i32, i32) {
    %c0_i32 = arith.constant 0 : i32
    %c0_i32_0 = arith.constant 0 : i32
    %c0_i32_1 = arith.constant 0 : i32
    return %c0_i32, %c0_i32_0 : i32, i32
  }
  func.func @transform_14(%arg0: i32) -> (i32, i32, i32) {
    %c0_i32 = arith.constant 0 : i32
    %c0_i32_0 = arith.constant 0 : i32
    %c0_i32_1 = arith.constant 0 : i32
    return %arg0, %c0_i32, %c0_i32_0 : i32, i32, i32
  }
}

module attributes {stable_mosaic.version = 11 : i64} {
  func.func @_ln_kernel(%arg0: i32, %arg1: memref<32x128xf32, #tpu.memory_space<vmem>>, %arg2: memref<1x128xf32, #tpu.memory_space<vmem>>, %arg3: memref<1x128xf32, #tpu.memory_space<vmem>>, %arg4: memref<32x128xf32, #tpu.memory_space<vmem>>) attributes {dimension_semantics = [#tpu.dimension_semantics<arbitrary>], iteration_bounds = array<i64: 1>, scalar_prefetch = 0 : i64, scratch_operands = 0 : i64, tpu.core_type = #tpu.core_type<tc>, window_params = [{pipeline_mode = #tpu.pipeline_mode<synchronous>, transform_indices = @transform_0, window_bounds = array<i64: 32, 128>}, {pipeline_mode = #tpu.pipeline_mode<synchronous>, transform_indices = @transform_1, window_bounds = array<i64: 1, 128>}, {pipeline_mode = #tpu.pipeline_mode<synchronous>, transform_indices = @transform_2, window_bounds = array<i64: 1, 128>}, {pipeline_mode = #tpu.pipeline_mode<synchronous>, transform_indices = @transform_3, window_bounds = array<i64: 32, 128>}]} {
    %c0 = arith.constant 0 : index
    %c0_0 = arith.constant 0 : index
    %0 = vector.load %arg1[%c0, %c0_0] : memref<32x128xf32, #tpu.memory_space<vmem>>, vector<32x128xf32>
    %cst = arith.constant dense<0.000000e+00> : vector<32xf32>
    %1 = vector.multi_reduction <add>, %0, %cst [1] : vector<32x128xf32> to vector<32xf32>
    %2 = vector.shape_cast %1 : vector<32xf32> to vector<32x1xf32>
    %cst_1 = arith.constant 1.280000e+02 : f32
    %3 = vector.broadcast %cst_1 : f32 to vector<32x1xf32>
    %4 = arith.divf %2, %3 : vector<32x1xf32>
    %5 = vector.broadcast %4 : vector<32x1xf32> to vector<32x128xf32>
    %6 = arith.subf %0, %5 : vector<32x128xf32>
    %7 = arith.mulf %6, %6 : vector<32x128xf32>
    %cst_2 = arith.constant dense<0.000000e+00> : vector<32xf32>
    %8 = vector.multi_reduction <add>, %7, %cst_2 [1] : vector<32x128xf32> to vector<32xf32>
    %9 = vector.shape_cast %8 : vector<32xf32> to vector<32x1xf32>
    %cst_3 = arith.constant 1.280000e+02 : f32
    %10 = vector.broadcast %cst_3 : f32 to vector<32x1xf32>
    %11 = arith.divf %9, %10 : vector<32x1xf32>
    %cst_4 = arith.constant 9.99999996E-13 : f32
    %12 = vector.broadcast %cst_4 : f32 to vector<32x1xf32>
    %13 = arith.addf %11, %12 : vector<32x1xf32>
    %14 = math.rsqrt %13 : vector<32x1xf32>
    %15 = vector.broadcast %14 : vector<32x1xf32> to vector<32x128xf32>
    %16 = arith.mulf %6, %15 : vector<32x128xf32>
    %c0_5 = arith.constant 0 : index
    %c0_6 = arith.constant 0 : index
    %17 = vector.load %arg2[%c0_5, %c0_6] : memref<1x128xf32, #tpu.memory_space<vmem>>, vector<1x128xf32>
    %18 = vector.broadcast %17 : vector<1x128xf32> to vector<32x128xf32>
    %19 = arith.mulf %16, %18 : vector<32x128xf32>
    %c0_7 = arith.constant 0 : index
    %c0_8 = arith.constant 0 : index
    %20 = vector.load %arg3[%c0_7, %c0_8] : memref<1x128xf32, #tpu.memory_space<vmem>>, vector<1x128xf32>
    %21 = vector.broadcast %20 : vector<1x128xf32> to vector<32x128xf32>
    %22 = arith.addf %19, %21 : vector<32x128xf32>
    %c0_9 = arith.constant 0 : index
    %c0_10 = arith.constant 0 : index
    %23 = vector.load %arg4[%c0_9, %c0_10] : memref<32x128xf32, #tpu.memory_space<vmem>>, vector<32x128xf32>
    tpu.vector_store %arg4[%c0_9, %c0_10], %22 {strides = array<i32>} : memref<32x128xf32, #tpu.memory_space<vmem>>, vector<32x128xf32>,
    return
  }
  func.func @transform_0(%arg0: i32) -> (i32, i32) {
    %c0_i32 = arith.constant 0 : i32
    %c0_i32_0 = arith.constant 0 : i32
    %c0_i32_1 = arith.constant 0 : i32
    return %c0_i32, %c0_i32_0 : i32, i32
  }
  func.func @transform_1(%arg0: i32) -> (i32, i32) {
    %c0_i32 = arith.constant 0 : i32
    %c0_i32_0 = arith.constant 0 : i32
    %c0_i32_1 = arith.constant 0 : i32
    return %c0_i32, %c0_i32_0 : i32, i32
  }
  func.func @transform_2(%arg0: i32) -> (i32, i32) {
    %c0_i32 = arith.constant 0 : i32
    %c0_i32_0 = arith.constant 0 : i32
    %c0_i32_1 = arith.constant 0 : i32
    return %c0_i32, %c0_i32_0 : i32, i32
  }
  func.func @transform_3(%arg0: i32) -> (i32, i32) {
    %c0_i32 = arith.constant 0 : i32
    %c0_i32_0 = arith.constant 0 : i32
    %c0_i32_1 = arith.constant 0 : i32
    return %c0_i32, %c0_i32_0 : i32, i32
  }
}

module attributes {stable_mosaic.version = 11 : i64} {
  func.func @kernel(%arg0: i32, %arg1: memref<1x16x128xf32, #tpu.memory_space<vmem>>, %arg2: memref<1x1x16xf32, #tpu.memory_space<vmem>>, %arg3: memref<128x384xf32, #tpu.memory_space<vmem>>, %arg4: memref<1x384xf32, #tpu.memory_space<vmem>>, %arg5: memref<128x128xf32, #tpu.memory_space<vmem>>, %arg6: memref<1x128xf32, #tpu.memory_space<vmem>>, %arg7: memref<1x128xf32, #tpu.memory_space<vmem>>, %arg8: memref<1x128xf32, #tpu.memory_space<vmem>>, %arg9: memref<128x512xf32, #tpu.memory_space<vmem>>, %arg10: memref<1x512xf32, #tpu.memory_space<vmem>>, %arg11: memref<512x128xf32, #tpu.memory_space<vmem>>, %arg12: memref<1x128xf32, #tpu.memory_space<vmem>>, %arg13: memref<1x128xf32, #tpu.memory_space<vmem>>, %arg14: memref<1x128xf32, #tpu.memory_space<vmem>>, %arg15: memref<1x16x128xf32, #tpu.memory_space<vmem>>) attributes {dimension_semantics = [#tpu.dimension_semantics<parallel>], iteration_bounds = array<i64: 2>, scalar_prefetch = 0 : i64, scratch_operands = 0 : i64, tpu.core_type = #tpu.core_type<tc>, window_params = [{transform_indices = @transform_0, window_bounds = array<i64: 1, 16, 128>}, {transform_indices = @transform_1, window_bounds = array<i64: 1, 1, 16>}, {pipeline_mode = #tpu.pipeline_mode<synchronous>, transform_indices = @transform_2, window_bounds = array<i64: 128, 384>}, {pipeline_mode = #tpu.pipeline_mode<synchronous>, transform_indices = @transform_3, window_bounds = array<i64: 1, 384>}, {pipeline_mode = #tpu.pipeline_mode<synchronous>, transform_indices = @transform_4, window_bounds = array<i64: 128, 128>}, {pipeline_mode = #tpu.pipeline_mode<synchronous>, transform_indices = @transform_5, window_bounds = array<i64: 1, 128>}, {pipeline_mode = #tpu.pipeline_mode<synchronous>, transform_indices = @transform_6, window_bounds = array<i64: 1, 128>}, {pipeline_mode = #tpu.pipeline_mode<synchronous>, transform_indices = @transform_7, window_bounds = array<i64: 1, 128>}, {pipeline_mode = #tpu.pipeline_mode<synchronous>, transform_indices = @transform_8, window_bounds = array<i64: 128, 512>}, {pipeline_mode = #tpu.pipeline_mode<synchronous>, transform_indices = @transform_9, window_bounds = array<i64: 1, 512>}, {pipeline_mode = #tpu.pipeline_mode<synchronous>, transform_indices = @transform_10, window_bounds = array<i64: 512, 128>}, {pipeline_mode = #tpu.pipeline_mode<synchronous>, transform_indices = @transform_11, window_bounds = array<i64: 1, 128>}, {pipeline_mode = #tpu.pipeline_mode<synchronous>, transform_indices = @transform_12, window_bounds = array<i64: 1, 128>}, {pipeline_mode = #tpu.pipeline_mode<synchronous>, transform_indices = @transform_13, window_bounds = array<i64: 1, 128>}, {transform_indices = @transform_14, window_bounds = array<i64: 1, 16, 128>}]} {
    %c0 = arith.constant 0 : index
    %c0_0 = arith.constant 0 : index
    %c0_1 = arith.constant 0 : index
    %0 = vector.load %arg1[%c0, %c0_0, %c0_1] : memref<1x16x128xf32, #tpu.memory_space<vmem>>, vector<1x16x128xf32>
    %1 = vector.shape_cast %0 : vector<1x16x128xf32> to vector<16x128xf32>
    %c0_2 = arith.constant 0 : index
    %c0_3 = arith.constant 0 : index
    %c0_4 = arith.constant 0 : index
    %2 = vector.load %arg2[%c0_2, %c0_3, %c0_4] : memref<1x1x16xf32, #tpu.memory_space<vmem>>, vector<1x1x16xf32>
    %3 = vector.shape_cast %2 : vector<1x1x16xf32> to vector<1x16xf32>
    %c0_5 = arith.constant 0 : index
    %c0_6 = arith.constant 0 : index
    %4 = vector.load %arg3[%c0_5, %c0_6] : memref<128x384xf32, #tpu.memory_space<vmem>>, vector<128x384xf32>
    %cst = arith.constant dense<0.000000e+00> : vector<16x384xf32>
    %5 = tpu.matmul %1, %4, %cst {dimension_numbers = #tpu.dot_dimension_numbers<[1], [0], [0], [1], [0, 0, 1, 1], [], []>} : vector<16x128xf32>, vector<128x384xf32>, vector<16x384xf32> -> vector<16x384xf32>
    %c0_7 = arith.constant 0 : index
    %c0_8 = arith.constant 0 : index
    %6 = vector.load %arg4[%c0_7, %c0_8] : memref<1x384xf32, #tpu.memory_space<vmem>>, vector<1x384xf32>
    %7 = vector.broadcast %6 : vector<1x384xf32> to vector<16x384xf32>
    %8 = arith.addf %5, %7 : vector<16x384xf32>
    %c0_9 = arith.constant 0 : index
    %c0_10 = arith.constant 0 : index
    %9 = vector.load %arg6[%c0_9, %c0_10] : memref<1x128xf32, #tpu.memory_space<vmem>>, vector<1x128xf32>
    %10 = vector.extract_strided_slice %8 {offsets = [0, 0], sizes = [16, 64], strides = [1, 1]} : vector<16x384xf32> to vector<16x64xf32>
    %11 = vector.extract_strided_slice %8 {offsets = [0, 128], sizes = [16, 64], strides = [1, 1]} : vector<16x384xf32> to vector<16x64xf32>
    %12 = vector.extract_strided_slice %8 {offsets = [0, 256], sizes = [16, 64], strides = [1, 1]} : vector<16x384xf32> to vector<16x64xf32>
    %cst_11 = arith.constant dense<0.000000e+00> : vector<16x16xf32>
    %13 = tpu.matmul %10, %11, %cst_11 {dimension_numbers = #tpu.dot_dimension_numbers<[1], [1], [0], [0], [0, 0, 1, 0], [], []>} : vector<16x64xf32>, vector<16x64xf32>, vector<16x16xf32> -> vector<16x16xf32>
    %cst_12 = arith.constant 1.250000e-01 : f32
    %14 = vector.broadcast %cst_12 : f32 to vector<16x16xf32>
    %15 = arith.mulf %13, %14 : vector<16x16xf32>
    %16 = vector.broadcast %3 : vector<1x16xf32> to vector<16x16xf32>
    %17 = arith.addf %15, %16 : vector<16x16xf32>
    %cst_13 = arith.constant dense<0xFF800000> : vector<16xf32>
    %18 = vector.multi_reduction <maximumf>, %17, %cst_13 [1] : vector<16x16xf32> to vector<16xf32>
    %19 = vector.shape_cast %18 : vector<16xf32> to vector<16x1xf32>
    %20 = vector.broadcast %19 : vector<16x1xf32> to vector<16x16xf32>
    %21 = arith.subf %17, %20 : vector<16x16xf32>
    %22 = math.exp %21 : vector<16x16xf32>
    %cst_14 = arith.constant dense<0.000000e+00> : vector<16xf32>
    %23 = vector.multi_reduction <add>, %22, %cst_14 [1] : vector<16x16xf32> to vector<16xf32>
    %24 = vector.shape_cast %23 : vector<16xf32> to vector<16x1xf32>
    %25 = tpu.reciprocal %24 {approx = true} : vector<16x1xf32> -> vector<16x1xf32>
    %26 = vector.broadcast %25 : vector<16x1xf32> to vector<16x16xf32>
    %27 = arith.mulf %22, %26 : vector<16x16xf32>
    %cst_15 = arith.constant dense<0.000000e+00> : vector<16x64xf32>
    %28 = tpu.matmul %27, %12, %cst_15 {dimension_numbers = #tpu.dot_dimension_numbers<[1], [0], [0], [1], [0, 0, 1, 1], [], []>} : vector<16x16xf32>, vector<16x64xf32>, vector<16x64xf32> -> vector<16x64xf32>
    %c0_16 = arith.constant 0 : index
    %c0_17 = arith.constant 0 : index
    %29 = vector.load %arg5[%c0_16, %c0_17] : memref<128x128xf32, #tpu.memory_space<vmem>>, vector<64x128xf32>
    %cst_18 = arith.constant dense<0.000000e+00> : vector<16x128xf32>
    %30 = tpu.matmul %28, %29, %cst_18 {dimension_numbers = #tpu.dot_dimension_numbers<[1], [0], [0], [1], [0, 0, 1, 1], [], []>} : vector<16x64xf32>, vector<64x128xf32>, vector<16x128xf32> -> vector<16x128xf32>
    %31 = vector.broadcast %9 : vector<1x128xf32> to vector<16x128xf32>
    %32 = arith.addf %31, %30 : vector<16x128xf32>
    %33 = vector.extract_strided_slice %8 {offsets = [0, 64], sizes = [16, 64], strides = [1, 1]} : vector<16x384xf32> to vector<16x64xf32>
    %34 = vector.extract_strided_slice %8 {offsets = [0, 192], sizes = [16, 64], strides = [1, 1]} : vector<16x384xf32> to vector<16x64xf32>
    %35 = vector.extract_strided_slice %8 {offsets = [0, 320], sizes = [16, 64], strides = [1, 1]} : vector<16x384xf32> to vector<16x64xf32>
    %cst_19 = arith.constant dense<0.000000e+00> : vector<16x16xf32>
    %36 = tpu.matmul %33, %34, %cst_19 {dimension_numbers = #tpu.dot_dimension_numbers<[1], [1], [0], [0], [0, 0, 1, 0], [], []>} : vector<16x64xf32>, vector<16x64xf32>, vector<16x16xf32> -> vector<16x16xf32>
    %cst_20 = arith.constant 1.250000e-01 : f32
    %37 = vector.broadcast %cst_20 : f32 to vector<16x16xf32>
    %38 = arith.mulf %36, %37 : vector<16x16xf32>
    %39 = vector.broadcast %3 : vector<1x16xf32> to vector<16x16xf32>
    %40 = arith.addf %38, %39 : vector<16x16xf32>
    %cst_21 = arith.constant dense<0xFF800000> : vector<16xf32>
    %41 = vector.multi_reduction <maximumf>, %40, %cst_21 [1] : vector<16x16xf32> to vector<16xf32>
    %42 = vector.shape_cast %41 : vector<16xf32> to vector<16x1xf32>
    %43 = vector.broadcast %42 : vector<16x1xf32> to vector<16x16xf32>
    %44 = arith.subf %40, %43 : vector<16x16xf32>
    %45 = math.exp %44 : vector<16x16xf32>
    %cst_22 = arith.constant dense<0.000000e+00> : vector<16xf32>
    %46 = vector.multi_reduction <add>, %45, %cst_22 [1] : vector<16x16xf32> to vector<16xf32>
    %47 = vector.shape_cast %46 : vector<16xf32> to vector<16x1xf32>
    %48 = tpu.reciprocal %47 {approx = true} : vector<16x1xf32> -> vector<16x1xf32>
    %49 = vector.broadcast %48 : vector<16x1xf32> to vector<16x16xf32>
    %50 = arith.mulf %45, %49 : vector<16x16xf32>
    %cst_23 = arith.constant dense<0.000000e+00> : vector<16x64xf32>
    %51 = tpu.matmul %50, %35, %cst_23 {dimension_numbers = #tpu.dot_dimension_numbers<[1], [0], [0], [1], [0, 0, 1, 1], [], []>} : vector<16x16xf32>, vector<16x64xf32>, vector<16x64xf32> -> vector<16x64xf32>
    %c64 = arith.constant 64 : index
    %c0_24 = arith.constant 0 : index
    %52 = vector.load %arg5[%c64, %c0_24] : memref<128x128xf32, #tpu.memory_space<vmem>>, vector<64x128xf32>
    %cst_25 = arith.constant dense<0.000000e+00> : vector<16x128xf32>
    %53 = tpu.matmul %51, %52, %cst_25 {dimension_numbers = #tpu.dot_dimension_numbers<[1], [0], [0], [1], [0, 0, 1, 1], [], []>} : vector<16x64xf32>, vector<64x128xf32>, vector<16x128xf32> -> vector<16x128xf32>
    %54 = arith.addf %32, %53 : vector<16x128xf32>
    %55 = arith.addf %54, %1 : vector<16x128xf32>
    %cst_26 = arith.constant dense<0.000000e+00> : vector<16xf32>
    %56 = vector.multi_reduction <add>, %55, %cst_26 [1] : vector<16x128xf32> to vector<16xf32>
    %57 = vector.shape_cast %56 : vector<16xf32> to vector<16x1xf32>
    %cst_27 = arith.constant 1.280000e+02 : f32
    %58 = vector.broadcast %cst_27 : f32 to vector<16x1xf32>
    %59 = arith.divf %57, %58 : vector<16x1xf32>
    %60 = vector.broadcast %59 : vector<16x1xf32> to vector<16x128xf32>
    %61 = arith.subf %55, %60 : vector<16x128xf32>
    %62 = arith.mulf %61, %61 : vector<16x128xf32>
    %cst_28 = arith.constant dense<0.000000e+00> : vector<16xf32>
    %63 = vector.multi_reduction <add>, %62, %cst_28 [1] : vector<16x128xf32> to vector<16xf32>
    %64 = vector.shape_cast %63 : vector<16xf32> to vector<16x1xf32>
    %cst_29 = arith.constant 1.280000e+02 : f32
    %65 = vector.broadcast %cst_29 : f32 to vector<16x1xf32>
    %66 = arith.divf %64, %65 : vector<16x1xf32>
    %cst_30 = arith.constant 9.99999996E-13 : f32
    %67 = vector.broadcast %cst_30 : f32 to vector<16x1xf32>
    %68 = arith.addf %66, %67 : vector<16x1xf32>
    %69 = math.rsqrt %68 : vector<16x1xf32>
    %70 = vector.broadcast %69 : vector<16x1xf32> to vector<16x128xf32>
    %71 = arith.mulf %61, %70 : vector<16x128xf32>
    %c0_31 = arith.constant 0 : index
    %c0_32 = arith.constant 0 : index
    %72 = vector.load %arg7[%c0_31, %c0_32] : memref<1x128xf32, #tpu.memory_space<vmem>>, vector<1x128xf32>
    %73 = vector.broadcast %72 : vector<1x128xf32> to vector<16x128xf32>
    %74 = arith.mulf %71, %73 : vector<16x128xf32>
    %c0_33 = arith.constant 0 : index
    %c0_34 = arith.constant 0 : index
    %75 = vector.load %arg8[%c0_33, %c0_34] : memref<1x128xf32, #tpu.memory_space<vmem>>, vector<1x128xf32>
    %76 = vector.broadcast %75 : vector<1x128xf32> to vector<16x128xf32>
    %77 = arith.addf %74, %76 : vector<16x128xf32>
    %c0_35 = arith.constant 0 : index
    %c0_36 = arith.constant 0 : index
    %78 = vector.load %arg9[%c0_35, %c0_36] : memref<128x512xf32, #tpu.memory_space<vmem>>, vector<128x512xf32>
    %cst_37 = arith.constant dense<0.000000e+00> : vector<16x512xf32>
    %79 = tpu.matmul %77, %78, %cst_37 {dimension_numbers = #tpu.dot_dimension_numbers<[1], [0], [0], [1], [0, 0, 1, 1], [], []>} : vector<16x128xf32>, vector<128x512xf32>, vector<16x512xf32> -> vector<16x512xf32>
    %c0_38 = arith.constant 0 : index
    %c0_39 = arith.constant 0 : index
    %80 = vector.load %arg10[%c0_38, %c0_39] : memref<1x512xf32, #tpu.memory_space<vmem>>, vector<1x512xf32>
    %81 = vector.broadcast %80 : vector<1x512xf32> to vector<16x512xf32>
    %82 = arith.addf %79, %81 : vector<16x512xf32>
    %cst_40 = arith.constant 5.000000e-01 : f32
    %83 = vector.broadcast %cst_40 : f32 to vector<16x512xf32>
    %84 = arith.mulf %83, %82 : vector<16x512xf32>
    %cst_41 = arith.constant 4.471500e-02 : f32
    %85 = vector.broadcast %cst_41 : f32 to vector<16x512xf32>
    %86 = arith.mulf %85, %82 : vector<16x512xf32>
    %87 = arith.mulf %86, %82 : vector<16x512xf32>
    %88 = arith.mulf %87, %82 : vector<16x512xf32>
    %89 = arith.addf %82, %88 : vector<16x512xf32>
    %cst_42 = arith.constant 0.797884583 : f32
    %90 = vector.broadcast %cst_42 : f32 to vector<16x512xf32>
    %91 = arith.mulf %90, %89 : vector<16x512xf32>
    %92 = math.tanh %91 : vector<16x512xf32>
    %cst_43 = arith.constant 1.000000e+00 : f32
    %93 = vector.broadcast %cst_43 : f32 to vector<16x512xf32>
    %94 = arith.addf %93, %92 : vector<16x512xf32>
    %95 = arith.mulf %84, %94 : vector<16x512xf32>
    %c0_44 = arith.constant 0 : index
    %c0_45 = arith.constant 0 : index
    %96 = vector.load %arg11[%c0_44, %c0_45] : memref<512x128xf32, #tpu.memory_space<vmem>>, vector<512x128xf32>
    %cst_46 = arith.constant dense<0.000000e+00> : vector<16x128xf32>
    %97 = tpu.matmul %95, %96, %cst_46 {dimension_numbers = #tpu.dot_dimension_numbers<[1], [0], [0], [1], [0, 0, 1, 1], [], []>} : vector<16x512xf32>, vector<512x128xf32>, vector<16x128xf32> -> vector<16x128xf32>
    %c0_47 = arith.constant 0 : index
    %c0_48 = arith.constant 0 : index
    %98 = vector.load %arg12[%c0_47, %c0_48] : memref<1x128xf32, #tpu.memory_space<vmem>>, vector<1x128xf32>
    %99 = vector.broadcast %98 : vector<1x128xf32> to vector<16x128xf32>
    %100 = arith.addf %97, %99 : vector<16x128xf32>
    %101 = arith.addf %100, %77 : vector<16x128xf32>
    %cst_49 = arith.constant dense<0.000000e+00> : vector<16xf32>
    %102 = vector.multi_reduction <add>, %101, %cst_49 [1] : vector<16x128xf32> to vector<16xf32>
    %103 = vector.shape_cast %102 : vector<16xf32> to vector<16x1xf32>
    %cst_50 = arith.constant 1.280000e+02 : f32
    %104 = vector.broadcast %cst_50 : f32 to vector<16x1xf32>
    %105 = arith.divf %103, %104 : vector<16x1xf32>
    %106 = vector.broadcast %105 : vector<16x1xf32> to vector<16x128xf32>
    %107 = arith.subf %101, %106 : vector<16x128xf32>
    %108 = arith.mulf %107, %107 : vector<16x128xf32>
    %cst_51 = arith.constant dense<0.000000e+00> : vector<16xf32>
    %109 = vector.multi_reduction <add>, %108, %cst_51 [1] : vector<16x128xf32> to vector<16xf32>
    %110 = vector.shape_cast %109 : vector<16xf32> to vector<16x1xf32>
    %cst_52 = arith.constant 1.280000e+02 : f32
    %111 = vector.broadcast %cst_52 : f32 to vector<16x1xf32>
    %112 = arith.divf %110, %111 : vector<16x1xf32>
    %cst_53 = arith.constant 9.99999996E-13 : f32
    %113 = vector.broadcast %cst_53 : f32 to vector<16x1xf32>
    %114 = arith.addf %112, %113 : vector<16x1xf32>
    %115 = math.rsqrt %114 : vector<16x1xf32>
    %116 = vector.broadcast %115 : vector<16x1xf32> to vector<16x128xf32>
    %117 = arith.mulf %107, %116 : vector<16x128xf32>
    %c0_54 = arith.constant 0 : index
    %c0_55 = arith.constant 0 : index
    %118 = vector.load %arg13[%c0_54, %c0_55] : memref<1x128xf32, #tpu.memory_space<vmem>>, vector<1x128xf32>
    %119 = vector.broadcast %118 : vector<1x128xf32> to vector<16x128xf32>
    %120 = arith.mulf %117, %119 : vector<16x128xf32>
    %c0_56 = arith.constant 0 : index
    %c0_57 = arith.constant 0 : index
    %121 = vector.load %arg14[%c0_56, %c0_57] : memref<1x128xf32, #tpu.memory_space<vmem>>, vector<1x128xf32>
    %122 = vector.broadcast %121 : vector<1x128xf32> to vector<16x128xf32>
    %123 = arith.addf %120, %122 : vector<16x128xf32>
    %c0_58 = arith.constant 0 : index
    %c0_59 = arith.constant 0 : index
    %c0_60 = arith.constant 0 : index
    %124 = vector.load %arg15[%c0_58, %c0_59, %c0_60] : memref<1x16x128xf32, #tpu.memory_space<vmem>>, vector<1x16x128xf32>
    %125 = vector.shape_cast %124 : vector<1x16x128xf32> to vector<16x128xf32>
    %126 = vector.shape_cast %123 : vector<16x128xf32> to vector<1x16x128xf32>
    tpu.vector_store %arg15[%c0_58, %c0_59, %c0_60], %126 {strides = array<i32>} : memref<1x16x128xf32, #tpu.memory_space<vmem>>, vector<1x16x128xf32>,
    return
  }
  func.func @transform_0(%arg0: i32) -> (i32, i32, i32) {
    %c0_i32 = arith.constant 0 : i32
    %c0_i32_0 = arith.constant 0 : i32
    %c0_i32_1 = arith.constant 0 : i32
    return %arg0, %c0_i32, %c0_i32_0 : i32, i32, i32
  }
  func.func @transform_1(%arg0: i32) -> (i32, i32, i32) {
    %c0_i32 = arith.constant 0 : i32
    %c0_i32_0 = arith.constant 0 : i32
    %c0_i32_1 = arith.constant 0 : i32
    return %arg0, %c0_i32, %c0_i32_0 : i32, i32, i32
  }
  func.func @transform_2(%arg0: i32) -> (i32, i32) {
    %c0_i32 = arith.constant 0 : i32
    %c0_i32_0 = arith.constant 0 : i32
    %c0_i32_1 = arith.constant 0 : i32
    return %c0_i32, %c0_i32_0 : i32, i32
  }
  func.func @transform_3(%arg0: i32) -> (i32, i32) {
    %c0_i32 = arith.constant 0 : i32
    %c0_i32_0 = arith.constant 0 : i32
    %c0_i32_1 = arith.constant 0 : i32
    return %c0_i32, %c0_i32_0 : i32, i32
  }
  func.func @transform_4(%arg0: i32) -> (i32, i32) {
    %c0_i32 = arith.constant 0 : i32
    %c0_i32_0 = arith.constant 0 : i32
    %c0_i32_1 = arith.constant 0 : i32
    return %c0_i32, %c0_i32_0 : i32, i32
  }
  func.func @transform_5(%arg0: i32) -> (i32, i32) {
    %c0_i32 = arith.constant 0 : i32
    %c0_i32_0 = arith.constant 0 : i32
    %c0_i32_1 = arith.constant 0 : i32
    return %c0_i32, %c0_i32_0 : i32, i32
  }
  func.func @transform_6(%arg0: i32) -> (i32, i32) {
    %c0_i32 = arith.constant 0 : i32
    %c0_i32_0 = arith.constant 0 : i32
    %c0_i32_1 = arith.constant 0 : i32
    return %c0_i32, %c0_i32_0 : i32, i32
  }
  func.func @transform_7(%arg0: i32) -> (i32, i32) {
    %c0_i32 = arith.constant 0 : i32
    %c0_i32_0 = arith.constant 0 : i32
    %c0_i32_1 = arith.constant 0 : i32
    return %c0_i32, %c0_i32_0 : i32, i32
  }
  func.func @transform_8(%arg0: i32) -> (i32, i32) {
    %c0_i32 = arith.constant 0 : i32
    %c0_i32_0 = arith.constant 0 : i32
    %c0_i32_1 = arith.constant 0 : i32
    return %c0_i32, %c0_i32_0 : i32, i32
  }
  func.func @transform_9(%arg0: i32) -> (i32, i32) {
    %c0_i32 = arith.constant 0 : i32
    %c0_i32_0 = arith.constant 0 : i32
    %c0_i32_1 = arith.constant 0 : i32
    return %c0_i32, %c0_i32_0 : i32, i32
  }
  func.func @transform_10(%arg0: i32) -> (i32, i32) {
    %c0_i32 = arith.constant 0 : i32
    %c0_i32_0 = arith.constant 0 : i32
    %c0_i32_1 = arith.constant 0 : i32
    return %c0_i32, %c0_i32_0 : i32, i32
  }
  func.func @transform_11(%arg0: i32) -> (i32, i32) {
    %c0_i32 = arith.constant 0 : i32
    %c0_i32_0 = arith.constant 0 : i32
    %c0_i32_1 = arith.constant 0 : i32
    return %c0_i32, %c0_i32_0 : i32, i32
  }
  func.func @transform_12(%arg0: i32) -> (i32, i32) {
    %c0_i32 = arith.constant 0 : i32
    %c0_i32_0 = arith.constant 0 : i32
    %c0_i32_1 = arith.constant 0 : i32
    return %c0_i32, %c0_i32_0 : i32, i32
  }
  func.func @transform_13(%arg0: i32) -> (i32, i32) {
    %c0_i32 = arith.constant 0 : i32
    %c0_i32_0 = arith.constant 0 : i32
    %c0_i32_1 = arith.constant 0 : i32
    return %c0_i32, %c0_i32_0 : i32, i32
  }
  func.func @transform_14(%arg0: i32) -> (i32, i32, i32) {
    %c0_i32 = arith.constant 0 : i32
    %c0_i32_0 = arith.constant 0 : i32
    %c0_i32_1 = arith.constant 0 : i32
    return %arg0, %c0_i32, %c0_i32_0 : i32, i32, i32
  }
}

</mosaic_0001>

<bundles_post_ra>
// kernel: bert_ner_forward.4
= control target key start
LH: loop header
LB: loop body
LE: loop exit
PB: predicated region body
PF: predicated region fallthrough
CT: control target
= control target key end

     0   :  { %s153_s0 = inlined_call_operand.vmem [shape: f32[32,128], index: 0, kind: input, shape index: {}]   ;;  %s154_s1 = inlined_call_operand.vmem [shape: f32[1,128], index: 1, kind: input, shape index: {}]   ;;  %s155_s2 = inlined_call_operand.vmem [shape: f32[1,128], index: 2, kind: input, shape index: {}]   ;;  %s156_s3 = inlined_call_operand.vmem [shape: f32[32,128], index: 3, kind: output, shape index: {}]  }
   0x1   :  { %v14_v0 = vld [vmem:[%s153_s0] sm:$0xff]  ;;  %v16_v1 = vld [vmem:[%s153_s0 + $0x10] sm:$0xff]  ;;  %v15_v2 = vld [vmem:[%s153_s0 + $0x8] sm:$0xff] }
   0x2   :  { %18 = vadd.xlane.f32.xlu0 %v14_v0  ;;  %22 = vadd.xlane.f32.xlu1 %v16_v1  ;;  %v17_v3 = vld [vmem:[%s153_s0 + $0x18] sm:$0xff]  ;;  %v93_v33 = vld [vmem:[%s154_s1] ss:$0 sm:$0xff] }
   0x3   :  { %v94_v35 = vld [vmem:[%s155_s2] ss:$0 sm:$0xff] }
   0x6   :  { %20 = vadd.xlane.f32.xlu0 %v15_v2  ;;  %24 = vadd.xlane.f32.xlu1 %v17_v3 }
  0x8f   :  { %v19_v4 = vpop.xlane.xlu0 %18  ;;  %v23_v5 = vpop.xlane.xlu1 %22 }
  0x90   :  { %v27_v6 = vmul.f32 0.0078125, %v19_v4  ;;  %v29_v7 = vmul.f32 0.0078125, %v23_v5 }
  0x92   :  { %v31_v8 = vsub.f32 %v14_v0, %v27_v6  ;;  %v33_v9 = vsub.f32 %v16_v1, %v29_v7 }
  0x93   :  { %v21_v10 = vpop.xlane.xlu0 %20  ;;  %v25_v11 = vpop.xlane.xlu1 %24 }
  0x94   :  { %v28_v12 = vmul.f32 0.0078125, %v21_v10  ;;  %v35_v13 = vmul.f32 %v31_v8, %v31_v8  ;;  %v30_v14 = vmul.f32 0.0078125, %v25_v11  ;;  %v37_v17 = vmul.f32 %v33_v9, %v33_v9 }
  0x96   :  { %v32_v15 = vsub.f32 %v15_v2, %v28_v12  ;;  %39 = vadd.xlane.f32.xlu0 %v35_v13  ;;  %v34_v16 = vsub.f32 %v17_v3, %v30_v14 }
  0x98   :  { %v36_v18 = vmul.f32 %v32_v15, %v32_v15  ;;  %v38_v19 = vmul.f32 %v34_v16, %v34_v16 }
  0x9a   :  { %43 = vadd.xlane.f32.xlu0 %v37_v17  ;;  %41 = vadd.xlane.f32.xlu1 %v36_v18 }
  0x9e   :  { %45 = vadd.xlane.f32.xlu1 %v38_v19 }
 0x123   :  { %v40_v20 = vpop.xlane.xlu0 %39 }
 0x124   :  { %v47_v21 = vmul.f32 0.0078125, %v40_v20 }
 0x126   :  { %v51_v22 = vadd.f32 1e-12, %v47_v21 }
 0x127   :  { %v42_v23 = vpop.xlane.xlu1 %41  ;;  %v44_v24 = vpop.xlane.xlu0 %43 }
 0x128   :  { %95 = vrsqrt.f32 %v51_v22  ;;  %v48_v25 = vmul.f32 0.0078125, %v42_v23  ;;  %v49_v26 = vmul.f32 0.0078125, %v44_v24 }
 0x12a   :  { %v52_v27 = vadd.f32 1e-12, %v48_v25  ;;  %v53_v28 = vadd.f32 1e-12, %v49_v26 }
 0x12b   :  { %v46_v29 = vpop.xlane.xlu1 %45 }
 0x12c   :  { %97 = vrsqrt.f32 %v52_v27  ;;  %v50_v30 = vmul.f32 0.0078125, %v46_v29 }
 0x12d   :  { %99 = vrsqrt.f32 %v53_v28 }
 0x12e   :  { %v54_v31 = vadd.f32 1e-12, %v50_v30 }
 0x130   :  { %101 = vrsqrt.f32 %v54_v31 }
 0x132   :  { %v96_v32 = vpop.eup %95 }
 0x133   :  { %v59_v34 = vmul.f32 %v96_v32, %v31_v8 }
 0x135   :  { %v70_v36 = vmul.f32 %v93_v33, %v59_v34 }
 0x136   :  { %v98_v37 = vpop.eup %97 }
 0x137   :  { %v100_v38 = vpop.eup %99  ;;  %v81_v39 = vadd.f32 %v94_v35, %v70_v36  ;;  %v60_v40 = vmul.f32 %v98_v37, %v32_v15 }
 0x138   :  { %v61_v41 = vmul.f32 %v100_v38, %v33_v9 }
 0x139   :  { %85 = vst [vmem:[%s156_s3] sm:$0xff] %v81_v39  ;;  %v71_v42 = vmul.f32 %v93_v33, %v60_v40 }
 0x13a   :  { %v102_v43 = vpop.eup %101  ;;  %v72_v44 = vmul.f32 %v93_v33, %v61_v41 }
 0x13b   :  { %v82_v45 = vadd.f32 %v94_v35, %v71_v42  ;;  %v62_v46 = vmul.f32 %v102_v43, %v34_v16 }
 0x13c   :  { %v83_v47 = vadd.f32 %v94_v35, %v72_v44 }
 0x13d   :  { %86 = vst [vmem:[%s156_s3 + $0x8] sm:$0xff] %v82_v45  ;;  %v73_v48 = vmul.f32 %v93_v33, %v62_v46 }
 0x13e   :  { %87 = vst [vmem:[%s156_s3 + $0x10] sm:$0xff] %v83_v47 }
 0x13f   :  { %v84_v49 = vadd.f32 %v94_v35, %v73_v48 }
 0x141   :  { %88 = vst [vmem:[%s156_s3 + $0x18] sm:$0xff] %v84_v49 }

// kernel: bert_ner_forward.7
= control target key start
LH: loop header
LB: loop body
LE: loop exit
PB: predicated region body
PF: predicated region fallthrough
CT: control target
= control target key end

     0   :  { %s336_s1 = inlined_call_operand.vmem [shape: f32[128,128], index: 1, kind: input, shape index: {}]   ;;  %s337_s0 = inlined_call_operand.vmem [shape: f32[32,128], index: 0, kind: input, shape index: {}]   ;;  %s338_s2 = inlined_call_operand.vmem [shape: f32[1,128], index: 2, kind: input, shape index: {}]   ;;  %s339_s3 = inlined_call_operand.vmem [shape: f32[32,128], index: 3, kind: output, shape index: {}]  }
   0x1   :  { %v18_v0 = vld [vmem:[%s336_s1] sm:$0xff]  ;;  %v19_v1 = vld [vmem:[%s336_s1 + $0x8] sm:$0xff]  ;;  %v20_v2 = vld [vmem:[%s336_s1 + $0x10] sm:$0xff] }
   0x2   :  { %v193_v3 = vpack.c.bf16 %v19_v1, %v18_v0  ;;  %v21_v4 = vld [vmem:[%s336_s1 + $0x18] sm:$0xff]  ;;  %v22_v6 = vld [vmem:[%s336_s1 + $0x20] sm:$0xff]  ;;  %v23_v7 = vld [vmem:[%s336_s1 + $0x28] sm:$0xff] }
   0x3   :  { %v197_v5 = vpack.c.bf16 %v21_v4, %v20_v2  ;;  %v201_v8 = vpack.c.bf16 %v23_v7, %v22_v6  ;;  %v14_v9 = vld [vmem:[%s337_s0] sm:$0xff]  ;;  %v16_v10 = vld [vmem:[%s337_s0 + $0x10] sm:$0xff]  ;;  %v25_v12 = vld [vmem:[%s336_s1 + $0x38] sm:$0xff] }
   0x4   :  { %194 = vmatprep.subr.bf16.mxu0 %v193_v3  ;;  %225 = vmatprep.subr.bf16.mxu1 %v193_v3  ;;  %v24_v11 = vld [vmem:[%s336_s1 + $0x30] sm:$0xff]  ;;  %v26_v14 = vld [vmem:[%s336_s1 + $0x40] sm:$0xff]  ;;  %v27_v15 = vld [vmem:[%s336_s1 + $0x48] sm:$0xff] }
   0x5   :  { %196 = vmatpush3.bf16.msra.mxu0 %v193_v3  ;;  %233 = vmatpush3.bf16.msra.mxu1 %v193_v3  ;;  %v205_v13 = vpack.c.bf16 %v25_v12, %v24_v11  ;;  %v209_v16 = vpack.c.bf16 %v27_v15, %v26_v14  ;;  %v28_v17 = vld [vmem:[%s336_s1 + $0x50] sm:$0xff]  ;;  %v29_v18 = vld [vmem:[%s336_s1 + $0x58] sm:$0xff]  ;;  %v30_v20 = vld [vmem:[%s336_s1 + $0x60] sm:$0xff] }
   0x6   :  { %198 = vmatprep.subr.bf16.mxu0 %v197_v5  ;;  %226 = vmatprep.subr.bf16.mxu1 %v197_v5  ;;  %v213_v19 = vpack.c.bf16 %v29_v18, %v28_v17  ;;  %v31_v21 = vld [vmem:[%s336_s1 + $0x68] sm:$0xff]  ;;  %v32_v23 = vld [vmem:[%s336_s1 + $0x70] sm:$0xff]  ;;  %v33_v24 = vld [vmem:[%s336_s1 + $0x78] sm:$0xff] }
   0x7   :  { %187 = vmatprep.mubr.f32.mxu0 %v14_v9  ;;  %190 = vmatprep.mubr.f32.mxu1 %v16_v10  ;;  %v217_v22 = vpack.c.bf16 %v31_v21, %v30_v20  ;;  %v221_v25 = vpack.c.bf16 %v33_v24, %v32_v23  ;;  %v15_v26 = vld [vmem:[%s337_s0 + $0x8] sm:$0xff]  ;;  %v17_v27 = vld [vmem:[%s337_s0 + $0x18] sm:$0xff]  ;;  %v134_v28 = vld [vmem:[%s338_s2] ss:$0 sm:$0xff] }
   0x9   :  { %200 = vmatpush3.bf16.msra.mxu0 %v197_v5  ;;  %234 = vmatpush3.bf16.msra.mxu1 %v197_v5 }
   0xa   :  { %202 = vmatprep.subr.bf16.mxu0 %v201_v8  ;;  %227 = vmatprep.subr.bf16.mxu1 %v201_v8 }
   0xd   :  { %204 = vmatpush3.bf16.msra.mxu0 %v201_v8  ;;  %235 = vmatpush3.bf16.msra.mxu1 %v201_v8 }
   0xe   :  { %206 = vmatprep.subr.bf16.mxu0 %v205_v13  ;;  %228 = vmatprep.subr.bf16.mxu1 %v205_v13 }
  0x11   :  { %208 = vmatpush3.bf16.msra.mxu0 %v205_v13  ;;  %236 = vmatpush3.bf16.msra.mxu1 %v205_v13 }
  0x12   :  { %210 = vmatprep.subr.bf16.mxu0 %v209_v16  ;;  %229 = vmatprep.subr.bf16.mxu1 %v209_v16 }
  0x15   :  { %212 = vmatpush3.bf16.msra.mxu0 %v209_v16  ;;  %237 = vmatpush3.bf16.msra.mxu1 %v209_v16 }
  0x16   :  { %214 = vmatprep.subr.bf16.mxu0 %v213_v19  ;;  %230 = vmatprep.subr.bf16.mxu1 %v213_v19 }
  0x19   :  { %216 = vmatpush3.bf16.msra.mxu0 %v213_v19  ;;  %238 = vmatpush3.bf16.msra.mxu1 %v213_v19 }
  0x1a   :  { %218 = vmatprep.subr.bf16.mxu0 %v217_v22  ;;  %231 = vmatprep.subr.bf16.mxu1 %v217_v22 }
  0x1d   :  { %220 = vmatpush3.bf16.msra.mxu0 %v217_v22  ;;  %239 = vmatpush3.bf16.msra.mxu1 %v217_v22 }
  0x1e   :  { %222 = vmatprep.subr.bf16.mxu0 %v221_v25  ;;  %232 = vmatprep.subr.bf16.mxu1 %v221_v25 }
  0x21   :  { %224 = vmatpush3.bf16.msra.mxu0 %v221_v25  ;;  %240 = vmatpush3.bf16.msra.mxu1 %v221_v25 }
  0x24   :  { %188 = vmatmul.mubr.f32.vlgmr.msra.gmra.mrb[0].mxu0 %v15_v26  ;;  %191 = vmatmul.mubr.f32.vlgmr.msra.gmra.mrb[0].mxu1 %v17_v27 }
  0xf7   :  { %v189_v29 = vpop.f32.mrb[0].mxu0  ;;  %v192_v30 = vpop.f32.mrb[0].mxu1 }
  0xf8   :  { %v113_v31 = vadd.f32 %v189_v29, %v134_v28  ;;  %v123_v32 = vadd.f32 %v192_v30, %v134_v28  ;;  %v107_v33 = vpop.f32.mrb[1].mxu0  ;;  %v117_v34 = vpop.f32.mrb[1].mxu1 }
  0xf9   :  { %v108_v35 = vadd.f32 %v134_v28, %v107_v33  ;;  %v118_v36 = vadd.f32 %v134_v28, %v117_v34 }
  0xfa   :  { %127 = vst [vmem:[%s339_s3 + $0x8] sm:$0xff] %v113_v31  ;;  %129 = vst [vmem:[%s339_s3 + $0x18] sm:$0xff] %v123_v32 }
  0xfb   :  { %126 = vst [vmem:[%s339_s3] sm:$0xff] %v108_v35  ;;  %128 = vst [vmem:[%s339_s3 + $0x10] sm:$0xff] %v118_v36 }

// kernel: bert_ner_forward.5
= control target key start
LH: loop header
LB: loop body
LE: loop exit
PB: predicated region body
PF: predicated region fallthrough
CT: control target
= control target key end

     0   :  { %19 = vsyncpa [#allocation3], 0  ;;  %s3315_s0 = inlined_call_operand.vmem [shape: f32[2,16,128], index: 0, kind: input, shape index: {}]   ;;  %s3316_s1 = inlined_call_operand.vmem [shape: f32[2,1,16], index: 1, kind: input, shape index: {}]   ;;  %s3317_s2 = inlined_call_operand.hbm [shape: f32[128,384], index: 2, kind: input, shape index: {}]   ;;  %s3318_s3 = inlined_call_operand.vmem [shape: f32[1,384], index: 3, kind: input, shape index: {}]   ;;  %s3319_s4 = inlined_call_operand.vmem [shape: f32[128,128], index: 4, kind: input, shape index: {}]   ;;  %s3320_s5 = inlined_call_operand.vmem [shape: f32[1,128], index: 5, kind: input, shape index: {}]   ;;  %s3321_s6 = inlined_call_operand.vmem [shape: f32[1,128], index: 6, kind: input, shape index: {}]   ;;  %s3322_s7 = inlined_call_operand.vmem [shape: f32[1,128], index: 7, kind: input, shape index: {}]   ;;  %s3323_s8 = inlined_call_operand.vmem [shape: f32[128,512], index: 8, kind: input, shape index: {}]   ;;  %s3324_s9 = inlined_call_operand.vmem [shape: f32[1,512], index: 9, kind: input, shape index: {}]   ;;  %s3325_s10 = inlined_call_operand.hbm [shape: f32[512,128], index: 10, kind: input, shape index: {}]   ;;  %s3326_s11 = inlined_call_operand.vmem [shape: f32[1,128], index: 11, kind: input, shape index: {}]   ;;  %s3327_s12 = inlined_call_operand.vmem [shape: f32[1,128], index: 12, kind: input, shape index: {}]   ;;  %s3328_s13 = inlined_call_operand.vmem [shape: f32[1,128], index: 13, kind: input, shape index: {}]   ;;  %s3329_s14 = inlined_call_operand.vmem [shape: f32[2,16,128], index: 14, kind: output, shape index: {}]  }
   0x1   :  { %20 = vsyncpa [#allocation5], 0  ;;  %s2794_s29 = smov 0  }
   0x2 LB: > { %3333 = sst [smem:[#allocation8_spill]] %s2709_s29  ;;  %s2711_s30 = smov [#allocation2]   ;;  %s2709_s29 = sphi %s2794_s29, %s26_s29  }
   0x3   : > { %s373_s15 = sshll.u32 %s2711_s30, 4  ;;  %s2800_s16 = sadd.s32 4294967295, %s2709_s29   ;;  %s374_s15 = int_to_ptr.vmem [resolvable:$true] %s373_s15 }
   0x4   : > { %p2037_p0 = scmp.ge.s32.totalorder %s2709_s29, 1  ;;  %p361_p1 = scmp.lt.s32.totalorder %s2709_s29, 3 }
   0x5   : > { %p3330_p3 = scmp.eq.s32.totalorder %s2800_s16, 0  ;;  %s2712_s18 = smov [#allocation4]  }
   0x6   : > { %p2804_p2 = pnand %p2037_p0, %p361_p1  ;;  %s407_s19 = sshll.u32 %s2712_s18, 4  ;;  %s2817_s19 = int_to_ptr.vmem [resolvable:$true] %s407_s19 }
   0x7   : > { %s2639_s23 = scalar_lea.hbm %s3317_s2, 6144 }
   0x8   : > { %s3334_s17 = scalar_select %p2804_p2, 1, 0 }
   0x9   : > { %p2562_p4 = pneg %p2804_p2  ;;  %p2640_p6 = scmp.ne.s32.totalorder %s3317_s2, %s2639_s23 }
   0xa   : > { %p2646_p10 = scmp.lt.u32.totalorder %s2639_s23, %s3317_s2 }
   0xb   : > { %p2813_p5 = pnand %p3330_p3, %p2562_p4 }
   0xd   : > { %p2641_p7 = pneg %p2813_p5 }
   0xf   : > { %p2642_p8 = pnand %p2641_p7, %p2640_p6 }
  0x11   : > { %p2643_p9 = pneg %p2642_p8 }
  0x13   : > { %p2648_p11 = pnand %p2646_p10, %p2643_p9 }
  0x15   : > { %2651 = shalt.err (!%p2648_p11)
}
  0x16   : > { %s2652_s28 = scalar_lea.vmem %s374_s15, 6144  ;;  %p2660_p1 = scmp.lt.s32.totalorder %s374_s15, %s374_s15 }
  0x17   : > { %p2653_p12 = scmp.ne.s32.totalorder %s374_s15, %s2652_s28  ;;  %p2661_p4 = scmp.lt.s32.totalorder %s2652_s28, %s2652_s28 }
  0x19   : > { %p2655_p13 = pnand %p2653_p12, %p2641_p7  ;;  %p2662_p3 = por %p2661_p4, %p2660_p1 }
  0x1b   : > { %p2656_p0 = pneg %p2655_p13 }
  0x1d   : > { %p2663_p2 = pnand %p2662_p3, %p2656_p0 }
  0x1f   : > { %2666 = shalt.err (!%p2663_p2)
}
  0x20   : > { %s2713_s30 = smov 384   ;;  %s2714_s18 = smov 24  }
  0x21   : > { %2565 = dma.hbm_to_vmem [thread:$0]  (!%p2813_p5), %s3317_s2, 6144, %s374_s15, [#allocation3], %s2713_s30, %s2713_s30, %s2714_s18  }
  0x22   : > { %s2667_s25 = scalar_lea.hbm %s3325_s10, 8192 }
  0x23   : > { %p2668_p6 = scmp.ne.s32.totalorder %s3325_s10, %s2667_s25  ;;  %p2674_p8 = scmp.lt.u32.totalorder %s2667_s25, %s3325_s10 }
  0x25   : > { %p2670_p2 = pnand %p2668_p6, %p2641_p7 }
  0x27   : > { %p2671_p3 = pneg %p2670_p2 }
  0x29   : > { %p2676_p9 = pnand %p2674_p8, %p2671_p3 }
  0x2b   : > { %2679 = shalt.err (!%p2676_p9)
}
  0x2c   : > { %s2680_s15 = scalar_lea.vmem %s2817_s19, 8192  ;;  %p2688_p13 = scmp.lt.s32.totalorder %s2817_s19, %s2817_s19 }
  0x2d   : > { %p2681_p10 = scmp.ne.s32.totalorder %s2817_s19, %s2680_s15  ;;  %p2689_p0 = scmp.lt.s32.totalorder %s2680_s15, %s2680_s15 }
  0x2f   : > { %p2683_p11 = pnand %p2681_p10, %p2641_p7  ;;  %p2690_p1 = por %p2689_p0, %p2688_p13 }
  0x31   : > { %p2684_p12 = pneg %p2683_p11 }
  0x33   : > { %p2691_p4 = pnand %p2690_p1, %p2684_p12 }
  0x35   : > { %2694 = shalt.err (!%p2691_p4)
}
  0x36   : > { %s2715_s29 = smov 128   ;;  %s2716_s30 = smov 8  }
  0x37   : > { %2568 = dma.hbm_to_vmem [thread:$0]  (!%p2813_p5), %s3325_s10, 8192, %s2817_s19, [#allocation5], %s2715_s29, %s2715_s29, %s2716_s30  }
  0x38   : > { %p3336_p6 = scmp.ne.s32.totalorder %s3334_s17, 0 }
  0x39   : > { %p3337_p7 = scmp.eq.s32.totalorder (!%p3336_p6), %s2800_s16, 0 }
  0x3a   : > { %446 = sbr.rel (%p3336_p6) target bundleno = 2938 (0xb7a), region = 76 }
  0x41   : > { %2700 = dma.done.wait (%p3337_p7), [#allocation3], 6144   ;;  %p3338_p2 = pmov %p3337_p7 }
  0x43   : > { %2702 = vsyncadd (%p3338_p2), [#allocation3], 4294961152  ;;  %p3339_p3 = pmov %p3338_p2 }
  0x44   : > { %p3340_p8 = pmov %p3338_p2 }
  0x45   : > { %2704 = dma.done.wait (%p3339_p3), [#allocation5], 8192  }
  0x46   : > { %2706 = vsyncadd (%p3340_p8), [#allocation5], 4294959104  ;;  %v2717_v0 = vmov 0.0   ;;  %p499_p5 = scmp.lt.s32.totalorder %s2800_s16, 1  ;;  %v516_v1 = vld [vmem:[#allocation2 + $0x8] sm:$0xff]  ;;  %v519_v2 = vld [vmem:[#allocation2 + $0x20] sm:$0xff]  ;;  %v565_v51 = vlaneseq }
  0x47   : > { %644 = vmatprep.mubr.f32.mxu0 %v2717_v0  ;;  %v515_v3 = vld [vmem:[#allocation2] sm:$0xff]  ;;  %v2306_v4 = vpack.c.bf16 %v519_v2, %v516_v1  ;;  %v518_v5 = vld [vmem:[#allocation2 + $0x18] sm:$0xff]  ;;  %v525_v7 = vld [vmem:[#allocation2 + $0x50] sm:$0xff]  ;;  %vm733_vm0 = vcmask 523264   ;;  %s2718_s25 = smov 64   ;;  %vm831_vm2 = vcmask 130048  }
  0x48   : > { %s3345_s16 = smov (!%p499_p5, %s2800_s16), 1  ;;  %v522_v6 = vld [vmem:[#allocation2 + $0x38] sm:$0xff]  ;;  %v2308_v8 = vpack.c.bf16 %v518_v5, %v515_v3  ;;  %v521_v10 = vld [vmem:[#allocation2 + $0x30] sm:$0xff]  ;;  %v524_v11 = vld [vmem:[#allocation2 + $0x48] sm:$0xff]  ;;  %v2899_v52 = vshrl.u32 %v565_v51, 7 }
  0x49   : > { %v2310_v9 = vpack.c.bf16 %v525_v7, %v522_v6  ;;  %v528_v12 = vld [vmem:[#allocation2 + $0x68] sm:$0xff]  ;;  %2307 = vmatprep.subr.bf16.mxu0 %v2306_v4  ;;  %v531_v13 = vld [vmem:[#allocation2 + $0x80] sm:$0xff]  ;;  %v2312_v14 = vpack.c.bf16 %v524_v11, %v521_v10  ;;  %s2073_s17 = sshll.u32 %s3345_s16, 4  ;;  %v530_v17 = vld [vmem:[#allocation2 + $0x78] sm:$0xff]  ;;  %s506_s28 = scalar_lea.vmem %s3316_s1, %s3345_s16 }
  0x4a   : > { %2309 = vmatpush1.bf16.msra.mxu0 %v2308_v8  ;;  %v2314_v15 = vpack.c.bf16 %v531_v13, %v528_v12  ;;  %v527_v16 = vld [vmem:[#allocation2 + $0x60] sm:$0xff]  ;;  %v534_v18 = vld [vmem:[#allocation2 + $0x98] sm:$0xff]  ;;  %v537_v19 = vld [vmem:[#allocation2 + $0xb0] sm:$0xff]  ;;  %s2887_s22 = scalar_lea.vmem %s3315_s0, %s2073_s17  ;;  %v567_v61 = vsub.s32 0, %v2899_v52  ;;  %v571_v4 = vsub.s32 1, %v2899_v52  ;;  %s511_s23 = scalar_lea.vmem %s3329_s14, %s2073_s17 }
  0x4b   : > { %2311 = vmatprep.subr.bf16.mxu0 %v2310_v9  ;;  %v2316_v20 = vpack.c.bf16 %v530_v17, %v527_v16  ;;  %v2318_v21 = vpack.c.bf16 %v537_v19, %v534_v18  ;;  %v533_v22 = vld [vmem:[#allocation2 + $0x90] sm:$0xff]  ;;  %v536_v23 = vld [vmem:[#allocation2 + $0xa8] sm:$0xff]  ;;  %v543_v25 = vld [vmem:[#allocation2 + $0xe0] sm:$0xff] }
  0x4c   : > { %v540_v24 = vld [vmem:[#allocation2 + $0xc8] sm:$0xff]  ;;  %v2890_v26 = vld [vmem:[%s2887_s22] sm:$0xff]  ;;  %v2320_v27 = vpack.c.bf16 %v536_v23, %v533_v22  ;;  %v542_v30 = vld [vmem:[#allocation2 + $0xd8] sm:$0xff] }
  0x4d   : > { %2237 = vmatprep.mubr.f32.mxu1 %v2890_v26  ;;  %v2322_v28 = vpack.c.bf16 %v543_v25, %v540_v24  ;;  %v539_v29 = vld [vmem:[#allocation2 + $0xc0] sm:$0xff]  ;;  %v546_v31 = vld [vmem:[#allocation2 + $0xf8] sm:$0xff]  ;;  %v549_v32 = vld [vmem:[#allocation2 + $0x110] sm:$0xff] }
  0x4e   : > { %2313 = vmatpush1.bf16.msra.mxu0 %v2312_v14  ;;  %v2324_v33 = vpack.c.bf16 %v542_v30, %v539_v29  ;;  %v2326_v34 = vpack.c.bf16 %v549_v32, %v546_v31  ;;  %v545_v35 = vld [vmem:[#allocation2 + $0xf0] sm:$0xff]  ;;  %v548_v36 = vld [vmem:[#allocation2 + $0x108] sm:$0xff]  ;;  %v555_v38 = vld [vmem:[#allocation2 + $0x140] sm:$0xff] }
  0x4f   : > { %2315 = vmatprep.subr.bf16.mxu0 %v2314_v15  ;;  %v552_v37 = vld [vmem:[#allocation2 + $0x128] sm:$0xff]  ;;  %v2328_v39 = vpack.c.bf16 %v548_v36, %v545_v35  ;;  %v551_v41 = vld [vmem:[#allocation2 + $0x120] sm:$0xff]  ;;  %v554_v42 = vld [vmem:[#allocation2 + $0x138] sm:$0xff] }
  0x50   : > { %v2330_v40 = vpack.c.bf16 %v555_v38, %v552_v37  ;;  %v558_v43 = vld [vmem:[#allocation2 + $0x158] sm:$0xff]  ;;  %v561_v44 = vld [vmem:[#allocation2 + $0x170] sm:$0xff]  ;;  %v2332_v45 = vpack.c.bf16 %v554_v42, %v551_v41  ;;  %v560_v48 = vld [vmem:[#allocation2 + $0x168] sm:$0xff] }
  0x51   : > { %v2334_v46 = vpack.c.bf16 %v561_v44, %v558_v43  ;;  %v557_v47 = vld [vmem:[#allocation2 + $0x150] sm:$0xff]  ;;  %v2896_v50 = vld [vmem:[%s2887_s22 + $0x8] sm:$0xff]  ;;  %v523_v55 = vld [vmem:[#allocation2 + $0x40] sm:$0xff] }
  0x52   : > { %2317 = vmatpush1.bf16.msra.mxu0 %v2316_v20  ;;  %v2336_v49 = vpack.c.bf16 %v560_v48, %v557_v47  ;;  %v517_v53 = vld [vmem:[#allocation2 + $0x10] sm:$0xff]  ;;  %v520_v54 = vld [vmem:[#allocation2 + $0x28] sm:$0xff]  ;;  %v526_v57 = vld [vmem:[#allocation2 + $0x58] sm:$0xff] }
  0x53   : > { %2319 = vmatprep.subr.bf16.mxu0 %v2318_v21  ;;  %v2338_v56 = vpack.c.bf16 %v520_v54, %v517_v53  ;;  %v2342_v58 = vpack.c.bf16 %v526_v57, %v523_v55  ;;  %v529_v59 = vld [vmem:[#allocation2 + $0x70] sm:$0xff]  ;;  %v532_v60 = vld [vmem:[#allocation2 + $0x88] sm:$0xff]  ;;  %v2905_v62 = vld [vmem:[%s3318_s3] sm:$0x7] }
  0x54   : > { %v2346_v63 = vpack.c.bf16 %v532_v60, %v529_v59  ;;  %v535_v1 = vld [vmem:[#allocation2 + $0xa0] sm:$0xff]  ;;  %v538_v2 = vld [vmem:[#allocation2 + $0xb8] sm:$0xff]  ;;  %v568_v3 = vrot.slane %v2905_v62, %v567_v61  ;;  %v541_v6 = vld [vmem:[#allocation2 + $0xd0] sm:$0xff]  ;;  %v572_v11 = vrot.slane %v2905_v62, %v571_v4 }
  0x55   : > { %2339 = vmatprep.subr.bf16.mxu1 %v2338_v56  ;;  %v2350_v5 = vpack.c.bf16 %v538_v2, %v535_v1  ;;  %v544_v7 = vld [vmem:[#allocation2 + $0xe8] sm:$0xff]  ;;  %v547_v13 = vld [vmem:[#allocation2 + $0x100] sm:$0xff]  ;;  %v550_v14 = vld [vmem:[#allocation2 + $0x118] sm:$0xff] }
  0x56   : > { %2321 = vmatpush1.bf16.msra.mxu0 %v2320_v27  ;;  %2341 = vmatpush3.bf16.msra.mxu1 %v2338_v56  ;;  %v2354_v12 = vpack.c.bf16 %v544_v7, %v541_v6  ;;  %v2358_v19 = vpack.c.bf16 %v550_v14, %v547_v13  ;;  %vm2918_vm1 = vmpackc.low %vm733_vm0, %vm733_vm0  ;;  %v553_v21 = vld [vmem:[#allocation2 + $0x130] sm:$0xff]  ;;  %v556_v22 = vld [vmem:[#allocation2 + $0x148] sm:$0xff] }
  0x57   : > { %2323 = vmatprep.subr.bf16.mxu0 %v2322_v28  ;;  %2343 = vmatprep.subr.bf16.mxu1 %v2342_v58  ;;  %v2362_v25 = vpack.c.bf16 %v556_v22, %v553_v21  ;;  %v559_v27 = vld [vmem:[#allocation2 + $0x160] sm:$0xff]  ;;  %v562_v28 = vld [vmem:[#allocation2 + $0x178] sm:$0xff] }
  0x58   : > { %v2366_v29 = vpack.c.bf16 %v562_v28, %v559_v27  ;;  %v935_v2 = vld [vmem:[%s3319_s4] sm:$0xff]  ;;  %v938_v7 = vld [vmem:[%s3319_s4 + $0x18] sm:$0xff] }
  0x59   : > { %v942_v13 = vld [vmem:[%s3319_s4 + $0x38] sm:$0xff] }
  0x5a   : > { %2325 = vmatpush1.bf16.msra.mxu0 %v2324_v33  ;;  %2345 = vmatpush3.bf16.msra.mxu1 %v2342_v58  ;;  %v2932_v33 = vld [vmem:[%s506_s28] ss:$0 sm:$0xff] }
  0x5b   : > { %2327 = vmatprep.subr.bf16.mxu0 %v2326_v34  ;;  %2347 = vmatprep.subr.bf16.mxu1 %v2346_v63 }
  0x5e   : > { %2329 = vmatpush1.bf16.msra.mxu0 %v2328_v39  ;;  %2349 = vmatpush3.bf16.msra.mxu1 %v2346_v63 }
  0x5f   : > { %2331 = vmatprep.subr.bf16.mxu0 %v2330_v40  ;;  %2351 = vmatprep.subr.bf16.mxu1 %v2350_v5  ;;  %v575_v40 = vsub.s32 2, %v2899_v52 }
  0x61   : > { %v576_v41 = vrot.slane %v2905_v62, %v575_v40 }
  0x62   : > { %2333 = vmatpush1.bf16.msra.mxu0 %v2332_v45  ;;  %2353 = vmatpush3.bf16.msra.mxu1 %v2350_v5  ;;  %v937_v5 = vld [vmem:[%s3319_s4 + $0x10] sm:$0xff] }
  0x63   : > { %2335 = vmatprep.subr.bf16.mxu0 %v2334_v46  ;;  %2355 = vmatprep.subr.bf16.mxu1 %v2354_v12 }
  0x66   : > { %2337 = vmatpush1.bf16.msra.mxu0 %v2336_v49  ;;  %2357 = vmatpush3.bf16.msra.mxu1 %v2354_v12  ;;  %v941_v12 = vld [vmem:[%s3319_s4 + $0x30] sm:$0xff] }
  0x67   : > { %2359 = vmatprep.subr.bf16.mxu1 %v2358_v19  ;;  %v2392_v14 = vpack.c.bf16 %v942_v13, %v941_v12 }
  0x69   : > { %645 = vmatmul.mubr.f32.vlgmr.msra.gmra.mrb[0].mxu0 %v2890_v26 }
  0x6a   : > { %650 = vmatprep.mubr.f32.mxu0 %v2717_v0  ;;  %2361 = vmatpush3.bf16.msra.mxu1 %v2358_v19 }
  0x6b   : > { %2363 = vmatprep.subr.bf16.mxu1 %v2362_v25 }
  0x6d   : > { %651 = vmatmul.mubr.f32.gmra.mrb[2].mxu0 %v2896_v50 }
  0x6e   : > { %2365 = vmatpush3.bf16.msra.mxu1 %v2362_v25 }
  0x6f   : > { %2367 = vmatprep.subr.bf16.mxu1 %v2366_v29 }
  0x72   : > { %2369 = vmatpush3.bf16.msra.mxu1 %v2366_v29 }
  0x75   : > { %2238 = vmatmul.mubr.f32.vlgmr.msra.gmra.mrb[0].mxu1 %v2896_v50 }
 0x13c   : > { %v646_v8 = vpop.f32.mrb[0].mxu0 }
 0x13d   : > { %v647_v9 = vadd.f32 %v646_v8, %v568_v3  ;;  %v648_v10 = vpop.f32.mrb[1].mxu0  ;;  %v2384_v8 = vpack.c.bf16 %v938_v7, %v937_v5 }
 0x13e   : > { %v649_v17 = vadd.f32 %v648_v10, %v572_v11  ;;  %v940_v10 = vld [vmem:[%s3319_s4 + $0x28] sm:$0xff] }
 0x13f   : > { %1032 = vrot.lane.b32.xlu1 %v647_v9, %s2718_s25  ;;  %2244 = vmatprep.mubr.msk.f32.mxu0 %vm733_vm0, %v647_v9  ;;  %v939_v9 = vld [vmem:[%s3319_s4 + $0x20] sm:$0xff] }
 0x140   : > { %v652_v15 = vpop.f32.mrb[2].mxu0 }
 0x141   : > { %v654_v16 = vpop.f32.mrb[3].mxu0  ;;  %v653_v30 = vadd.f32 %v652_v15, %v568_v3  ;;  %v936_v3 = vld [vmem:[%s3319_s4 + $0x8] sm:$0xff] }
 0x142   : > { %v655_v18 = vadd.f32 %v654_v16, %v572_v11  ;;  %v2380_v6 = vpack.c.bf16 %v936_v3, %v935_v2  ;;  %v2388_v11 = vpack.c.bf16 %v940_v10, %v939_v9  ;;  %v2057_v10 = vld [vmem:[%s3320_s5] ss:$0 sm:$0xff] }
 0x144   : > { %v2589_v23 = vpack.i.bf16 %v655_v18, %v649_v17  ;;  %v2370_v24 = vpack.c.bf16 %v655_v18, %v649_v17  ;;  %2381 = vmatprep.subr.bf16.mxu1 %v2380_v6 }
 0x145   : > { %2383 = vmatpush3.bf16.msra.mxu1 %v2380_v6 }
 0x146   : > { %2372 = vmatprep.subr.msk.bf16.mxu0 %vm2918_vm1, %v2370_v24  ;;  %2385 = vmatprep.subr.bf16.mxu1 %v2384_v8 }
 0x147   : > { %2375 = vmatpush3.bf16.xpose.msk.msra.mxu0 %vm2918_vm1, %v2370_v24 }
 0x148   : > { %v2239_v42 = vpop.f32.mrb[0].mxu1 }
 0x149   : > { %v723_v43 = vpop.f32.mrb[1].mxu1  ;;  %v2942_v44 = vadd.f32 %v2239_v42, %v576_v41  ;;  %2387 = vmatpush3.bf16.msra.mxu1 %v2384_v8 }
 0x14a   : > { %v2944_v45 = vadd.f32 %v723_v43, %v576_v41  ;;  %2389 = vmatprep.subr.bf16.mxu1 %v2388_v11 }
 0x14c   : > { %v2594_v46 = vpack.i.bf16 %v2942_v44, %v2944_v45  ;;  %v2376_v47 = vpack.c.bf16 %v2942_v44, %v2944_v45  ;;  %v1238_v45 = vld [vmem:[%s3319_s4 + $0x40] sm:$0xff] }
 0x14d   : > { %2391 = vmatpush3.bf16.msra.mxu1 %v2388_v11 }
 0x14e   : > { %2245 = vmatmul.mubr.msk.f32.vlgmr.msra.gmra.mrb[4].mxu0 %vm733_vm0, %v653_v30  ;;  %2377 = vmatprep.subr.bf16.mxu0 %v2376_v47 }
 0x14f   : > { %2379 = vmatpush3.bf16.msra.mxu0 %v2376_v47  ;;  %2393 = vmatprep.subr.bf16.mxu1 %v2392_v14 }
 0x151   : > { %2395 = vmatpush3.bf16.msra.mxu1 %v2392_v14 }
 0x1b1   : > { %v1033_v15 = vpop.permute.xlu1 %1032 }
 0x221   : > { %v2246_v31 = vpop.f32.mrb[4].mxu0 }
 0x222   : > { %v812_v32 = vpop.f32.mrb[5].mxu0  ;;  %v822_v34 = vmul.f32 0.125, %v2246_v31 }
 0x223   : > { %v821_v35 = vmul.f32 0.125, %v812_v32 }
 0x224   : > { %v830_v38 = vadd.f32 %v2932_v33, %v822_v34 }
 0x225   : > { %v829_v36 = vadd.f32 %v2932_v33, %v821_v35 }
 0x226   : > { %v835_v39 = vsel %vm831_vm2, %v830_v38, -inf }
 0x227   : > { %v832_v37 = vsel %vm831_vm2, %v829_v36, -inf }
 0x228   : > { %833 = vmax.xlane.f32.xlu0 %v832_v37 }
 0x22c   : > { %836 = vmax.xlane.f32.xlu0 %v835_v39 }
 0x242   : > { %2590 = vrot.lane.b32.xlu0 %v2589_v23, %s2718_s25 }
 0x2b5   : > { %v834_v48 = vpop.xlane.xlu0 %833 }
 0x2b6   : > { %v838_v49 = vsub.f32 %v829_v36, %v834_v48 }
 0x2b8   : > { %v840_v54 = vmul.f32 1.442695, %v838_v49 }
 0x2b9   : > { %v837_v51 = vpop.xlane.xlu0 %836 }
 0x2ba   : > { %v839_v53 = vsub.f32 %v830_v38, %v837_v51 }
 0x2bc   : > { %v842_v55 = vmul.f32 1.442695, %v839_v53  ;;  %v1240_v53 = vld [vmem:[%s3319_s4 + $0x50] sm:$0xff] }
 0x2bd   : > { %v2591_v56 = vpop.permute.xlu0 %2590 }
 0x2be   : > { %2599 = vpow2.f32 %v842_v55  ;;  %v2593_v57 = vunpack.i.h.bf16 %v2591_v56  ;;  %v2592_v58 = vunpack.i.l.bf16 %v2591_v56  ;;  %v1241_v55 = vld [vmem:[%s3319_s4 + $0x58] sm:$0xff] }
 0x2bf   : > { %2601 = vpow2.f32 %v840_v54  ;;  %v2410_v56 = vpack.c.bf16 %v1241_v55, %v1240_v53 }
 0x2c0   : > { %v2396_v59 = vpack.c.bf16 %v2593_v57, %v2592_v58  ;;  %v1242_v57 = vld [vmem:[%s3319_s4 + $0x60] sm:$0xff]  ;;  %v1243_v58 = vld [vmem:[%s3319_s4 + $0x68] sm:$0xff] }
 0x2c2   : > { %2398 = vmatprep.subr.msk.bf16.mxu0 %vm2918_vm1, %v2396_v59 }
 0x2c8   : > { %v2600_v60 = vpop.eup %2599 }
 0x2c9   : > { %v847_v62 = vsel %vm831_vm2, %v2600_v60, 0.0  ;;  %v2602_v63 = vpop.eup %2601 }
 0x2ca   : > { %848 = vadd.xlane.f32.xlu1 %v847_v62  ;;  %v844_v1 = vsel %vm831_vm2, %v2602_v63, 0.0  ;;  %v1245_v62 = vld [vmem:[%s3319_s4 + $0x78] sm:$0xff] }
 0x2ce   : > { %845 = vadd.xlane.f32.xlu1 %v844_v1 }
 0x2df   : > { %1034 = vrot.lane.b32.xlu1 %v653_v30, %s2718_s25 }
 0x357   : > { %v849_v16 = vpop.xlane.xlu1 %848 }
 0x358   : > { %2603 = vrcp.f32 %v849_v16 }
 0x35b   : > { %v846_v17 = vpop.xlane.xlu1 %845 }
 0x35c   : > { %2605 = vrcp.f32 %v846_v17  ;;  %v1373_v17 = vld [vmem:[%s3323_s8 + $0x8] sm:$0xff] }
 0x35f   : > { %v1035_v23 = vpop.permute.xlu1 %1034 }
 0x362   : > { %v2604_v18 = vpop.eup %2603 }
 0x363   : > { %v853_v22 = vmul.f32 %v2604_v18, %v2600_v60  ;;  %v1244_v60 = vld [vmem:[%s3319_s4 + $0x70] sm:$0xff]  ;;  %v1377_v18 = vld [vmem:[%s3323_s8 + $0x28] sm:$0xff] }
 0x366   : > { %v2606_v19 = vpop.eup %2605 }
 0x367   : > { %v852_v21 = vmul.f32 %v2606_v19, %v2602_v63  ;;  %v2418_v63 = vpack.c.bf16 %v1245_v62, %v1244_v60  ;;  %v1375_v19 = vld [vmem:[%s3323_s8 + $0x18] sm:$0xff] }
 0x369   : > { %2251 = vmatprep.mubr.msk.f32.mxu0 %vm831_vm2, %v852_v21  ;;  %v2422_v21 = vpack.c.bf16 %v1377_v18, %v1373_v17  ;;  %v1411_v18 = vld [vmem:[%s3323_s8 + $0x138] sm:$0xff] }
 0x36a   : > { %2252 = vmatmul.mubr.msk.f32.vlgmr.msra.gmra.mrb[6].mxu0 %vm831_vm2, %v853_v22  ;;  %v1376_v22 = vld [vmem:[%s3323_s8 + $0x20] sm:$0xff] }
 0x36b   : > { %2401 = vmatpush3.bf16.xpose.msk.msra.mxu0 %vm2918_vm1, %v2396_v59  ;;  %2277 = vmatprep.mubr.msk.f32.mxu0 %vm733_vm0, %v1033_v15  ;;  %v2414_v59 = vpack.c.bf16 %v1243_v58, %v1242_v57 }
 0x372   : > { %2278 = vmatmul.mubr.msk.f32.vlgmr.msra.gmra.mrb[8].mxu0 %vm733_vm0, %v1035_v23 }
 0x43d   : > { %v2253_v24 = vpop.f32.mrb[6].mxu0 }
 0x43e   : > { %v926_v25 = vpop.f32.mrb[7].mxu0 }
 0x43f   : > { %2270 = vmatprep.mubr.msk.f32.mxu1 %vm733_vm0, %v926_v25  ;;  %v1374_v25 = vld [vmem:[%s3323_s8 + $0x10] sm:$0xff] }
 0x440   : > { %2271 = vmatmul.mubr.msk.f32.vlgmr.msra.gmra.mrb[2].mxu1 %vm733_vm0, %v2253_v24 }
 0x445   : > { %v2279_v27 = vpop.f32.mrb[8].mxu0 }
 0x446   : > { %v1124_v28 = vmul.f32 0.125, %v2279_v27  ;;  %v1114_v29 = vpop.f32.mrb[9].mxu0  ;;  %v1378_v27 = vld [vmem:[%s3323_s8 + $0x30] sm:$0xff] }
 0x447   : > { %v1123_v30 = vmul.f32 0.125, %v1114_v29  ;;  %v2456_v29 = vpack.c.bf16 %v1378_v27, %v1374_v25  ;;  %v1413_v25 = vld [vmem:[%s3323_s8 + $0x148] sm:$0xff] }
 0x448   : > { %v1126_v31 = vadd.f32 %v2932_v33, %v1124_v28  ;;  %v1381_v28 = vld [vmem:[%s3323_s8 + $0x48] sm:$0xff] }
 0x449   : > { %v1125_v20 = vadd.f32 %v2932_v33, %v1123_v30  ;;  %v1385_v30 = vld [vmem:[%s3323_s8 + $0x68] sm:$0xff] }
 0x44a   : > { %v1130_v32 = vsel %vm831_vm2, %v1126_v31, -inf  ;;  %v1417_v27 = vld [vmem:[%s3323_s8 + $0x168] sm:$0xff] }
 0x44b   : > { %1131 = vmax.xlane.f32.xlu0 %v1130_v32  ;;  %v1127_v34 = vsel %vm831_vm2, %v1125_v20, -inf  ;;  %v2426_v32 = vpack.c.bf16 %v1385_v30, %v1381_v28  ;;  %v1415_v28 = vld [vmem:[%s3323_s8 + $0x158] sm:$0xff] }
 0x44c   : > { %1128 = vmax.xlane.f32.xlu1 %v1127_v34  ;;  %v1419_v30 = vld [vmem:[%s3323_s8 + $0x178] sm:$0xff] }
 0x45d   : > { %2595 = vrot.lane.b32.xlu1 %v2594_v46, %s2718_s25  ;;  %v1239_v46 = vld [vmem:[%s3319_s4 + $0x48] sm:$0xff] }
 0x45e   : > { %v2406_v54 = vpack.c.bf16 %v1239_v46, %v1238_v45  ;;  %v1390_v45 = vld [vmem:[%s3323_s8 + $0x90] sm:$0xff] }
 0x45f   : > { %v1394_v46 = vld [vmem:[%s3323_s8 + $0xb0] sm:$0xff] }
 0x460   : > { %2407 = vmatprep.subr.bf16.mxu1 %v2406_v54 }
 0x461   : > { %2409 = vmatpush3.bf16.msra.mxu1 %v2406_v54  ;;  %v2464_v54 = vpack.c.bf16 %v1394_v46, %v1390_v45  ;;  %v1429_v45 = vld [vmem:[%s3323_s8 + $0x1c8] sm:$0xff] }
 0x462   : > { %2411 = vmatprep.subr.bf16.mxu1 %v2410_v56  ;;  %v1433_v46 = vld [vmem:[%s3323_s8 + $0x1e8] sm:$0xff] }
 0x465   : > { %2413 = vmatpush3.bf16.msra.mxu1 %v2410_v56 }
 0x466   : > { %2415 = vmatprep.subr.bf16.mxu1 %v2414_v59 }
 0x469   : > { %2417 = vmatpush3.bf16.msra.mxu1 %v2414_v59 }
 0x46a   : > { %2419 = vmatprep.subr.bf16.mxu1 %v2418_v63 }
 0x46d   : > { %2421 = vmatpush3.bf16.msra.mxu1 %v2418_v63 }
 0x4d8   : > { %v1132_v35 = vpop.xlane.xlu0 %1131 }
 0x4d9   : > { %v1134_v36 = vsub.f32 %v1126_v31, %v1132_v35  ;;  %v1129_v37 = vpop.xlane.xlu1 %1128  ;;  %v1383_v31 = vld [vmem:[%s3323_s8 + $0x58] sm:$0xff]  ;;  %v1380_v35 = vld [vmem:[%s3323_s8 + $0x40] sm:$0xff] }
 0x4da   : > { %v1133_v38 = vsub.f32 %v1125_v20, %v1129_v37  ;;  %v1387_v20 = vld [vmem:[%s3323_s8 + $0x78] sm:$0xff]  ;;  %v1382_v37 = vld [vmem:[%s3323_s8 + $0x50] sm:$0xff] }
 0x4db   : > { %v1137_v39 = vmul.f32 1.442695, %v1134_v36  ;;  %v2458_v34 = vpack.c.bf16 %v1387_v20, %v1383_v31  ;;  %v1384_v36 = vld [vmem:[%s3323_s8 + $0x60] sm:$0xff] }
 0x4dc   : > { %v1135_v41 = vmul.f32 1.442695, %v1133_v38  ;;  %v2428_v38 = vpack.c.bf16 %v1384_v36, %v1380_v35  ;;  %v1412_v31 = vld [vmem:[%s3323_s8 + $0x140] sm:$0xff]  ;;  %v1414_v35 = vld [vmem:[%s3323_s8 + $0x150] sm:$0xff] }
 0x4dd   : > { %v2596_v42 = vpop.permute.xlu1 %2595  ;;  %v1416_v20 = vld [vmem:[%s3323_s8 + $0x160] sm:$0xff]  ;;  %v1418_v36 = vld [vmem:[%s3323_s8 + $0x170] sm:$0xff] }
 0x4de   : > { %2607 = vpow2.f32 %v1135_v41  ;;  %v2598_v33 = vunpack.i.h.bf16 %v2596_v42  ;;  %v2597_v43 = vunpack.i.l.bf16 %v2596_v42  ;;  %v1389_v41 = vld [vmem:[%s3323_s8 + $0x88] sm:$0xff] }
 0x4df   : > { %2609 = vpow2.f32 %v1137_v39  ;;  %v1386_v39 = vld [vmem:[%s3323_s8 + $0x70] sm:$0xff]  ;;  %v1393_v42 = vld [vmem:[%s3323_s8 + $0xa8] sm:$0xff] }
 0x4e0   : > { %v2402_v47 = vpack.c.bf16 %v2598_v33, %v2597_v43  ;;  %v2460_v33 = vpack.c.bf16 %v1386_v39, %v1382_v37  ;;  %v2430_v43 = vpack.c.bf16 %v1393_v42, %v1389_v41  ;;  %v1421_v37 = vld [vmem:[%s3323_s8 + $0x188] sm:$0xff]  ;;  %v1423_v41 = vld [vmem:[%s3323_s8 + $0x198] sm:$0xff] }
 0x4e1   : > { %v1425_v39 = vld [vmem:[%s3323_s8 + $0x1a8] sm:$0xff]  ;;  %v1427_v42 = vld [vmem:[%s3323_s8 + $0x1b8] sm:$0xff] }
 0x4e2   : > { %2403 = vmatprep.subr.bf16.mxu0 %v2402_v47 }
 0x4e3   : > { %2405 = vmatpush3.bf16.msra.mxu0 %v2402_v47  ;;  %v1391_v47 = vld [vmem:[%s3323_s8 + $0x98] sm:$0xff] }
 0x4e4   : > { %2423 = vmatprep.subr.bf16.mxu0 %v2422_v21  ;;  %v1408_v21 = vld [vmem:[%s3323_s8 + $0x120] sm:$0xff] }
 0x4e8   : > { %v2608_v48 = vpop.eup %2607 }
 0x4e9   : > { %v1139_v49 = vsel %vm831_vm2, %v2608_v48, 0.0  ;;  %v2610_v51 = vpop.eup %2609 }
 0x4ea   : > { %1140 = vadd.xlane.f32.xlu0 %v1139_v49  ;;  %v1142_v44 = vsel %vm831_vm2, %v2610_v51, 0.0  ;;  %v1388_v49 = vld [vmem:[%s3323_s8 + $0x80] sm:$0xff] }
 0x4ee   : > { %1143 = vadd.xlane.f32.xlu0 %v1142_v44  ;;  %v1392_v44 = vld [vmem:[%s3323_s8 + $0xa0] sm:$0xff] }
 0x4ef   : > { %v2432_v53 = vpack.c.bf16 %v1392_v44, %v1388_v49  ;;  %v1422_v49 = vld [vmem:[%s3323_s8 + $0x190] sm:$0xff] }
 0x4f0   : > { %v1426_v44 = vld [vmem:[%s3323_s8 + $0x1b0] sm:$0xff] }
 0x577   : > { %v1141_v1 = vpop.xlane.xlu0 %1140 }
 0x578   : > { %2611 = vrcp.f32 %v1141_v1  ;;  %v1397_v1 = vld [vmem:[%s3323_s8 + $0xc8] sm:$0xff] }
 0x57b   : > { %v1144_v2 = vpop.xlane.xlu0 %1143 }
 0x57c   : > { %2613 = vrcp.f32 %v1144_v2  ;;  %v1401_v2 = vld [vmem:[%s3323_s8 + $0xe8] sm:$0xff] }
 0x582   : > { %v2612_v3 = vpop.eup %2611 }
 0x583   : > { %v1147_v5 = vmul.f32 %v2612_v3, %v2608_v48  ;;  %v1395_v48 = vld [vmem:[%s3323_s8 + $0xb8] sm:$0xff] }
 0x584   : > { %v1399_v3 = vld [vmem:[%s3323_s8 + $0xd8] sm:$0xff] }
 0x585   : > { %2284 = vmatprep.mubr.msk.f32.mxu0 %vm831_vm2, %v1147_v5  ;;  %v2434_v5 = vpack.c.bf16 %v1401_v2, %v1397_v1  ;;  %v1434_v1 = vld [vmem:[%s3323_s8 + $0x1f0] sm:$0xff] }
 0x586   : > { %v2614_v6 = vpop.eup %2613 }
 0x587   : > { %v1148_v7 = vmul.f32 %v2614_v6, %v2610_v51  ;;  %v2462_v51 = vpack.c.bf16 %v1395_v48, %v1391_v47  ;;  %v1403_v6 = vld [vmem:[%s3323_s8 + $0xf8] sm:$0xff]  ;;  %v1420_v47 = vld [vmem:[%s3323_s8 + $0x180] sm:$0xff] }
 0x588   : > { %v1424_v48 = vld [vmem:[%s3323_s8 + $0x1a0] sm:$0xff] }
 0x589   : > { %2285 = vmatmul.mubr.msk.f32.vlgmr.msra.gmra.mrb[10].mxu0 %vm831_vm2, %v1148_v7  ;;  %v1396_v7 = vld [vmem:[%s3323_s8 + $0xc0] sm:$0xff] }
 0x58a   : > { %1522 = vmatprep.mubr.f32.mxu0 %v2717_v0 }
 0x65c   : > { %v2286_v8 = vpop.f32.mrb[10].mxu0 }
 0x65d   : > { %v1229_v9 = vpop.f32.mrb[11].mxu0 }
 0x65e   : > { %2303 = vmatprep.mubr.msk.f32.mxu1 %vm733_vm0, %v1229_v9  ;;  %v2466_v9 = vpack.c.bf16 %v1403_v6, %v1399_v3  ;;  %v1701_v6 = vld [vmem:[#allocation4 + $0x88] sm:$0xff] }
 0x65f   : > { %2304 = vmatmul.mubr.msk.f32.vlgmr.msra.gmra.mrb[2].mxu1 %vm733_vm0, %v2286_v8  ;;  %v1400_v8 = vld [vmem:[%s3323_s8 + $0xe0] sm:$0xff] }
 0x660   : > { %1599 = vmatprep.mubr.f32.mxu1 %v2717_v0 }
 0x732   : > { %v2305_v11 = vpop.f32.mrb[2].mxu1 }
 0x733   : > { %v1318_v12 = vpop.f32.mrb[3].mxu1  ;;  %v2550_v14 = vadd.f32 %v2305_v11, %v2057_v10  ;;  %v1398_v11 = vld [vmem:[%s3323_s8 + $0xd0] sm:$0xff] }
 0x734   : > { %v2551_v13 = vadd.f32 %v2057_v10, %v1318_v12  ;;  %v2436_v10 = vpack.c.bf16 %v1400_v8, %v1396_v7  ;;  %v1402_v12 = vld [vmem:[%s3323_s8 + $0xf0] sm:$0xff]  ;;  %v1732_v7 = vld [vmem:[#allocation4 + $0x180] sm:$0xff] }
 0x735   : > { %v1330_v16 = vadd.f32 %v2550_v14, %v2896_v50  ;;  %v1372_v50 = vld [vmem:[%s3323_s8] sm:$0xff]  ;;  %v1405_v14 = vld [vmem:[%s3323_s8 + $0x108] sm:$0xff] }
 0x736   : > { %v1329_v15 = vadd.f32 %v2551_v13, %v2890_v26  ;;  %v1379_v26 = vld [vmem:[%s3323_s8 + $0x38] sm:$0xff]  ;;  %v2424_v24 = vpack.c.bf16 %v1376_v22, %v1372_v50  ;;  %v2468_v13 = vpack.c.bf16 %v1402_v12, %v1398_v11  ;;  %v1406_v22 = vld [vmem:[%s3323_s8 + $0x110] sm:$0xff] }
 0x737   : > { %v2454_v23 = vpack.c.bf16 %v1379_v26, %v1375_v19  ;;  %v1404_v19 = vld [vmem:[%s3323_s8 + $0x100] sm:$0xff] }
 0x738   : > { %1331 = vadd.xlane.f32.xlu0 %v1329_v15  ;;  %2425 = vmatpush1.bf16.msra.mxu0 %v2424_v24  ;;  %v2440_v50 = vpack.c.bf16 %v1408_v21, %v1404_v19  ;;  %v2067_v21 = vld [vmem:[%s3322_s7] ss:$0 sm:$0xff] }
 0x739   : > { %2455 = vmatprep.subr.bf16.mxu1 %v2454_v23  ;;  %2427 = vmatprep.subr.bf16.mxu0 %v2426_v32  ;;  %v1410_v23 = vld [vmem:[%s3323_s8 + $0x130] sm:$0xff]  ;;  %v2474_v32 = vpack.c.bf16 %v1419_v30, %v1415_v28 }
 0x73a   : > { %2457 = vmatpush1.bf16.msra.mxu1 %v2456_v29  ;;  %v2472_v24 = vpack.c.bf16 %v1410_v23, %v1406_v22  ;;  %v2442_v29 = vpack.c.bf16 %v1417_v27, %v1413_v25  ;;  %v1716_v22 = vld [vmem:[#allocation4 + $0x100] sm:$0xff]  ;;  %v1717_v23 = vld [vmem:[#allocation4 + $0x108] sm:$0xff] }
 0x73b   : > { %2459 = vmatprep.subr.bf16.mxu1 %v2458_v34  ;;  %v2444_v34 = vpack.c.bf16 %v1416_v20, %v1412_v31  ;;  %v2520_v30 = vpack.c.bf16 %v1717_v23, %v1716_v22  ;;  %v1703_v20 = vld [vmem:[#allocation4 + $0x98] sm:$0xff]  ;;  %v1742_v22 = vld [vmem:[#allocation4 + $0x1d0] sm:$0xff] }
 0x73c   : > { %1333 = vadd.xlane.f32.xlu0 %v1330_v16  ;;  %2429 = vmatpush1.bf16.msra.mxu0 %v2428_v38  ;;  %v2476_v38 = vpack.c.bf16 %v1418_v36, %v1414_v35  ;;  %v1735_v35 = vld [vmem:[#allocation4 + $0x198] sm:$0xff]  ;;  %v1686_v36 = vld [vmem:[#allocation4 + $0x10] sm:$0xff] }
 0x73d   : > { %2431 = vmatprep.subr.bf16.mxu0 %v2430_v43  ;;  %v2478_v43 = vpack.c.bf16 %v1427_v42, %v1423_v41  ;;  %v1718_v41 = vld [vmem:[#allocation4 + $0x110] sm:$0xff]  ;;  %v1719_v42 = vld [vmem:[#allocation4 + $0x118] sm:$0xff] }
 0x73e   : > { %2461 = vmatpush1.bf16.msra.mxu1 %v2460_v33  ;;  %v2446_v33 = vpack.c.bf16 %v1425_v39, %v1421_v37  ;;  %v1687_v37 = vld [vmem:[#allocation4 + $0x18] sm:$0xff] }
 0x73f   : > { %2463 = vmatprep.subr.bf16.mxu1 %v2462_v51  ;;  %v2448_v51 = vpack.c.bf16 %v1424_v48, %v1420_v47  ;;  %v2492_v39 = vpack.c.bf16 %v1687_v37, %v1686_v36  ;;  %v1736_v47 = vld [vmem:[#allocation4 + $0x1a0] sm:$0xff]  ;;  %v1743_v23 = vld [vmem:[#allocation4 + $0x1d8] sm:$0xff]  ;;  %v1745_v37 = vld [vmem:[#allocation4 + $0x1e8] sm:$0xff] }
 0x740   : > { %2433 = vmatpush1.bf16.msra.mxu0 %v2432_v53  ;;  %v2480_v53 = vpack.c.bf16 %v1426_v44, %v1422_v49  ;;  %v1737_v49 = vld [vmem:[#allocation4 + $0x1a8] sm:$0xff]  ;;  %v1744_v36 = vld [vmem:[#allocation4 + $0x1e0] sm:$0xff] }
 0x741   : > { %2435 = vmatprep.subr.bf16.mxu0 %v2434_v5  ;;  %v1700_v5 = vld [vmem:[#allocation4 + $0x80] sm:$0xff]  ;;  %v1689_v44 = vld [vmem:[#allocation4 + $0x28] sm:$0xff] }
 0x742   : > { %2465 = vmatpush1.bf16.msra.mxu1 %v2464_v54  ;;  %v2450_v54 = vpack.c.bf16 %v1433_v46, %v1429_v45  ;;  %v2486_v8 = vpack.c.bf16 %v1701_v6, %v1700_v5  ;;  %v2526_v45 = vpack.c.bf16 %v1737_v49, %v1736_v47  ;;  %v1722_v6 = vld [vmem:[#allocation4 + $0x130] sm:$0xff]  ;;  %v1715_v47 = vld [vmem:[#allocation4 + $0xf8] sm:$0xff] }
 0x743   : > { %2467 = vmatprep.subr.bf16.mxu1 %v2466_v9  ;;  %v1733_v9 = vld [vmem:[#allocation4 + $0x188] sm:$0xff] }
 0x744   : > { %2437 = vmatpush1.bf16.msra.mxu0 %v2436_v10  ;;  %v2518_v10 = vpack.c.bf16 %v1733_v9, %v1732_v7  ;;  %v1723_v7 = vld [vmem:[#allocation4 + $0x138] sm:$0xff]  ;;  %v1708_v9 = vld [vmem:[#allocation4 + $0xc0] sm:$0xff] }
 0x746   : > { %2469 = vmatpush1.bf16.msra.mxu1 %v2468_v13 }
 0x7c5   : > { %v1332_v55 = vpop.xlane.xlu0 %1331 }
 0x7c6   : > { %v1336_v56 = vmul.f32 0.0078125, %v1332_v55  ;;  %v1431_v55 = vld [vmem:[%s3323_s8 + $0x1d8] sm:$0xff] }
 0x7c8   : > { %v3105_v57 = vsub.f32 %v1329_v15, %v1336_v56  ;;  %v1409_v15 = vld [vmem:[%s3323_s8 + $0x128] sm:$0xff]  ;;  %v1435_v56 = vld [vmem:[%s3323_s8 + $0x1f8] sm:$0xff] }
 0x7c9   : > { %v1334_v58 = vpop.xlane.xlu0 %1333  ;;  %v2438_v17 = vpack.c.bf16 %v1409_v15, %v1405_v14 }
 0x7ca   : > { %v1337_v59 = vmul.f32 0.0078125, %v1334_v58  ;;  %v1340_v60 = vmul.f32 %v3105_v57, %v3105_v57  ;;  %v1428_v58 = vld [vmem:[%s3323_s8 + $0x1c0] sm:$0xff] }
 0x7cb   : > { %2439 = vmatprep.subr.bf16.mxu0 %v2438_v17 }
 0x7cc   : > { %v3109_v62 = vsub.f32 %v1330_v16, %v1337_v59  ;;  %1342 = vadd.xlane.f32.xlu0 %v1340_v60  ;;  %v1407_v16 = vld [vmem:[%s3323_s8 + $0x118] sm:$0xff]  ;;  %2441 = vmatpush1.bf16.msra.mxu0 %v2440_v50  ;;  %v2482_v59 = vpack.c.bf16 %v1435_v56, %v1431_v55  ;;  %v1432_v60 = vld [vmem:[%s3323_s8 + $0x1e0] sm:$0xff]  ;;  %v1685_v50 = vld [vmem:[#allocation4 + $0x8] sm:$0xff] }
 0x7cd   : > { %v2470_v26 = vpack.c.bf16 %v1411_v18, %v1407_v16  ;;  %2443 = vmatprep.subr.bf16.mxu0 %v2442_v29  ;;  %v2452_v2 = vpack.c.bf16 %v1432_v60, %v1428_v58  ;;  %v2066_v18 = vld [vmem:[%s3321_s6] ss:$0 sm:$0xff]  ;;  %v1706_v56 = vld [vmem:[#allocation4 + $0xb0] sm:$0xff]  ;;  %v1707_v58 = vld [vmem:[#allocation4 + $0xb8] sm:$0xff] }
 0x7ce   : > { %v1341_v63 = vmul.f32 %v3109_v62, %v3109_v62  ;;  %v2498_v60 = vpack.c.bf16 %v1707_v58, %v1706_v56 }
 0x7cf   : > { %2471 = vmatprep.subr.bf16.mxu1 %v2470_v26  ;;  %v1684_v26 = vld [vmem:[#allocation4] sm:$0xff] }
 0x7d0   : > { %1344 = vadd.xlane.f32.xlu0 %v1341_v63  ;;  %2473 = vmatpush1.bf16.msra.mxu1 %v2472_v24  ;;  %v1430_v63 = vld [vmem:[%s3323_s8 + $0x1d0] sm:$0xff]  ;;  %v2488_v29 = vpack.c.bf16 %v1685_v50, %v1684_v26  ;;  %v1711_v50 = vld [vmem:[#allocation4 + $0xd8] sm:$0xff] }
 0x7d1   : > { %2475 = vmatprep.subr.bf16.mxu1 %v2474_v32  ;;  %2445 = vmatpush1.bf16.msra.mxu0 %v2444_v34  ;;  %v2484_v3 = vpack.c.bf16 %v1434_v1, %v1430_v63  ;;  %v1734_v32 = vld [vmem:[#allocation4 + $0x190] sm:$0xff]  ;;  %v1739_v63 = vld [vmem:[#allocation4 + $0x1b8] sm:$0xff] }
 0x7d2   : > { %2447 = vmatprep.subr.bf16.mxu0 %v2446_v33  ;;  %v1704_v33 = vld [vmem:[#allocation4 + $0xa0] sm:$0xff]  ;;  %v1690_v1 = vld [vmem:[#allocation4 + $0x30] sm:$0xff] }
 0x7d4   : > { %2477 = vmatpush1.bf16.msra.mxu1 %v2476_v38  ;;  %v2522_v38 = vpack.c.bf16 %v1735_v35, %v1734_v32  ;;  %v1713_v32 = vld [vmem:[#allocation4 + $0xe8] sm:$0xff] }
 0x7d5   : > { %2479 = vmatprep.subr.bf16.mxu1 %v2478_v43  ;;  %2449 = vmatpush1.bf16.msra.mxu0 %v2448_v51  ;;  %v1705_v43 = vld [vmem:[#allocation4 + $0xa8] sm:$0xff]  ;;  %v1688_v51 = vld [vmem:[#allocation4 + $0x20] sm:$0xff] }
 0x7d6   : > { %2451 = vmatprep.subr.bf16.mxu0 %v2450_v54  ;;  %v2494_v48 = vpack.c.bf16 %v1705_v43, %v1704_v33  ;;  %v2496_v46 = vpack.c.bf16 %v1689_v44, %v1688_v51  ;;  %v1721_v54 = vld [vmem:[#allocation4 + $0x128] sm:$0xff]  ;;  %v1714_v43 = vld [vmem:[#allocation4 + $0xf0] sm:$0xff]  ;;  %v1747_v44 = vld [vmem:[#allocation4 + $0x1f8] sm:$0xff] }
 0x7d7   : > { %v2514_v51 = vpack.c.bf16 %v1715_v47, %v1714_v43 }
 0x7d8   : > { %2481 = vmatpush1.bf16.msra.mxu1 %v2480_v53  ;;  %v1720_v53 = vld [vmem:[#allocation4 + $0x120] sm:$0xff] }
 0x7d9   : > { %2483 = vmatprep.subr.bf16.mxu1 %v2482_v59  ;;  %2453 = vmatpush1.bf16.msra.mxu0 %v2452_v2  ;;  %v2528_v55 = vpack.c.bf16 %v1721_v54, %v1720_v53  ;;  %v1738_v59 = vld [vmem:[#allocation4 + $0x1b0] sm:$0xff]  ;;  %v1691_v2 = vld [vmem:[#allocation4 + $0x38] sm:$0xff] }
 0x7da   : > { %2487 = vmatprep.subr.bf16.mxu0 %v2486_v8  ;;  %v2500_v5 = vpack.c.bf16 %v1691_v2, %v1690_v1  ;;  %v2532_v8 = vpack.c.bf16 %v1723_v7, %v1722_v6  ;;  %v1730_v54 = vld [vmem:[#allocation4 + $0x170] sm:$0xff] }
 0x7dc   : > { %2485 = vmatpush1.bf16.msra.mxu1 %v2484_v3  ;;  %v2530_v3 = vpack.c.bf16 %v1739_v63, %v1738_v59  ;;  %v1436_v59 = vld [vmem:[%s3324_s9] sm:$0xf] }
 0x7dd   : > { %2519 = vmatprep.subr.bf16.mxu1 %v2518_v10  ;;  %v1709_v10 = vld [vmem:[#allocation4 + $0xc8] sm:$0xff]  ;;  %v1441_v63 = vrot.slane %v1436_v59, %v567_v61  ;;  %v1449_v1 = vrot.slane %v1436_v59, %v575_v40  ;;  %v1445_v2 = vrot.slane %v1436_v59, %v571_v4 }
 0x859   : > { %v1343_v11 = vpop.xlane.xlu0 %1342 }
 0x85a   : > { %v1346_v12 = vmul.f32 0.0078125, %v1343_v11  ;;  %v1740_v11 = vld [vmem:[#allocation4 + $0x1c0] sm:$0xff] }
 0x85c   : > { %v1348_v13 = vadd.f32 1e-12, %v1346_v12  ;;  %v2502_v12 = vpack.c.bf16 %v1709_v10, %v1708_v9 }
 0x85d   : > { %v1345_v14 = vpop.xlane.xlu0 %1344 }
 0x85e   : > { %2615 = vrsqrt.f32 %v1348_v13  ;;  %v1347_v15 = vmul.f32 0.0078125, %v1345_v14  ;;  %v1741_v13 = vld [vmem:[#allocation4 + $0x1c8] sm:$0xff]  ;;  %v1692_v14 = vld [vmem:[#allocation4 + $0x40] sm:$0xff] }
 0x860   : > { %v1349_v16 = vadd.f32 1e-12, %v1347_v15  ;;  %v1693_v15 = vld [vmem:[#allocation4 + $0x48] sm:$0xff] }
 0x862   : > { %2617 = vrsqrt.f32 %v1349_v16  ;;  %v2534_v16 = vpack.c.bf16 %v1741_v13, %v1740_v11 }
 0x868   : > { %v2616_v17 = vpop.eup %2615 }
 0x869   : > { %v1352_v19 = vmul.f32 %v2616_v17, %v3105_v57  ;;  %v2504_v17 = vpack.c.bf16 %v1693_v15, %v1692_v14 }
 0x86b   : > { %v1361_v24 = vmul.f32 %v2066_v18, %v1352_v19  ;;  %v1725_v19 = vld [vmem:[#allocation4 + $0x148] sm:$0xff] }
 0x86c   : > { %v2618_v25 = vpop.eup %2617 }
 0x86d   : > { %v3240_v27 = vadd.f32 %v2067_v21, %v1361_v24  ;;  %v1353_v28 = vmul.f32 %v2618_v25, %v3109_v62  ;;  %v1702_v62 = vld [vmem:[#allocation4 + $0x90] sm:$0xff]  ;;  %v2538_v25 = vpack.c.bf16 %v1743_v23, %v1742_v22 }
 0x86e   : > { %v2490_v34 = vpack.c.bf16 %v1703_v20, %v1702_v62  ;;  %v1727_v62 = vld [vmem:[#allocation4 + $0x158] sm:$0xff]  ;;  %v1712_v20 = vld [vmem:[#allocation4 + $0xe0] sm:$0xff] }
 0x86f   : > { %1523 = vmatmul.mubr.f32.vlgmr.msra.gmra.mrb[12].mxu0 %v3240_v27  ;;  %1600 = vmatmul.mubr.f32.vlgmr.msra.gmra.mrb[4].mxu1 %v3240_v27  ;;  %v1362_v57 = vmul.f32 %v2066_v18, %v1353_v28  ;;  %v1724_v18 = vld [vmem:[#allocation4 + $0x140] sm:$0xff]  ;;  %v1694_v28 = vld [vmem:[#allocation4 + $0x50] sm:$0xff]  ;;  %v2510_v35 = vpack.c.bf16 %v1713_v32, %v1712_v20 }
 0x870   : > { %1528 = vmatprep.mubr.f32.mxu0 %v2717_v0  ;;  %1605 = vmatprep.mubr.f32.mxu1 %v2717_v0  ;;  %v2524_v0 = vpack.c.bf16 %v1719_v42, %v1718_v41  ;;  %v2536_v26 = vpack.c.bf16 %v1725_v19, %v1724_v18  ;;  %v1697_v41 = vld [vmem:[#allocation4 + $0x68] sm:$0xff]  ;;  %v1728_v42 = vld [vmem:[#allocation4 + $0x160] sm:$0xff] }
 0x871   : > { %v3247_v31 = vadd.f32 %v2067_v21, %v1362_v57  ;;  %2489 = vmatpush3.bf16.msra.mxu0 %v2488_v29  ;;  %2521 = vmatpush3.bf16.msra.mxu1 %v2520_v30  ;;  %v1710_v21 = vld [vmem:[#allocation4 + $0xd0] sm:$0xff]  ;;  %v1695_v29 = vld [vmem:[#allocation4 + $0x58] sm:$0xff] }
 0x872   : > { %2491 = vmatprep.subr.bf16.mxu0 %v2490_v34  ;;  %2523 = vmatprep.subr.bf16.mxu1 %v2522_v38  ;;  %v2506_v24 = vpack.c.bf16 %v1711_v50, %v1710_v21  ;;  %v1726_v30 = vld [vmem:[#allocation4 + $0x150] sm:$0xff]  ;;  %v2508_v57 = vpack.c.bf16 %v1695_v29, %v1694_v28  ;;  %v1696_v38 = vld [vmem:[#allocation4 + $0x60] sm:$0xff] }
 0x873   : > { %1529 = vmatmul.mubr.f32.gmra.mrb[14].mxu0 %v3247_v31  ;;  %1606 = vmatmul.mubr.f32.gmra.mrb[6].mxu1 %v3247_v31  ;;  %v2540_v34 = vpack.c.bf16 %v1727_v62, %v1726_v30  ;;  %v2512_v33 = vpack.c.bf16 %v1697_v41, %v1696_v38 }
 0x875   : > { %2493 = vmatpush3.bf16.msra.mxu0 %v2492_v39  ;;  %2525 = vmatpush3.bf16.msra.mxu1 %v2524_v0  ;;  %v2542_v39 = vpack.c.bf16 %v1745_v37, %v1744_v36  ;;  %v1729_v0 = vld [vmem:[#allocation4 + $0x168] sm:$0xff] }
 0x876   : > { %2495 = vmatprep.subr.bf16.mxu0 %v2494_v48  ;;  %2527 = vmatprep.subr.bf16.mxu1 %v2526_v45  ;;  %v1746_v48 = vld [vmem:[#allocation4 + $0x1f0] sm:$0xff]  ;;  %v2544_v49 = vpack.c.bf16 %v1729_v0, %v1728_v42 }
 0x877   : > { %v1698_v45 = vld [vmem:[#allocation4 + $0x70] sm:$0xff]  ;;  %v2546_v53 = vpack.c.bf16 %v1747_v44, %v1746_v48 }
 0x879   : > { %2497 = vmatpush3.bf16.msra.mxu0 %v2496_v46  ;;  %2529 = vmatpush3.bf16.msra.mxu1 %v2528_v55  ;;  %v1699_v46 = vld [vmem:[#allocation4 + $0x78] sm:$0xff] }
 0x87a   : > { %2499 = vmatprep.subr.bf16.mxu0 %v2498_v60  ;;  %2531 = vmatprep.subr.bf16.mxu1 %v2530_v3  ;;  %v1731_v55 = vld [vmem:[#allocation4 + $0x178] sm:$0xff]  ;;  %v2516_v56 = vpack.c.bf16 %v1699_v46, %v1698_v45  ;;  %v1452_v60 = vsub.s32 3, %v2899_v52 }
 0x87b   : > { %v2548_v58 = vpack.c.bf16 %v1731_v55, %v1730_v54 }
 0x87c   : > { %v1453_v3 = vrot.slane %v1436_v59, %v1452_v60 }
 0x87d   : > { %2501 = vmatpush3.bf16.msra.mxu0 %v2500_v5  ;;  %2533 = vmatpush3.bf16.msra.mxu1 %v2532_v8 }
 0x87e   : > { %2503 = vmatprep.subr.bf16.mxu0 %v2502_v12  ;;  %2535 = vmatprep.subr.bf16.mxu1 %v2534_v16 }
 0x881   : > { %2505 = vmatpush3.bf16.msra.mxu0 %v2504_v17  ;;  %2537 = vmatpush3.bf16.msra.mxu1 %v2536_v26 }
 0x882   : > { %2507 = vmatprep.subr.bf16.mxu0 %v2506_v24  ;;  %2539 = vmatprep.subr.bf16.mxu1 %v2538_v25 }
 0x885   : > { %2509 = vmatpush3.bf16.msra.mxu0 %v2508_v57  ;;  %2541 = vmatpush3.bf16.msra.mxu1 %v2540_v34 }
 0x886   : > { %2511 = vmatprep.subr.bf16.mxu0 %v2510_v35  ;;  %2543 = vmatprep.subr.bf16.mxu1 %v2542_v39 }
 0x889   : > { %2513 = vmatpush3.bf16.msra.mxu0 %v2512_v33  ;;  %2545 = vmatpush3.bf16.msra.mxu1 %v2544_v49 }
 0x88a   : > { %2515 = vmatprep.subr.bf16.mxu0 %v2514_v51  ;;  %2547 = vmatprep.subr.bf16.mxu1 %v2546_v53 }
 0x88d   : > { %2517 = vmatpush3.bf16.msra.mxu0 %v2516_v56  ;;  %2549 = vmatpush3.bf16.msra.mxu1 %v2548_v58 }
 0x942   : > { %v1524_v5 = vpop.f32.mrb[12].mxu0  ;;  %v1601_v6 = vpop.f32.mrb[4].mxu1 }
 0x943   : > { %v3261_v7 = vadd.f32 %v1524_v5, %v1441_v63  ;;  %v3263_v8 = vadd.f32 %v1601_v6, %v1449_v1  ;;  %v1526_v9 = vpop.f32.mrb[13].mxu0  ;;  %v1603_v10 = vpop.f32.mrb[5].mxu1 }
 0x944   : > { %v1527_v11 = vadd.f32 %v1526_v9, %v1445_v2  ;;  %v3265_v12 = vadd.f32 %v1603_v10, %v1453_v3 }
 0x945   : > { %v1620_v61 = vmul.f32 0.044715, %v3261_v7  ;;  %v1622_v13 = vmul.f32 0.044715, %v3263_v8  ;;  %v1612_v6 = vmul.f32 0.5, %v3261_v7 }
 0x946   : > { %v1621_v40 = vmul.f32 0.044715, %v1527_v11  ;;  %v1623_v52 = vmul.f32 0.044715, %v3265_v12  ;;  %v1530_v4 = vpop.f32.mrb[14].mxu0  ;;  %v1607_v14 = vpop.f32.mrb[6].mxu1 }
 0x947   : > { %v1628_v15 = vmul.f32 %v1620_v61, %v3261_v7  ;;  %v1630_v16 = vmul.f32 %v1622_v13, %v3263_v8  ;;  %v3272_v17 = vadd.f32 %v1530_v4, %v1441_v63  ;;  %v3274_v18 = vadd.f32 %v1607_v14, %v1449_v1  ;;  %v1532_v19 = vpop.f32.mrb[15].mxu0  ;;  %v1609_v21 = vpop.f32.mrb[7].mxu1 }
 0x948   : > { %v1629_v26 = vmul.f32 %v1621_v40, %v1527_v11  ;;  %v1631_v50 = vmul.f32 %v1623_v52, %v3265_v12  ;;  %v1533_v22 = vadd.f32 %v1532_v19, %v1445_v2  ;;  %v1610_v23 = vadd.f32 %v1609_v21, %v1453_v3 }
 0x949   : > { %v1636_v24 = vmul.f32 %v1628_v15, %v3261_v7  ;;  %v1638_v25 = vmul.f32 %v1630_v16, %v3263_v8  ;;  %v1624_v28 = vmul.f32 0.044715, %v3272_v17  ;;  %v1626_v29 = vmul.f32 0.044715, %v3274_v18 }
 0x94a   : > { %v1625_v30 = vmul.f32 0.044715, %v1533_v22  ;;  %v1627_v57 = vmul.f32 0.044715, %v1610_v23  ;;  %v1637_v62 = vmul.f32 %v1629_v26, %v1527_v11  ;;  %v1639_v42 = vmul.f32 %v1631_v50, %v3265_v12 }
 0x94b   : > { %v1644_v20 = vadd.f32 %v1636_v24, %v3261_v7  ;;  %v1646_v32 = vadd.f32 %v1638_v25, %v3263_v8  ;;  %v1632_v34 = vmul.f32 %v1624_v28, %v3272_v17  ;;  %v1634_v41 = vmul.f32 %v1626_v29, %v3274_v18 }
 0x94c   : > { %v1633_v35 = vmul.f32 %v1625_v30, %v1533_v22  ;;  %v1635_v36 = vmul.f32 %v1627_v57, %v1610_v23  ;;  %v1645_v37 = vadd.f32 %v1637_v62, %v1527_v11  ;;  %v1647_v47 = vadd.f32 %v1639_v42, %v3265_v12  ;;  %v2068_v57 = vld [vmem:[%s3326_s11] ss:$0 sm:$0xff] }
 0x94d   : > { %v1652_v38 = vmul.f32 0.7978846, %v1644_v20  ;;  %v1654_v39 = vmul.f32 0.7978846, %v1646_v32  ;;  %v1640_v48 = vmul.f32 %v1632_v34, %v3272_v17  ;;  %v1642_v46 = vmul.f32 %v1634_v41, %v3274_v18 }
 0x94e   : > { %v1653_v0 = vmul.f32 0.7978846, %v1645_v37  ;;  %v1641_v33 = vmul.f32 %v1633_v35, %v1533_v22  ;;  %v1643_v43 = vmul.f32 %v1635_v36, %v1610_v23  ;;  %v1655_v44 = vmul.f32 0.7978846, %v1647_v47 }
 0x94f   : > { %2619 = vtanh.f32 %v1652_v38  ;;  %v1648_v45 = vadd.f32 %v1640_v48, %v3272_v17  ;;  %v1650_v56 = vadd.f32 %v1642_v46, %v3274_v18  ;;  %v1613_v2 = vmul.f32 0.5, %v1527_v11 }
 0x950   : > { %2621 = vtanh.f32 %v1654_v39  ;;  %v1649_v49 = vadd.f32 %v1641_v33, %v1533_v22  ;;  %v1651_v51 = vadd.f32 %v1643_v43, %v1610_v23  ;;  %v1615_v13 = vmul.f32 0.5, %v3265_v12 }
 0x951   : > { %2623 = vtanh.f32 %v1653_v0  ;;  %v1656_v55 = vmul.f32 0.7978846, %v1648_v45  ;;  %v1658_v58 = vmul.f32 0.7978846, %v1650_v56  ;;  %v1614_v4 = vmul.f32 0.5, %v3263_v8 }
 0x952   : > { %v1657_v53 = vmul.f32 0.7978846, %v1649_v49  ;;  %v1659_v54 = vmul.f32 0.7978846, %v1651_v51  ;;  %2625 = vtanh.f32 %v1655_v44  ;;  %v1617_v15 = vmul.f32 0.5, %v1533_v22 }
 0x953   : > { %v1619_v11 = vmul.f32 0.5, %v1610_v23  ;;  %v1616_v25 = vmul.f32 0.5, %v3272_v17  ;;  %v1618_v22 = vmul.f32 0.5, %v3274_v18 }
 0x954   : > { %2627 = vtanh.f32 %v1657_v53 }
 0x955   : > { %2629 = vtanh.f32 %v1659_v54 }
 0x956   : > { %2631 = vtanh.f32 %v1656_v55 }
 0x957   : > { %2633 = vtanh.f32 %v1658_v58 }
 0x959   : > { %v2620_v59 = vpop.eup %2619 }
 0x95a   : > { %v2622_v60 = vpop.eup %2621  ;;  %v1668_v1 = vadd.f32 1.0, %v2620_v59 }
 0x95b   : > { %v2624_v63 = vpop.eup %2623  ;;  %v1670_v9 = vadd.f32 1.0, %v2622_v60 }
 0x95c   : > { %v1669_v3 = vadd.f32 1.0, %v2624_v63  ;;  %v2626_v5 = vpop.eup %2625  ;;  %v1676_v14 = vmul.f32 %v1668_v1, %v1612_v6  ;;  %v2069_v63 = vld [vmem:[%s3327_s12] ss:$0 sm:$0xff] }
 0x95d   : > { %v1671_v40 = vadd.f32 1.0, %v2626_v5  ;;  %v1678_v7 = vmul.f32 %v1670_v9, %v1614_v4 }
 0x95e   : > { %v2628_v10 = vpop.eup %2627  ;;  %v1677_v61 = vmul.f32 %v1669_v3, %v1613_v2  ;;  %v2070_v2 = vld [vmem:[%s3328_s13] ss:$0 sm:$0xff] }
 0x95f   : > { %v2630_v52 = vpop.eup %2629  ;;  %v1673_v16 = vadd.f32 1.0, %v2628_v10  ;;  %v1679_v21 = vmul.f32 %v1671_v40, %v1615_v13 }
 0x960   : > { %v2632_v19 = vpop.eup %2631  ;;  %1819 = vmatprep.mubr.f32.mxu0 %v1677_v61  ;;  %v1675_v26 = vadd.f32 1.0, %v2630_v52 }
 0x961   : > { %v2634_v50 = vpop.eup %2633  ;;  %1820 = vmatmul.mubr.f32.vlgmr.msra.gmra.mrb[16].mxu0 %v1676_v14  ;;  %v1681_v24 = vmul.f32 %v1673_v16, %v1617_v15  ;;  %v1672_v28 = vadd.f32 1.0, %v2632_v19  ;;  %1894 = vmatprep.mubr.f32.mxu1 %v1679_v21 }
 0x962   : > { %v1683_v12 = vmul.f32 %v1675_v26, %v1619_v11  ;;  %v1674_v29 = vadd.f32 1.0, %v2634_v50  ;;  %1895 = vmatmul.mubr.f32.vlgmr.msra.gmra.mrb[8].mxu1 %v1678_v7 }
 0x963   : > { %1824 = vmatprep.mubr.f32.mxu0 %v1681_v24  ;;  %v1680_v8 = vmul.f32 %v1672_v28, %v1616_v25 }
 0x964   : > { %1899 = vmatprep.mubr.f32.mxu1 %v1683_v12  ;;  %v1682_v30 = vmul.f32 %v1674_v29, %v1618_v22 }
 0x965   : > { %1825 = vmatmul.mubr.f32.gmra.mrb[18].mxu0 %v1680_v8 }
 0x966   : > { %1900 = vmatmul.mubr.f32.gmra.mrb[10].mxu1 %v1682_v30 }
 0xa34   : > { %v2161_v23 = vpop.f32.mrb[16].mxu0 }
 0xa35   : > { %v2162_v62 = vpop.f32.mrb[17].mxu0  ;;  %v2199_v17 = vpop.f32.mrb[8].mxu1 }
 0xa36   : > { %v2163_v20 = vadd.f32 %v2162_v62, %v2161_v23  ;;  %v2200_v32 = vpop.f32.mrb[9].mxu1 }
 0xa37   : > { %v2201_v35 = vadd.f32 %v2200_v32, %v2199_v17 }
 0xa38   : > { %v1822_v34 = vadd.f32 %v2163_v20, %v2068_v57  ;;  %v2164_v36 = vpop.f32.mrb[18].mxu0 }
 0xa39   : > { %v2165_v37 = vpop.f32.mrb[19].mxu0  ;;  %v2202_v39 = vpop.f32.mrb[10].mxu1 }
 0xa3a   : > { %v1897_v38 = vadd.f32 %v2201_v35, %v1822_v34  ;;  %v2166_v18 = vadd.f32 %v2165_v37, %v2164_v36  ;;  %v2203_v41 = vpop.f32.mrb[11].mxu1 }
 0xa3b   : > { %v2204_v0 = vadd.f32 %v2203_v41, %v2202_v39 }
 0xa3c   : > { %v1827_v42 = vadd.f32 %v2166_v18, %v2068_v57  ;;  %v1905_v33 = vadd.f32 %v1897_v38, %v3240_v27 }
 0xa3e   : > { %v1902_v43 = vadd.f32 %v2204_v0, %v1827_v42  ;;  %1907 = vadd.xlane.f32.xlu1 %v1905_v33 }
 0xa40   : > { %v1906_v47 = vadd.f32 %v1902_v43, %v3247_v31 }
 0xa42   : > { %1909 = vadd.xlane.f32.xlu0 %v1906_v47 }
 0xacb   : > { %v1908_v48 = vpop.xlane.xlu1 %1907 }
 0xacc   : > { %v1911_v49 = vmul.f32 0.0078125, %v1908_v48 }
 0xace   : > { %v1913_v51 = vsub.f32 %v1905_v33, %v1911_v49 }
 0xacf   : > { %v1910_v44 = vpop.xlane.xlu0 %1909 }
 0xad0   : > { %v1912_v45 = vmul.f32 0.0078125, %v1910_v44  ;;  %v1915_v46 = vmul.f32 %v1913_v51, %v1913_v51 }
 0xad2   : > { %v1914_v53 = vsub.f32 %v1906_v47, %v1912_v45  ;;  %1917 = vadd.xlane.f32.xlu0 %v1915_v46 }
 0xad4   : > { %v1916_v54 = vmul.f32 %v1914_v53, %v1914_v53 }
 0xad6   : > { %1919 = vadd.xlane.f32.xlu0 %v1916_v54 }
 0xb5f   : > { %v1918_v55 = vpop.xlane.xlu0 %1917 }
 0xb60   : > { %v1921_v56 = vmul.f32 0.0078125, %v1918_v55 }
 0xb62   : > { %v1923_v58 = vadd.f32 1e-12, %v1921_v56 }
 0xb63   : > { %v1920_v27 = vpop.xlane.xlu0 %1919 }
 0xb64   : > { %2635 = vrsqrt.f32 %v1923_v58  ;;  %v1922_v59 = vmul.f32 0.0078125, %v1920_v27 }
 0xb66   : > { %v1924_v60 = vadd.f32 1e-12, %v1922_v59 }
 0xb68   : > { %2637 = vrsqrt.f32 %v1924_v60 }
 0xb6e   : > { %v2636_v31 = vpop.eup %2635 }
 0xb6f   : > { %v1927_v1 = vmul.f32 %v2636_v31, %v1913_v51 }
 0xb71   : > { %v1936_v3 = vmul.f32 %v2069_v63, %v1927_v1 }
 0xb72   : > { %v2638_v5 = vpop.eup %2637 }
 0xb73   : > { %v1945_v6 = vadd.f32 %v2070_v2, %v1936_v3  ;;  %v1928_v9 = vmul.f32 %v2638_v5, %v1914_v53 }
 0xb75   : > { %1947 = vst [vmem:[%s511_s23] sm:$0xff] %v1945_v6  ;;  %v1937_v10 = vmul.f32 %v2069_v63, %v1928_v9 }
 0xb77   : > { %v1946_v61 = vadd.f32 %v2070_v2, %v1937_v10 }
 0xb79   : > { %1948 = vst [vmem:[%s511_s23 + $0x8] sm:$0xff] %v1946_v61 }
 0xb7a PF: > { %s3343_s24 = sld [smem:[#allocation8_spill]] }
 0xb80   : > { %s26_s29 = sadd.s32 1, %s3343_s24  }
 0xb81   : > { %p23_p9 = scmp.ge.s32.totalorder %s26_s29, 4  }
 0xb83   :  { %25 = sbr.rel (!%p23_p9) target bundleno = 2 (0x2), region = 118 }
 0xb8a   :  { %1970 = vsyncpa [#allocation3], 1 }
 0xb8b   :  { %1972 = vsyncpa [#allocation3 + $0x1], 1 }
 0xb8c   :  { %1973 = vsyncpa [#allocation5], 1 }

// kernel: bert_ner_forward.6
= control target key start
LH: loop header
LB: loop body
LE: loop exit
PB: predicated region body
PF: predicated region fallthrough
CT: control target
= control target key end

     0   :  { %s2643_s29 = smov 0   ;;  %s3424_s0 = inlined_call_operand.vmem [shape: f32[2,16,128], index: 0, kind: input, shape index: {}]   ;;  %s3425_s1 = inlined_call_operand.vmem [shape: f32[2,1,16], index: 1, kind: input, shape index: {}]   ;;  %s3426_s2 = inlined_call_operand.vmem [shape: f32[128,384], index: 2, kind: input, shape index: {}]   ;;  %s3427_s3 = inlined_call_operand.vmem [shape: f32[1,384], index: 3, kind: input, shape index: {}]   ;;  %s3428_s4 = inlined_call_operand.vmem [shape: f32[128,128], index: 4, kind: input, shape index: {}]   ;;  %s3429_s5 = inlined_call_operand.vmem [shape: f32[1,128], index: 5, kind: input, shape index: {}]   ;;  %s3430_s6 = inlined_call_operand.vmem [shape: f32[1,128], index: 6, kind: input, shape index: {}]   ;;  %s3431_s7 = inlined_call_operand.vmem [shape: f32[1,128], index: 7, kind: input, shape index: {}]   ;;  %s3432_s8 = inlined_call_operand.vmem [shape: f32[128,512], index: 8, kind: input, shape index: {}]   ;;  %s3433_s9 = inlined_call_operand.vmem [shape: f32[1,512], index: 9, kind: input, shape index: {}]   ;;  %s3434_s10 = inlined_call_operand.vmem [shape: f32[512,128], index: 10, kind: input, shape index: {}]   ;;  %s3435_s11 = inlined_call_operand.vmem [shape: f32[1,128], index: 11, kind: input, shape index: {}]   ;;  %s3436_s12 = inlined_call_operand.vmem [shape: f32[1,128], index: 12, kind: input, shape index: {}]   ;;  %s3437_s13 = inlined_call_operand.vmem [shape: f32[1,128], index: 13, kind: input, shape index: {}]   ;;  %s3438_s14 = inlined_call_operand.vmem [shape: f32[2,16,128], index: 14, kind: output, shape index: {}]  }
   0x1 LB: > { %s1983_s30 = sadd.s32 4294967295, %s2564_s29   ;;  %p1987_p0 = scmp.ge.s32.totalorder %s2564_s29, 1  ;;  %s2564_s29 = sphi %s2643_s29, %s24_s29  }
   0x2   : > { %p420_p1 = scmp.lt.s32.totalorder %s2564_s29, 3 }
   0x4   : > { %p421_p2 = pnand %p1987_p0, %p420_p1 }
   0x5   : > { %v486_v0 = vld [vmem:[%s3426_s2 + $0x8] sm:$0xff] (!%p421_p2)  ;;  %v489_v1 = vld [vmem:[%s3426_s2 + $0x20] sm:$0xff] (!%p421_p2)  ;;  %p469_p3 = scmp.lt.s32.totalorder (!%p421_p2), %s1983_s30, 1  ;;  %v488_v4 = vld [vmem:[%s3426_s2 + $0x18] sm:$0xff] (!%p421_p2)  ;;  %v2566_v7 = vmov (!%p421_p2), 0.0   ;;  %v535_v51 = vlaneseq (!%p421_p2)  ;;  %vm703_vm0 = vcmask (!%p421_p2), 523264  }
   0x6   : > { %424 = sbr.rel (%p421_p2) target bundleno = 2873 (0xb39), region = 76  ;;  %v485_v2 = vld [vmem:[%s3426_s2] sm:$0xff] (!%p421_p2)  ;;  %v2250_v3 = vpack.c.bf16 (!%p421_p2), %v489_v1, %v486_v0  ;;  %v492_v5 = vld [vmem:[%s3426_s2 + $0x38] sm:$0xff] (!%p421_p2)  ;;  %v495_v6 = vld [vmem:[%s3426_s2 + $0x50] sm:$0xff] (!%p421_p2)  ;;  %614 = vmatprep.mubr.f32.mxu0 (!%p421_p2), %v2566_v7  ;;  %s2567_s28 = smov (!%p421_p2), 64   ;;  %vm801_vm2 = vcmask (!%p421_p2), 130048  }
   0x7   : > { %v2252_v8 = vpack.c.bf16 (!%p421_p2), %v488_v4, %v485_v2  ;;  %v2254_v9 = vpack.c.bf16 (!%p421_p2), %v495_v6, %v492_v5  ;;  %v491_v10 = vld [vmem:[%s3426_s2 + $0x30] sm:$0xff] (!%p421_p2)  ;;  %v494_v11 = vld [vmem:[%s3426_s2 + $0x48] sm:$0xff] (!%p421_p2)  ;;  %v501_v13 = vld [vmem:[%s3426_s2 + $0x80] sm:$0xff] (!%p421_p2)  ;;  %v2768_v52 = vshrl.u32 (!%p421_p2), %v535_v51, 7 }
   0x8   : > { %v498_v12 = vld [vmem:[%s3426_s2 + $0x68] sm:$0xff] (!%p421_p2)  ;;  %2251 = vmatprep.subr.bf16.mxu0 (!%p421_p2), %v2250_v3  ;;  %v2256_v14 = vpack.c.bf16 (!%p421_p2), %v494_v11, %v491_v10  ;;  %v497_v16 = vld [vmem:[%s3426_s2 + $0x60] sm:$0xff] (!%p421_p2)  ;;  %v500_v17 = vld [vmem:[%s3426_s2 + $0x78] sm:$0xff] (!%p421_p2) }
   0x9   : > { %2253 = vmatpush1.bf16.msra.mxu0 (!%p421_p2), %v2252_v8  ;;  %v2258_v15 = vpack.c.bf16 (!%p421_p2), %v501_v13, %v498_v12  ;;  %v504_v18 = vld [vmem:[%s3426_s2 + $0x98] sm:$0xff] (!%p421_p2)  ;;  %v507_v19 = vld [vmem:[%s3426_s2 + $0xb0] sm:$0xff] (!%p421_p2)  ;;  %v2260_v20 = vpack.c.bf16 (!%p421_p2), %v500_v17, %v497_v16  ;;  %v506_v23 = vld [vmem:[%s3426_s2 + $0xa8] sm:$0xff] (!%p421_p2)  ;;  %v537_v61 = vsub.s32 (!%p421_p2), 0, %v2768_v52  ;;  %v541_v3 = vsub.s32 (!%p421_p2), 1, %v2768_v52 }
   0xa   : > { %2255 = vmatprep.subr.bf16.mxu0 (!%p421_p2), %v2254_v9  ;;  %v2262_v21 = vpack.c.bf16 (!%p421_p2), %v507_v19, %v504_v18  ;;  %v503_v22 = vld [vmem:[%s3426_s2 + $0x90] sm:$0xff] (!%p421_p2)  ;;  %v510_v24 = vld [vmem:[%s3426_s2 + $0xc8] sm:$0xff] (!%p421_p2)  ;;  %v513_v25 = vld [vmem:[%s3426_s2 + $0xe0] sm:$0xff] (!%p421_p2) }
   0xb   : > { %v2264_v27 = vpack.c.bf16 (!%p421_p2), %v506_v23, %v503_v22  ;;  %v2266_v28 = vpack.c.bf16 (!%p421_p2), %v513_v25, %v510_v24  ;;  %v509_v29 = vld [vmem:[%s3426_s2 + $0xc0] sm:$0xff] (!%p421_p2)  ;;  %v512_v30 = vld [vmem:[%s3426_s2 + $0xd8] sm:$0xff] (!%p421_p2)  ;;  %v519_v32 = vld [vmem:[%s3426_s2 + $0x110] sm:$0xff] (!%p421_p2) }
   0xc   : > { %v516_v31 = vld [vmem:[%s3426_s2 + $0xf8] sm:$0xff] (!%p421_p2)  ;;  %v2268_v33 = vpack.c.bf16 (!%p421_p2), %v512_v30, %v509_v29  ;;  %v515_v35 = vld [vmem:[%s3426_s2 + $0xf0] sm:$0xff] (!%p421_p2)  ;;  %v518_v36 = vld [vmem:[%s3426_s2 + $0x108] sm:$0xff] (!%p421_p2) }
   0xd   : > { %s3442_s30 = smov (!%p469_p3, %s1983_s30), 1  ;;  %2257 = vmatpush1.bf16.msra.mxu0 %v2256_v14  ;;  %v2270_v34 = vpack.c.bf16 %v519_v32, %v516_v31  ;;  %v522_v37 = vld [vmem:[%s3426_s2 + $0x128] sm:$0xff]  ;;  %v525_v38 = vld [vmem:[%s3426_s2 + $0x140] sm:$0xff]  ;;  %v2272_v39 = vpack.c.bf16 %v518_v36, %v515_v35  ;;  %v524_v42 = vld [vmem:[%s3426_s2 + $0x138] sm:$0xff] }
   0xe   : > { %s2017_s21 = sshll.u32 %s3442_s30, 4  ;;  %2259 = vmatprep.subr.bf16.mxu0 %v2258_v15  ;;  %v2274_v40 = vpack.c.bf16 %v525_v38, %v522_v37  ;;  %v521_v41 = vld [vmem:[%s3426_s2 + $0x120] sm:$0xff]  ;;  %v528_v43 = vld [vmem:[%s3426_s2 + $0x158] sm:$0xff]  ;;  %v531_v44 = vld [vmem:[%s3426_s2 + $0x170] sm:$0xff]  ;;  %s476_s17 = scalar_lea.vmem %s3425_s1, %s3442_s30 }
   0xf   : > { %s2702_s18 = scalar_lea.vmem %s3424_s0, %s2017_s21  ;;  %v2276_v45 = vpack.c.bf16 %v524_v42, %v521_v41  ;;  %v2278_v46 = vpack.c.bf16 %v531_v44, %v528_v43  ;;  %v527_v47 = vld [vmem:[%s3426_s2 + $0x150] sm:$0xff]  ;;  %v530_v48 = vld [vmem:[%s3426_s2 + $0x168] sm:$0xff]  ;;  %v493_v55 = vld [vmem:[%s3426_s2 + $0x40] sm:$0xff]  ;;  %s481_s25 = scalar_lea.vmem %s3438_s14, %s2017_s21 }
  0x10   : > { %v2717_v26 = vld [vmem:[%s2702_s18] sm:$0xff]  ;;  %v2280_v49 = vpack.c.bf16 %v530_v48, %v527_v47  ;;  %v2765_v50 = vld [vmem:[%s2702_s18 + $0x8] sm:$0xff]  ;;  %v487_v53 = vld [vmem:[%s3426_s2 + $0x10] sm:$0xff] }
  0x11   : > { %2181 = vmatprep.mubr.f32.mxu1 %v2717_v26  ;;  %2261 = vmatpush1.bf16.msra.mxu0 %v2260_v20  ;;  %v490_v54 = vld [vmem:[%s3426_s2 + $0x28] sm:$0xff]  ;;  %v496_v57 = vld [vmem:[%s3426_s2 + $0x58] sm:$0xff]  ;;  %v499_v59 = vld [vmem:[%s3426_s2 + $0x70] sm:$0xff] }
  0x12   : > { %2263 = vmatprep.subr.bf16.mxu0 %v2262_v21  ;;  %v2282_v56 = vpack.c.bf16 %v490_v54, %v487_v53  ;;  %v2286_v58 = vpack.c.bf16 %v496_v57, %v493_v55  ;;  %v502_v60 = vld [vmem:[%s3426_s2 + $0x88] sm:$0xff]  ;;  %v2792_v62 = vld [vmem:[%s3427_s3] sm:$0x7]  ;;  %v508_v1 = vld [vmem:[%s3426_s2 + $0xb8] sm:$0xff] }
  0x13   : > { %v2290_v63 = vpack.c.bf16 %v502_v60, %v499_v59  ;;  %v505_v0 = vld [vmem:[%s3426_s2 + $0xa0] sm:$0xff]  ;;  %v538_v2 = vrot.slane %v2792_v62, %v537_v61  ;;  %v511_v5 = vld [vmem:[%s3426_s2 + $0xd0] sm:$0xff]  ;;  %v514_v6 = vld [vmem:[%s3426_s2 + $0xe8] sm:$0xff]  ;;  %v542_v11 = vrot.slane %v2792_v62, %v541_v3 }
  0x14   : > { %2283 = vmatprep.subr.bf16.mxu1 %v2282_v56  ;;  %v2294_v4 = vpack.c.bf16 %v508_v1, %v505_v0  ;;  %v2298_v12 = vpack.c.bf16 %v514_v6, %v511_v5  ;;  %v517_v13 = vld [vmem:[%s3426_s2 + $0x100] sm:$0xff]  ;;  %v520_v14 = vld [vmem:[%s3426_s2 + $0x118] sm:$0xff]  ;;  %vm2823_vm1 = vmpackc.low %vm703_vm0, %vm703_vm0 }
  0x15   : > { %2265 = vmatpush1.bf16.msra.mxu0 %v2264_v27  ;;  %2285 = vmatpush3.bf16.msra.mxu1 %v2282_v56  ;;  %v2302_v19 = vpack.c.bf16 %v520_v14, %v517_v13  ;;  %v523_v21 = vld [vmem:[%s3426_s2 + $0x130] sm:$0xff]  ;;  %v526_v22 = vld [vmem:[%s3426_s2 + $0x148] sm:$0xff]  ;;  %v529_v27 = vld [vmem:[%s3426_s2 + $0x160] sm:$0xff] }
  0x16   : > { %2267 = vmatprep.subr.bf16.mxu0 %v2266_v28  ;;  %2287 = vmatprep.subr.bf16.mxu1 %v2286_v58  ;;  %v2306_v25 = vpack.c.bf16 %v526_v22, %v523_v21  ;;  %v532_v28 = vld [vmem:[%s3426_s2 + $0x178] sm:$0xff]  ;;  %v905_v1 = vld [vmem:[%s3428_s4] sm:$0xff] }
  0x17   : > { %v2310_v29 = vpack.c.bf16 %v532_v28, %v529_v27  ;;  %v908_v6 = vld [vmem:[%s3428_s4 + $0x18] sm:$0xff] }
  0x18   : > { %v912_v13 = vld [vmem:[%s3428_s4 + $0x38] sm:$0xff] }
  0x19   : > { %2269 = vmatpush1.bf16.msra.mxu0 %v2268_v33  ;;  %2289 = vmatpush3.bf16.msra.mxu1 %v2286_v58  ;;  %v2849_v33 = vld [vmem:[%s476_s17] ss:$0 sm:$0xff] }
  0x1a   : > { %2271 = vmatprep.subr.bf16.mxu0 %v2270_v34  ;;  %2291 = vmatprep.subr.bf16.mxu1 %v2290_v63 }
  0x1d   : > { %2273 = vmatpush1.bf16.msra.mxu0 %v2272_v39  ;;  %2293 = vmatpush3.bf16.msra.mxu1 %v2290_v63 }
  0x1e   : > { %2275 = vmatprep.subr.bf16.mxu0 %v2274_v40  ;;  %2295 = vmatprep.subr.bf16.mxu1 %v2294_v4  ;;  %v545_v40 = vsub.s32 2, %v2768_v52 }
  0x20   : > { %v546_v41 = vrot.slane %v2792_v62, %v545_v40 }
  0x21   : > { %2277 = vmatpush1.bf16.msra.mxu0 %v2276_v45  ;;  %2297 = vmatpush3.bf16.msra.mxu1 %v2294_v4  ;;  %v907_v4 = vld [vmem:[%s3428_s4 + $0x10] sm:$0xff] }
  0x22   : > { %2279 = vmatprep.subr.bf16.mxu0 %v2278_v46  ;;  %2299 = vmatprep.subr.bf16.mxu1 %v2298_v12 }
  0x25   : > { %2281 = vmatpush1.bf16.msra.mxu0 %v2280_v49  ;;  %2301 = vmatpush3.bf16.msra.mxu1 %v2298_v12  ;;  %v911_v12 = vld [vmem:[%s3428_s4 + $0x30] sm:$0xff] }
  0x26   : > { %2303 = vmatprep.subr.bf16.mxu1 %v2302_v19  ;;  %v2336_v14 = vpack.c.bf16 %v912_v13, %v911_v12 }
  0x28   : > { %615 = vmatmul.mubr.f32.vlgmr.msra.gmra.mrb[0].mxu0 %v2717_v26 }
  0x29   : > { %620 = vmatprep.mubr.f32.mxu0 %v2566_v7  ;;  %2305 = vmatpush3.bf16.msra.mxu1 %v2302_v19 }
  0x2a   : > { %2307 = vmatprep.subr.bf16.mxu1 %v2306_v25 }
  0x2c   : > { %621 = vmatmul.mubr.f32.gmra.mrb[2].mxu0 %v2765_v50 }
  0x2d   : > { %2309 = vmatpush3.bf16.msra.mxu1 %v2306_v25 }
  0x2e   : > { %2311 = vmatprep.subr.bf16.mxu1 %v2310_v29 }
  0x31   : > { %2313 = vmatpush3.bf16.msra.mxu1 %v2310_v29 }
  0x34   : > { %2182 = vmatmul.mubr.f32.vlgmr.msra.gmra.mrb[0].mxu1 %v2765_v50 }
  0xfb   : > { %v616_v8 = vpop.f32.mrb[0].mxu0 }
  0xfc   : > { %v617_v9 = vadd.f32 %v616_v8, %v538_v2  ;;  %v618_v10 = vpop.f32.mrb[1].mxu0  ;;  %v2328_v8 = vpack.c.bf16 %v908_v6, %v907_v4 }
  0xfd   : > { %v619_v17 = vadd.f32 %v618_v10, %v542_v11  ;;  %v910_v10 = vld [vmem:[%s3428_s4 + $0x28] sm:$0xff] }
  0xfe   : > { %1002 = vrot.lane.b32.xlu1 %v617_v9, %s2567_s28  ;;  %2188 = vmatprep.mubr.msk.f32.mxu0 %vm703_vm0, %v617_v9  ;;  %v909_v9 = vld [vmem:[%s3428_s4 + $0x20] sm:$0xff] }
  0xff   : > { %v622_v15 = vpop.f32.mrb[2].mxu0 }
 0x100   : > { %v624_v16 = vpop.f32.mrb[3].mxu0  ;;  %v623_v30 = vadd.f32 %v622_v15, %v538_v2  ;;  %v906_v2 = vld [vmem:[%s3428_s4 + $0x8] sm:$0xff] }
 0x101   : > { %v625_v18 = vadd.f32 %v624_v16, %v542_v11  ;;  %v2324_v5 = vpack.c.bf16 %v906_v2, %v905_v1  ;;  %v2332_v11 = vpack.c.bf16 %v910_v10, %v909_v9  ;;  %v2001_v10 = vld [vmem:[%s3429_s5] ss:$0 sm:$0xff] }
 0x103   : > { %v2508_v23 = vpack.i.bf16 %v625_v18, %v619_v17  ;;  %v2314_v24 = vpack.c.bf16 %v625_v18, %v619_v17  ;;  %2325 = vmatprep.subr.bf16.mxu1 %v2324_v5 }
 0x104   : > { %2327 = vmatpush3.bf16.msra.mxu1 %v2324_v5 }
 0x105   : > { %2316 = vmatprep.subr.msk.bf16.mxu0 %vm2823_vm1, %v2314_v24  ;;  %2329 = vmatprep.subr.bf16.mxu1 %v2328_v8 }
 0x106   : > { %2319 = vmatpush3.bf16.xpose.msk.msra.mxu0 %vm2823_vm1, %v2314_v24 }
 0x107   : > { %v2183_v42 = vpop.f32.mrb[0].mxu1 }
 0x108   : > { %v693_v43 = vpop.f32.mrb[1].mxu1  ;;  %v2859_v44 = vadd.f32 %v2183_v42, %v546_v41  ;;  %2331 = vmatpush3.bf16.msra.mxu1 %v2328_v8 }
 0x109   : > { %v2861_v45 = vadd.f32 %v693_v43, %v546_v41  ;;  %2333 = vmatprep.subr.bf16.mxu1 %v2332_v11 }
 0x10b   : > { %v2513_v46 = vpack.i.bf16 %v2859_v44, %v2861_v45  ;;  %v2320_v47 = vpack.c.bf16 %v2859_v44, %v2861_v45  ;;  %v1208_v45 = vld [vmem:[%s3428_s4 + $0x40] sm:$0xff] }
 0x10c   : > { %2335 = vmatpush3.bf16.msra.mxu1 %v2332_v11 }
 0x10d   : > { %2189 = vmatmul.mubr.msk.f32.vlgmr.msra.gmra.mrb[4].mxu0 %vm703_vm0, %v623_v30  ;;  %2321 = vmatprep.subr.bf16.mxu0 %v2320_v47 }
 0x10e   : > { %2323 = vmatpush3.bf16.msra.mxu0 %v2320_v47  ;;  %2337 = vmatprep.subr.bf16.mxu1 %v2336_v14 }
 0x110   : > { %2339 = vmatpush3.bf16.msra.mxu1 %v2336_v14 }
 0x170   : > { %v1003_v15 = vpop.permute.xlu1 %1002 }
 0x1e0   : > { %v2190_v31 = vpop.f32.mrb[4].mxu0 }
 0x1e1   : > { %v782_v32 = vpop.f32.mrb[5].mxu0  ;;  %v792_v34 = vmul.f32 0.125, %v2190_v31 }
 0x1e2   : > { %v791_v35 = vmul.f32 0.125, %v782_v32 }
 0x1e3   : > { %v800_v38 = vadd.f32 %v2849_v33, %v792_v34 }
 0x1e4   : > { %v799_v36 = vadd.f32 %v2849_v33, %v791_v35 }
 0x1e5   : > { %v805_v39 = vsel %vm801_vm2, %v800_v38, -inf }
 0x1e6   : > { %v802_v37 = vsel %vm801_vm2, %v799_v36, -inf }
 0x1e7   : > { %803 = vmax.xlane.f32.xlu0 %v802_v37 }
 0x1eb   : > { %806 = vmax.xlane.f32.xlu0 %v805_v39 }
 0x201   : > { %2509 = vrot.lane.b32.xlu0 %v2508_v23, %s2567_s28 }
 0x274   : > { %v804_v48 = vpop.xlane.xlu0 %803 }
 0x275   : > { %v808_v49 = vsub.f32 %v799_v36, %v804_v48 }
 0x277   : > { %v810_v54 = vmul.f32 1.442695, %v808_v49 }
 0x278   : > { %v807_v51 = vpop.xlane.xlu0 %806 }
 0x279   : > { %v809_v53 = vsub.f32 %v800_v38, %v807_v51 }
 0x27b   : > { %v812_v55 = vmul.f32 1.442695, %v809_v53  ;;  %v1210_v53 = vld [vmem:[%s3428_s4 + $0x50] sm:$0xff] }
 0x27c   : > { %v2510_v56 = vpop.permute.xlu0 %2509 }
 0x27d   : > { %2518 = vpow2.f32 %v812_v55  ;;  %v2512_v57 = vunpack.i.h.bf16 %v2510_v56  ;;  %v2511_v58 = vunpack.i.l.bf16 %v2510_v56  ;;  %v1211_v55 = vld [vmem:[%s3428_s4 + $0x58] sm:$0xff] }
 0x27e   : > { %2520 = vpow2.f32 %v810_v54  ;;  %v2354_v56 = vpack.c.bf16 %v1211_v55, %v1210_v53 }
 0x27f   : > { %v2340_v59 = vpack.c.bf16 %v2512_v57, %v2511_v58  ;;  %v1212_v57 = vld [vmem:[%s3428_s4 + $0x60] sm:$0xff]  ;;  %v1213_v58 = vld [vmem:[%s3428_s4 + $0x68] sm:$0xff] }
 0x281   : > { %2342 = vmatprep.subr.msk.bf16.mxu0 %vm2823_vm1, %v2340_v59 }
 0x287   : > { %v2519_v60 = vpop.eup %2518 }
 0x288   : > { %v817_v62 = vsel %vm801_vm2, %v2519_v60, 0.0  ;;  %v2521_v63 = vpop.eup %2520 }
 0x289   : > { %818 = vadd.xlane.f32.xlu1 %v817_v62  ;;  %v814_v0 = vsel %vm801_vm2, %v2521_v63, 0.0  ;;  %v1215_v62 = vld [vmem:[%s3428_s4 + $0x78] sm:$0xff] }
 0x28d   : > { %815 = vadd.xlane.f32.xlu1 %v814_v0 }
 0x29e   : > { %1004 = vrot.lane.b32.xlu1 %v623_v30, %s2567_s28 }
 0x316   : > { %v819_v16 = vpop.xlane.xlu1 %818 }
 0x317   : > { %2522 = vrcp.f32 %v819_v16 }
 0x31a   : > { %v816_v17 = vpop.xlane.xlu1 %815 }
 0x31b   : > { %2524 = vrcp.f32 %v816_v17  ;;  %v1343_v17 = vld [vmem:[%s3432_s8 + $0x8] sm:$0xff] }
 0x31e   : > { %v1005_v23 = vpop.permute.xlu1 %1004 }
 0x321   : > { %v2523_v18 = vpop.eup %2522 }
 0x322   : > { %v823_v22 = vmul.f32 %v2523_v18, %v2519_v60  ;;  %v1214_v60 = vld [vmem:[%s3428_s4 + $0x70] sm:$0xff]  ;;  %v1347_v18 = vld [vmem:[%s3432_s8 + $0x28] sm:$0xff] }
 0x325   : > { %v2525_v19 = vpop.eup %2524 }
 0x326   : > { %v822_v21 = vmul.f32 %v2525_v19, %v2521_v63  ;;  %v2362_v63 = vpack.c.bf16 %v1215_v62, %v1214_v60  ;;  %v1345_v19 = vld [vmem:[%s3432_s8 + $0x18] sm:$0xff] }
 0x328   : > { %2195 = vmatprep.mubr.msk.f32.mxu0 %vm801_vm2, %v822_v21  ;;  %v2366_v21 = vpack.c.bf16 %v1347_v18, %v1343_v17  ;;  %v1381_v18 = vld [vmem:[%s3432_s8 + $0x138] sm:$0xff] }
 0x329   : > { %2196 = vmatmul.mubr.msk.f32.vlgmr.msra.gmra.mrb[6].mxu0 %vm801_vm2, %v823_v22  ;;  %v1346_v22 = vld [vmem:[%s3432_s8 + $0x20] sm:$0xff] }
 0x32a   : > { %2345 = vmatpush3.bf16.xpose.msk.msra.mxu0 %vm2823_vm1, %v2340_v59  ;;  %2221 = vmatprep.mubr.msk.f32.mxu0 %vm703_vm0, %v1003_v15  ;;  %v2358_v59 = vpack.c.bf16 %v1213_v58, %v1212_v57 }
 0x331   : > { %2222 = vmatmul.mubr.msk.f32.vlgmr.msra.gmra.mrb[8].mxu0 %vm703_vm0, %v1005_v23 }
 0x3fc   : > { %v2197_v24 = vpop.f32.mrb[6].mxu0 }
 0x3fd   : > { %v896_v25 = vpop.f32.mrb[7].mxu0 }
 0x3fe   : > { %2214 = vmatprep.mubr.msk.f32.mxu1 %vm703_vm0, %v896_v25  ;;  %v1344_v25 = vld [vmem:[%s3432_s8 + $0x10] sm:$0xff] }
 0x3ff   : > { %2215 = vmatmul.mubr.msk.f32.vlgmr.msra.gmra.mrb[2].mxu1 %vm703_vm0, %v2197_v24 }
 0x404   : > { %v2223_v27 = vpop.f32.mrb[8].mxu0 }
 0x405   : > { %v1094_v28 = vmul.f32 0.125, %v2223_v27  ;;  %v1084_v29 = vpop.f32.mrb[9].mxu0  ;;  %v1348_v27 = vld [vmem:[%s3432_s8 + $0x30] sm:$0xff] }
 0x406   : > { %v1093_v30 = vmul.f32 0.125, %v1084_v29  ;;  %v2400_v29 = vpack.c.bf16 %v1348_v27, %v1344_v25  ;;  %v1383_v25 = vld [vmem:[%s3432_s8 + $0x148] sm:$0xff] }
 0x407   : > { %v1096_v31 = vadd.f32 %v2849_v33, %v1094_v28  ;;  %v1351_v28 = vld [vmem:[%s3432_s8 + $0x48] sm:$0xff] }
 0x408   : > { %v1095_v20 = vadd.f32 %v2849_v33, %v1093_v30  ;;  %v1355_v30 = vld [vmem:[%s3432_s8 + $0x68] sm:$0xff] }
 0x409   : > { %v1100_v32 = vsel %vm801_vm2, %v1096_v31, -inf  ;;  %v1387_v27 = vld [vmem:[%s3432_s8 + $0x168] sm:$0xff] }
 0x40a   : > { %1101 = vmax.xlane.f32.xlu0 %v1100_v32  ;;  %v1097_v34 = vsel %vm801_vm2, %v1095_v20, -inf  ;;  %v2370_v32 = vpack.c.bf16 %v1355_v30, %v1351_v28  ;;  %v1385_v28 = vld [vmem:[%s3432_s8 + $0x158] sm:$0xff] }
 0x40b   : > { %1098 = vmax.xlane.f32.xlu1 %v1097_v34  ;;  %v1389_v30 = vld [vmem:[%s3432_s8 + $0x178] sm:$0xff] }
 0x41c   : > { %2514 = vrot.lane.b32.xlu1 %v2513_v46, %s2567_s28  ;;  %v1209_v46 = vld [vmem:[%s3428_s4 + $0x48] sm:$0xff] }
 0x41d   : > { %v2350_v54 = vpack.c.bf16 %v1209_v46, %v1208_v45  ;;  %v1360_v45 = vld [vmem:[%s3432_s8 + $0x90] sm:$0xff] }
 0x41e   : > { %v1364_v46 = vld [vmem:[%s3432_s8 + $0xb0] sm:$0xff] }
 0x41f   : > { %2351 = vmatprep.subr.bf16.mxu1 %v2350_v54 }
 0x420   : > { %2353 = vmatpush3.bf16.msra.mxu1 %v2350_v54  ;;  %v2408_v54 = vpack.c.bf16 %v1364_v46, %v1360_v45  ;;  %v1399_v45 = vld [vmem:[%s3432_s8 + $0x1c8] sm:$0xff] }
 0x421   : > { %2355 = vmatprep.subr.bf16.mxu1 %v2354_v56  ;;  %v1403_v46 = vld [vmem:[%s3432_s8 + $0x1e8] sm:$0xff] }
 0x424   : > { %2357 = vmatpush3.bf16.msra.mxu1 %v2354_v56 }
 0x425   : > { %2359 = vmatprep.subr.bf16.mxu1 %v2358_v59 }
 0x428   : > { %2361 = vmatpush3.bf16.msra.mxu1 %v2358_v59 }
 0x429   : > { %2363 = vmatprep.subr.bf16.mxu1 %v2362_v63 }
 0x42c   : > { %2365 = vmatpush3.bf16.msra.mxu1 %v2362_v63 }
 0x497   : > { %v1102_v35 = vpop.xlane.xlu0 %1101 }
 0x498   : > { %v1104_v36 = vsub.f32 %v1096_v31, %v1102_v35  ;;  %v1099_v37 = vpop.xlane.xlu1 %1098  ;;  %v1353_v31 = vld [vmem:[%s3432_s8 + $0x58] sm:$0xff]  ;;  %v1350_v35 = vld [vmem:[%s3432_s8 + $0x40] sm:$0xff] }
 0x499   : > { %v1103_v38 = vsub.f32 %v1095_v20, %v1099_v37  ;;  %v1357_v20 = vld [vmem:[%s3432_s8 + $0x78] sm:$0xff]  ;;  %v1352_v37 = vld [vmem:[%s3432_s8 + $0x50] sm:$0xff] }
 0x49a   : > { %v1107_v39 = vmul.f32 1.442695, %v1104_v36  ;;  %v2402_v34 = vpack.c.bf16 %v1357_v20, %v1353_v31  ;;  %v1354_v36 = vld [vmem:[%s3432_s8 + $0x60] sm:$0xff] }
 0x49b   : > { %v1105_v41 = vmul.f32 1.442695, %v1103_v38  ;;  %v2372_v38 = vpack.c.bf16 %v1354_v36, %v1350_v35  ;;  %v1382_v31 = vld [vmem:[%s3432_s8 + $0x140] sm:$0xff]  ;;  %v1384_v35 = vld [vmem:[%s3432_s8 + $0x150] sm:$0xff] }
 0x49c   : > { %v2515_v42 = vpop.permute.xlu1 %2514  ;;  %v1386_v20 = vld [vmem:[%s3432_s8 + $0x160] sm:$0xff]  ;;  %v1388_v36 = vld [vmem:[%s3432_s8 + $0x170] sm:$0xff] }
 0x49d   : > { %2526 = vpow2.f32 %v1105_v41  ;;  %v2517_v33 = vunpack.i.h.bf16 %v2515_v42  ;;  %v2516_v43 = vunpack.i.l.bf16 %v2515_v42  ;;  %v1359_v41 = vld [vmem:[%s3432_s8 + $0x88] sm:$0xff] }
 0x49e   : > { %2528 = vpow2.f32 %v1107_v39  ;;  %v1356_v39 = vld [vmem:[%s3432_s8 + $0x70] sm:$0xff]  ;;  %v1363_v42 = vld [vmem:[%s3432_s8 + $0xa8] sm:$0xff] }
 0x49f   : > { %v2346_v47 = vpack.c.bf16 %v2517_v33, %v2516_v43  ;;  %v2404_v33 = vpack.c.bf16 %v1356_v39, %v1352_v37  ;;  %v2374_v43 = vpack.c.bf16 %v1363_v42, %v1359_v41  ;;  %v1391_v37 = vld [vmem:[%s3432_s8 + $0x188] sm:$0xff]  ;;  %v1393_v41 = vld [vmem:[%s3432_s8 + $0x198] sm:$0xff] }
 0x4a0   : > { %v1395_v39 = vld [vmem:[%s3432_s8 + $0x1a8] sm:$0xff]  ;;  %v1397_v42 = vld [vmem:[%s3432_s8 + $0x1b8] sm:$0xff] }
 0x4a1   : > { %2347 = vmatprep.subr.bf16.mxu0 %v2346_v47 }
 0x4a2   : > { %2349 = vmatpush3.bf16.msra.mxu0 %v2346_v47  ;;  %v1361_v47 = vld [vmem:[%s3432_s8 + $0x98] sm:$0xff] }
 0x4a3   : > { %2367 = vmatprep.subr.bf16.mxu0 %v2366_v21  ;;  %v1378_v21 = vld [vmem:[%s3432_s8 + $0x120] sm:$0xff] }
 0x4a7   : > { %v2527_v48 = vpop.eup %2526 }
 0x4a8   : > { %v1109_v49 = vsel %vm801_vm2, %v2527_v48, 0.0  ;;  %v2529_v51 = vpop.eup %2528 }
 0x4a9   : > { %1110 = vadd.xlane.f32.xlu0 %v1109_v49  ;;  %v1112_v44 = vsel %vm801_vm2, %v2529_v51, 0.0  ;;  %v1358_v49 = vld [vmem:[%s3432_s8 + $0x80] sm:$0xff] }
 0x4ad   : > { %1113 = vadd.xlane.f32.xlu0 %v1112_v44  ;;  %v1362_v44 = vld [vmem:[%s3432_s8 + $0xa0] sm:$0xff] }
 0x4ae   : > { %v2376_v53 = vpack.c.bf16 %v1362_v44, %v1358_v49  ;;  %v1392_v49 = vld [vmem:[%s3432_s8 + $0x190] sm:$0xff] }
 0x4af   : > { %v1396_v44 = vld [vmem:[%s3432_s8 + $0x1b0] sm:$0xff] }
 0x536   : > { %v1111_v0 = vpop.xlane.xlu0 %1110 }
 0x537   : > { %2530 = vrcp.f32 %v1111_v0  ;;  %v1367_v0 = vld [vmem:[%s3432_s8 + $0xc8] sm:$0xff] }
 0x53a   : > { %v1114_v1 = vpop.xlane.xlu0 %1113 }
 0x53b   : > { %2532 = vrcp.f32 %v1114_v1  ;;  %v1371_v1 = vld [vmem:[%s3432_s8 + $0xe8] sm:$0xff] }
 0x541   : > { %v2531_v2 = vpop.eup %2530 }
 0x542   : > { %v1117_v4 = vmul.f32 %v2531_v2, %v2527_v48  ;;  %v1365_v48 = vld [vmem:[%s3432_s8 + $0xb8] sm:$0xff] }
 0x543   : > { %v1369_v2 = vld [vmem:[%s3432_s8 + $0xd8] sm:$0xff] }
 0x544   : > { %2228 = vmatprep.mubr.msk.f32.mxu0 %vm801_vm2, %v1117_v4  ;;  %v2378_v4 = vpack.c.bf16 %v1371_v1, %v1367_v0  ;;  %v1404_v0 = vld [vmem:[%s3432_s8 + $0x1f0] sm:$0xff] }
 0x545   : > { %v2533_v5 = vpop.eup %2532 }
 0x546   : > { %v1118_v6 = vmul.f32 %v2533_v5, %v2529_v51  ;;  %v2406_v51 = vpack.c.bf16 %v1365_v48, %v1361_v47  ;;  %v1373_v5 = vld [vmem:[%s3432_s8 + $0xf8] sm:$0xff]  ;;  %v1390_v47 = vld [vmem:[%s3432_s8 + $0x180] sm:$0xff] }
 0x547   : > { %v1394_v48 = vld [vmem:[%s3432_s8 + $0x1a0] sm:$0xff] }
 0x548   : > { %2229 = vmatmul.mubr.msk.f32.vlgmr.msra.gmra.mrb[10].mxu0 %vm801_vm2, %v1118_v6  ;;  %v1366_v6 = vld [vmem:[%s3432_s8 + $0xc0] sm:$0xff] }
 0x549   : > { %1492 = vmatprep.mubr.f32.mxu0 %v2566_v7 }
 0x61b   : > { %v2230_v8 = vpop.f32.mrb[10].mxu0 }
 0x61c   : > { %v1199_v9 = vpop.f32.mrb[11].mxu0 }
 0x61d   : > { %2247 = vmatprep.mubr.msk.f32.mxu1 %vm703_vm0, %v1199_v9  ;;  %v2410_v9 = vpack.c.bf16 %v1373_v5, %v1369_v2  ;;  %v1671_v5 = vld [vmem:[%s3434_s10 + $0x88] sm:$0xff] }
 0x61e   : > { %2248 = vmatmul.mubr.msk.f32.vlgmr.msra.gmra.mrb[2].mxu1 %vm703_vm0, %v2230_v8  ;;  %v1370_v8 = vld [vmem:[%s3432_s8 + $0xe0] sm:$0xff] }
 0x61f   : > { %1569 = vmatprep.mubr.f32.mxu1 %v2566_v7 }
 0x6f1   : > { %v2249_v11 = vpop.f32.mrb[2].mxu1 }
 0x6f2   : > { %v1288_v12 = vpop.f32.mrb[3].mxu1  ;;  %v2494_v14 = vadd.f32 %v2249_v11, %v2001_v10  ;;  %v1368_v11 = vld [vmem:[%s3432_s8 + $0xd0] sm:$0xff] }
 0x6f3   : > { %v2495_v13 = vadd.f32 %v2001_v10, %v1288_v12  ;;  %v2380_v10 = vpack.c.bf16 %v1370_v8, %v1366_v6  ;;  %v1372_v12 = vld [vmem:[%s3432_s8 + $0xf0] sm:$0xff]  ;;  %v1702_v6 = vld [vmem:[%s3434_s10 + $0x180] sm:$0xff] }
 0x6f4   : > { %v1300_v16 = vadd.f32 %v2494_v14, %v2765_v50  ;;  %v1342_v50 = vld [vmem:[%s3432_s8] sm:$0xff]  ;;  %v1375_v14 = vld [vmem:[%s3432_s8 + $0x108] sm:$0xff] }
 0x6f5   : > { %v1299_v15 = vadd.f32 %v2495_v13, %v2717_v26  ;;  %v1349_v26 = vld [vmem:[%s3432_s8 + $0x38] sm:$0xff]  ;;  %v2368_v24 = vpack.c.bf16 %v1346_v22, %v1342_v50  ;;  %v2412_v13 = vpack.c.bf16 %v1372_v12, %v1368_v11  ;;  %v1376_v22 = vld [vmem:[%s3432_s8 + $0x110] sm:$0xff] }
 0x6f6   : > { %v2398_v23 = vpack.c.bf16 %v1349_v26, %v1345_v19  ;;  %v1374_v19 = vld [vmem:[%s3432_s8 + $0x100] sm:$0xff] }
 0x6f7   : > { %1301 = vadd.xlane.f32.xlu0 %v1299_v15  ;;  %2369 = vmatpush1.bf16.msra.mxu0 %v2368_v24  ;;  %v2384_v50 = vpack.c.bf16 %v1378_v21, %v1374_v19  ;;  %v2011_v21 = vld [vmem:[%s3431_s7] ss:$0 sm:$0xff] }
 0x6f8   : > { %2399 = vmatprep.subr.bf16.mxu1 %v2398_v23  ;;  %2371 = vmatprep.subr.bf16.mxu0 %v2370_v32  ;;  %v1380_v23 = vld [vmem:[%s3432_s8 + $0x130] sm:$0xff]  ;;  %v2418_v32 = vpack.c.bf16 %v1389_v30, %v1385_v28 }
 0x6f9   : > { %2401 = vmatpush1.bf16.msra.mxu1 %v2400_v29  ;;  %v2416_v24 = vpack.c.bf16 %v1380_v23, %v1376_v22  ;;  %v2386_v29 = vpack.c.bf16 %v1387_v27, %v1383_v25  ;;  %v1686_v22 = vld [vmem:[%s3434_s10 + $0x100] sm:$0xff] }
 0x6fa   : > { %2403 = vmatprep.subr.bf16.mxu1 %v2402_v34  ;;  %v2388_v34 = vpack.c.bf16 %v1386_v20, %v1382_v31  ;;  %v1673_v20 = vld [vmem:[%s3434_s10 + $0x98] sm:$0xff] }
 0x6fb   : > { %1303 = vadd.xlane.f32.xlu0 %v1300_v16  ;;  %2373 = vmatpush1.bf16.msra.mxu0 %v2372_v38  ;;  %v2420_v38 = vpack.c.bf16 %v1388_v36, %v1384_v35  ;;  %v1656_v35 = vld [vmem:[%s3434_s10 + $0x10] sm:$0xff]  ;;  %v1657_v36 = vld [vmem:[%s3434_s10 + $0x18] sm:$0xff] }
 0x6fc   : > { %2375 = vmatprep.subr.bf16.mxu0 %v2374_v43  ;;  %v2422_v43 = vpack.c.bf16 %v1397_v42, %v1393_v41  ;;  %v1689_v41 = vld [vmem:[%s3434_s10 + $0x118] sm:$0xff] }
 0x6fd   : > { %2405 = vmatpush1.bf16.msra.mxu1 %v2404_v33  ;;  %v2390_v33 = vpack.c.bf16 %v1395_v39, %v1391_v37  ;;  %v1688_v39 = vld [vmem:[%s3434_s10 + $0x110] sm:$0xff] }
 0x6fe   : > { %2407 = vmatprep.subr.bf16.mxu1 %v2406_v51  ;;  %v2392_v51 = vpack.c.bf16 %v1394_v48, %v1390_v47  ;;  %v2468_v42 = vpack.c.bf16 %v1689_v41, %v1688_v39  ;;  %v1706_v47 = vld [vmem:[%s3434_s10 + $0x1a0] sm:$0xff]  ;;  %v1667_v39 = vld [vmem:[%s3434_s10 + $0x68] sm:$0xff] }
 0x6ff   : > { %2377 = vmatpush1.bf16.msra.mxu0 %v2376_v53  ;;  %v2424_v53 = vpack.c.bf16 %v1396_v44, %v1392_v49  ;;  %v1707_v49 = vld [vmem:[%s3434_s10 + $0x1a8] sm:$0xff]  ;;  %v1698_v41 = vld [vmem:[%s3434_s10 + $0x160] sm:$0xff] }
 0x700   : > { %2379 = vmatprep.subr.bf16.mxu0 %v2378_v4  ;;  %v1670_v4 = vld [vmem:[%s3434_s10 + $0x80] sm:$0xff]  ;;  %v1659_v44 = vld [vmem:[%s3434_s10 + $0x28] sm:$0xff] }
 0x701   : > { %2409 = vmatpush1.bf16.msra.mxu1 %v2408_v54  ;;  %v2394_v54 = vpack.c.bf16 %v1403_v46, %v1399_v45  ;;  %v2430_v8 = vpack.c.bf16 %v1671_v5, %v1670_v4  ;;  %v2470_v45 = vpack.c.bf16 %v1707_v49, %v1706_v47  ;;  %v1692_v5 = vld [vmem:[%s3434_s10 + $0x130] sm:$0xff]  ;;  %v1685_v47 = vld [vmem:[%s3434_s10 + $0xf8] sm:$0xff] }
 0x702   : > { %2411 = vmatprep.subr.bf16.mxu1 %v2410_v9  ;;  %v1703_v9 = vld [vmem:[%s3434_s10 + $0x188] sm:$0xff] }
 0x703   : > { %2381 = vmatpush1.bf16.msra.mxu0 %v2380_v10  ;;  %v2462_v10 = vpack.c.bf16 %v1703_v9, %v1702_v6  ;;  %v1693_v6 = vld [vmem:[%s3434_s10 + $0x138] sm:$0xff]  ;;  %v1678_v9 = vld [vmem:[%s3434_s10 + $0xc0] sm:$0xff] }
 0x705   : > { %2413 = vmatpush1.bf16.msra.mxu1 %v2412_v13 }
 0x784   : > { %v1302_v55 = vpop.xlane.xlu0 %1301 }
 0x785   : > { %v1306_v56 = vmul.f32 0.0078125, %v1302_v55  ;;  %v1401_v55 = vld [vmem:[%s3432_s8 + $0x1d8] sm:$0xff] }
 0x787   : > { %v3022_v57 = vsub.f32 %v1299_v15, %v1306_v56  ;;  %v1379_v15 = vld [vmem:[%s3432_s8 + $0x128] sm:$0xff]  ;;  %v1405_v56 = vld [vmem:[%s3432_s8 + $0x1f8] sm:$0xff] }
 0x788   : > { %v1304_v58 = vpop.xlane.xlu0 %1303  ;;  %v2382_v17 = vpack.c.bf16 %v1379_v15, %v1375_v14 }
 0x789   : > { %v1307_v59 = vmul.f32 0.0078125, %v1304_v58  ;;  %v1310_v60 = vmul.f32 %v3022_v57, %v3022_v57  ;;  %v1398_v58 = vld [vmem:[%s3432_s8 + $0x1c0] sm:$0xff] }
 0x78a   : > { %2383 = vmatprep.subr.bf16.mxu0 %v2382_v17 }
 0x78b   : > { %v3026_v62 = vsub.f32 %v1300_v16, %v1307_v59  ;;  %1312 = vadd.xlane.f32.xlu0 %v1310_v60  ;;  %v1377_v16 = vld [vmem:[%s3432_s8 + $0x118] sm:$0xff]  ;;  %2385 = vmatpush1.bf16.msra.mxu0 %v2384_v50  ;;  %v2426_v59 = vpack.c.bf16 %v1405_v56, %v1401_v55  ;;  %v1402_v60 = vld [vmem:[%s3432_s8 + $0x1e0] sm:$0xff]  ;;  %v1655_v50 = vld [vmem:[%s3434_s10 + $0x8] sm:$0xff] }
 0x78c   : > { %v2414_v26 = vpack.c.bf16 %v1381_v18, %v1377_v16  ;;  %2387 = vmatprep.subr.bf16.mxu0 %v2386_v29  ;;  %v2396_v1 = vpack.c.bf16 %v1402_v60, %v1398_v58  ;;  %v2010_v18 = vld [vmem:[%s3430_s6] ss:$0 sm:$0xff]  ;;  %v1676_v56 = vld [vmem:[%s3434_s10 + $0xb0] sm:$0xff]  ;;  %v1677_v58 = vld [vmem:[%s3434_s10 + $0xb8] sm:$0xff] }
 0x78d   : > { %v1311_v63 = vmul.f32 %v3026_v62, %v3026_v62  ;;  %v2442_v60 = vpack.c.bf16 %v1677_v58, %v1676_v56 }
 0x78e   : > { %2415 = vmatprep.subr.bf16.mxu1 %v2414_v26  ;;  %v1654_v26 = vld [vmem:[%s3434_s10] sm:$0xff] }
 0x78f   : > { %1314 = vadd.xlane.f32.xlu0 %v1311_v63  ;;  %2417 = vmatpush1.bf16.msra.mxu1 %v2416_v24  ;;  %v1400_v63 = vld [vmem:[%s3432_s8 + $0x1d0] sm:$0xff]  ;;  %v2432_v28 = vpack.c.bf16 %v1655_v50, %v1654_v26  ;;  %v1681_v50 = vld [vmem:[%s3434_s10 + $0xd8] sm:$0xff] }
 0x790   : > { %2419 = vmatprep.subr.bf16.mxu1 %v2418_v32  ;;  %2389 = vmatpush1.bf16.msra.mxu0 %v2388_v34  ;;  %v2428_v2 = vpack.c.bf16 %v1404_v0, %v1400_v63  ;;  %v1705_v34 = vld [vmem:[%s3434_s10 + $0x198] sm:$0xff]  ;;  %v1660_v0 = vld [vmem:[%s3434_s10 + $0x30] sm:$0xff] }
 0x791   : > { %2391 = vmatprep.subr.bf16.mxu0 %v2390_v33  ;;  %v1674_v33 = vld [vmem:[%s3434_s10 + $0xa0] sm:$0xff]  ;;  %v1709_v63 = vld [vmem:[%s3434_s10 + $0x1b8] sm:$0xff] }
 0x793   : > { %2421 = vmatpush1.bf16.msra.mxu1 %v2420_v38  ;;  %v2436_v38 = vpack.c.bf16 %v1657_v36, %v1656_v35  ;;  %v1714_v35 = vld [vmem:[%s3434_s10 + $0x1e0] sm:$0xff]  ;;  %v1715_v36 = vld [vmem:[%s3434_s10 + $0x1e8] sm:$0xff] }
 0x794   : > { %2423 = vmatprep.subr.bf16.mxu1 %v2422_v43  ;;  %2393 = vmatpush1.bf16.msra.mxu0 %v2392_v51  ;;  %v1675_v43 = vld [vmem:[%s3434_s10 + $0xa8] sm:$0xff]  ;;  %v1658_v51 = vld [vmem:[%s3434_s10 + $0x20] sm:$0xff] }
 0x795   : > { %2395 = vmatprep.subr.bf16.mxu0 %v2394_v54  ;;  %v2438_v48 = vpack.c.bf16 %v1675_v43, %v1674_v33  ;;  %v2440_v46 = vpack.c.bf16 %v1659_v44, %v1658_v51  ;;  %v1691_v54 = vld [vmem:[%s3434_s10 + $0x128] sm:$0xff]  ;;  %v1684_v43 = vld [vmem:[%s3434_s10 + $0xf0] sm:$0xff]  ;;  %v1717_v44 = vld [vmem:[%s3434_s10 + $0x1f8] sm:$0xff] }
 0x796   : > { %v2458_v51 = vpack.c.bf16 %v1685_v47, %v1684_v43 }
 0x797   : > { %2425 = vmatpush1.bf16.msra.mxu1 %v2424_v53  ;;  %v1690_v53 = vld [vmem:[%s3434_s10 + $0x120] sm:$0xff] }
 0x798   : > { %2427 = vmatprep.subr.bf16.mxu1 %v2426_v59  ;;  %2397 = vmatpush1.bf16.msra.mxu0 %v2396_v1  ;;  %v2472_v55 = vpack.c.bf16 %v1691_v54, %v1690_v53  ;;  %v1708_v59 = vld [vmem:[%s3434_s10 + $0x1b0] sm:$0xff]  ;;  %v1661_v1 = vld [vmem:[%s3434_s10 + $0x38] sm:$0xff] }
 0x799   : > { %2431 = vmatprep.subr.bf16.mxu0 %v2430_v8  ;;  %v2444_v4 = vpack.c.bf16 %v1661_v1, %v1660_v0  ;;  %v2476_v8 = vpack.c.bf16 %v1693_v6, %v1692_v5  ;;  %v1700_v54 = vld [vmem:[%s3434_s10 + $0x170] sm:$0xff] }
 0x79b   : > { %2429 = vmatpush1.bf16.msra.mxu1 %v2428_v2  ;;  %v2474_v2 = vpack.c.bf16 %v1709_v63, %v1708_v59  ;;  %v1406_v59 = vld [vmem:[%s3433_s9] sm:$0xf] }
 0x79c   : > { %2463 = vmatprep.subr.bf16.mxu1 %v2462_v10  ;;  %v1679_v10 = vld [vmem:[%s3434_s10 + $0xc8] sm:$0xff]  ;;  %v1411_v63 = vrot.slane %v1406_v59, %v537_v61  ;;  %v1419_v0 = vrot.slane %v1406_v59, %v545_v40  ;;  %v1415_v1 = vrot.slane %v1406_v59, %v541_v3 }
 0x818   : > { %v1313_v11 = vpop.xlane.xlu0 %1312 }
 0x819   : > { %v1316_v12 = vmul.f32 0.0078125, %v1313_v11  ;;  %v1710_v11 = vld [vmem:[%s3434_s10 + $0x1c0] sm:$0xff] }
 0x81b   : > { %v1318_v13 = vadd.f32 1e-12, %v1316_v12  ;;  %v2446_v12 = vpack.c.bf16 %v1679_v10, %v1678_v9 }
 0x81c   : > { %v1315_v14 = vpop.xlane.xlu0 %1314 }
 0x81d   : > { %2534 = vrsqrt.f32 %v1318_v13  ;;  %v1317_v15 = vmul.f32 0.0078125, %v1315_v14  ;;  %v1711_v13 = vld [vmem:[%s3434_s10 + $0x1c8] sm:$0xff]  ;;  %v1662_v14 = vld [vmem:[%s3434_s10 + $0x40] sm:$0xff] }
 0x81f   : > { %v1319_v16 = vadd.f32 1e-12, %v1317_v15  ;;  %v1663_v15 = vld [vmem:[%s3434_s10 + $0x48] sm:$0xff] }
 0x821   : > { %2536 = vrsqrt.f32 %v1319_v16  ;;  %v2478_v16 = vpack.c.bf16 %v1711_v13, %v1710_v11 }
 0x827   : > { %v2535_v17 = vpop.eup %2534 }
 0x828   : > { %v1322_v19 = vmul.f32 %v2535_v17, %v3022_v57  ;;  %v1687_v57 = vld [vmem:[%s3434_s10 + $0x108] sm:$0xff]  ;;  %v2448_v17 = vpack.c.bf16 %v1663_v15, %v1662_v14 }
 0x829   : > { %v2464_v29 = vpack.c.bf16 %v1687_v57, %v1686_v22  ;;  %v1712_v22 = vld [vmem:[%s3434_s10 + $0x1d0] sm:$0xff]  ;;  %v1713_v57 = vld [vmem:[%s3434_s10 + $0x1d8] sm:$0xff] }
 0x82a   : > { %v1331_v23 = vmul.f32 %v2010_v18, %v1322_v19  ;;  %v1695_v19 = vld [vmem:[%s3434_s10 + $0x148] sm:$0xff] }
 0x82b   : > { %v2537_v24 = vpop.eup %2536 }
 0x82c   : > { %v3181_v25 = vadd.f32 %v2011_v21, %v1331_v23  ;;  %v1323_v27 = vmul.f32 %v2537_v24, %v3026_v62  ;;  %v1672_v62 = vld [vmem:[%s3434_s10 + $0x90] sm:$0xff]  ;;  %v2482_v24 = vpack.c.bf16 %v1713_v57, %v1712_v22 }
 0x82d   : > { %v2434_v32 = vpack.c.bf16 %v1673_v20, %v1672_v62  ;;  %v1697_v62 = vld [vmem:[%s3434_s10 + $0x158] sm:$0xff]  ;;  %v1682_v20 = vld [vmem:[%s3434_s10 + $0xe0] sm:$0xff] }
 0x82e   : > { %1493 = vmatmul.mubr.f32.vlgmr.msra.gmra.mrb[12].mxu0 %v3181_v25  ;;  %1570 = vmatmul.mubr.f32.vlgmr.msra.gmra.mrb[4].mxu1 %v3181_v25  ;;  %v1332_v30 = vmul.f32 %v2010_v18, %v1323_v27  ;;  %v1694_v18 = vld [vmem:[%s3434_s10 + $0x140] sm:$0xff]  ;;  %v1664_v27 = vld [vmem:[%s3434_s10 + $0x50] sm:$0xff] }
 0x82f   : > { %1498 = vmatprep.mubr.f32.mxu0 %v2566_v7  ;;  %1575 = vmatprep.mubr.f32.mxu1 %v2566_v7  ;;  %v1704_v7 = vld [vmem:[%s3434_s10 + $0x190] sm:$0xff]  ;;  %v2480_v26 = vpack.c.bf16 %v1695_v19, %v1694_v18 }
 0x830   : > { %v3188_v31 = vadd.f32 %v2011_v21, %v1332_v30  ;;  %2433 = vmatpush3.bf16.msra.mxu0 %v2432_v28  ;;  %2465 = vmatpush3.bf16.msra.mxu1 %v2464_v29  ;;  %v2466_v37 = vpack.c.bf16 %v1705_v34, %v1704_v7  ;;  %v1680_v21 = vld [vmem:[%s3434_s10 + $0xd0] sm:$0xff]  ;;  %v1665_v28 = vld [vmem:[%s3434_s10 + $0x58] sm:$0xff]  ;;  %v1683_v7 = vld [vmem:[%s3434_s10 + $0xe8] sm:$0xff] }
 0x831   : > { %2435 = vmatprep.subr.bf16.mxu0 %v2434_v32  ;;  %v2450_v23 = vpack.c.bf16 %v1681_v50, %v1680_v21  ;;  %v1696_v29 = vld [vmem:[%s3434_s10 + $0x150] sm:$0xff]  ;;  %v2452_v30 = vpack.c.bf16 %v1665_v28, %v1664_v27  ;;  %v2454_v34 = vpack.c.bf16 %v1683_v7, %v1682_v20 }
 0x832   : > { %1499 = vmatmul.mubr.f32.gmra.mrb[14].mxu0 %v3188_v31  ;;  %1576 = vmatmul.mubr.f32.gmra.mrb[6].mxu1 %v3188_v31  ;;  %v2484_v32 = vpack.c.bf16 %v1697_v62, %v1696_v29 }
 0x833   : > { %2467 = vmatprep.subr.bf16.mxu1 %v2466_v37  ;;  %v1666_v37 = vld [vmem:[%s3434_s10 + $0x60] sm:$0xff] }
 0x834   : > { %2437 = vmatpush3.bf16.msra.mxu0 %v2436_v38  ;;  %2469 = vmatpush3.bf16.msra.mxu1 %v2468_v42  ;;  %v2486_v38 = vpack.c.bf16 %v1715_v36, %v1714_v35  ;;  %v1699_v42 = vld [vmem:[%s3434_s10 + $0x168] sm:$0xff]  ;;  %v2456_v33 = vpack.c.bf16 %v1667_v39, %v1666_v37 }
 0x835   : > { %2439 = vmatprep.subr.bf16.mxu0 %v2438_v48  ;;  %2471 = vmatprep.subr.bf16.mxu1 %v2470_v45  ;;  %v1716_v48 = vld [vmem:[%s3434_s10 + $0x1f0] sm:$0xff]  ;;  %v2488_v49 = vpack.c.bf16 %v1699_v42, %v1698_v41 }
 0x836   : > { %v1668_v45 = vld [vmem:[%s3434_s10 + $0x70] sm:$0xff]  ;;  %v2490_v53 = vpack.c.bf16 %v1717_v44, %v1716_v48 }
 0x838   : > { %2441 = vmatpush3.bf16.msra.mxu0 %v2440_v46  ;;  %2473 = vmatpush3.bf16.msra.mxu1 %v2472_v55  ;;  %v1669_v46 = vld [vmem:[%s3434_s10 + $0x78] sm:$0xff] }
 0x839   : > { %2443 = vmatprep.subr.bf16.mxu0 %v2442_v60  ;;  %2475 = vmatprep.subr.bf16.mxu1 %v2474_v2  ;;  %v1701_v55 = vld [vmem:[%s3434_s10 + $0x178] sm:$0xff]  ;;  %v2460_v56 = vpack.c.bf16 %v1669_v46, %v1668_v45  ;;  %v1422_v60 = vsub.s32 3, %v2768_v52 }
 0x83a   : > { %v2492_v58 = vpack.c.bf16 %v1701_v55, %v1700_v54 }
 0x83b   : > { %v1423_v2 = vrot.slane %v1406_v59, %v1422_v60 }
 0x83c   : > { %2445 = vmatpush3.bf16.msra.mxu0 %v2444_v4  ;;  %2477 = vmatpush3.bf16.msra.mxu1 %v2476_v8 }
 0x83d   : > { %2447 = vmatprep.subr.bf16.mxu0 %v2446_v12  ;;  %2479 = vmatprep.subr.bf16.mxu1 %v2478_v16 }
 0x840   : > { %2449 = vmatpush3.bf16.msra.mxu0 %v2448_v17  ;;  %2481 = vmatpush3.bf16.msra.mxu1 %v2480_v26 }
 0x841   : > { %2451 = vmatprep.subr.bf16.mxu0 %v2450_v23  ;;  %2483 = vmatprep.subr.bf16.mxu1 %v2482_v24 }
 0x844   : > { %2453 = vmatpush3.bf16.msra.mxu0 %v2452_v30  ;;  %2485 = vmatpush3.bf16.msra.mxu1 %v2484_v32 }
 0x845   : > { %2455 = vmatprep.subr.bf16.mxu0 %v2454_v34  ;;  %2487 = vmatprep.subr.bf16.mxu1 %v2486_v38 }
 0x848   : > { %2457 = vmatpush3.bf16.msra.mxu0 %v2456_v33  ;;  %2489 = vmatpush3.bf16.msra.mxu1 %v2488_v49 }
 0x849   : > { %2459 = vmatprep.subr.bf16.mxu0 %v2458_v51  ;;  %2491 = vmatprep.subr.bf16.mxu1 %v2490_v53 }
 0x84c   : > { %2461 = vmatpush3.bf16.msra.mxu0 %v2460_v56  ;;  %2493 = vmatpush3.bf16.msra.mxu1 %v2492_v58 }
 0x901   : > { %v1494_v4 = vpop.f32.mrb[12].mxu0  ;;  %v1571_v5 = vpop.f32.mrb[4].mxu1 }
 0x902   : > { %v3370_v6 = vadd.f32 %v1494_v4, %v1411_v63  ;;  %v3372_v8 = vadd.f32 %v1571_v5, %v1419_v0  ;;  %v1496_v9 = vpop.f32.mrb[13].mxu0  ;;  %v1573_v10 = vpop.f32.mrb[5].mxu1 }
 0x903   : > { %v1497_v11 = vadd.f32 %v1496_v9, %v1415_v1  ;;  %v3374_v12 = vadd.f32 %v1573_v10, %v1423_v2 }
 0x904   : > { %v1590_v61 = vmul.f32 0.044715, %v3370_v6  ;;  %v1592_v13 = vmul.f32 0.044715, %v3372_v8  ;;  %v1582_v5 = vmul.f32 0.5, %v3370_v6 }
 0x905   : > { %v1591_v40 = vmul.f32 0.044715, %v1497_v11  ;;  %v1593_v52 = vmul.f32 0.044715, %v3374_v12  ;;  %v1500_v3 = vpop.f32.mrb[14].mxu0  ;;  %v1577_v14 = vpop.f32.mrb[6].mxu1 }
 0x906   : > { %v1598_v15 = vmul.f32 %v1590_v61, %v3370_v6  ;;  %v1600_v16 = vmul.f32 %v1592_v13, %v3372_v8  ;;  %v3381_v17 = vadd.f32 %v1500_v3, %v1411_v63  ;;  %v3383_v18 = vadd.f32 %v1577_v14, %v1419_v0  ;;  %v1502_v19 = vpop.f32.mrb[15].mxu0  ;;  %v1579_v21 = vpop.f32.mrb[7].mxu1 }
 0x907   : > { %v1599_v26 = vmul.f32 %v1591_v40, %v1497_v11  ;;  %v1601_v50 = vmul.f32 %v1593_v52, %v3374_v12  ;;  %v1503_v22 = vadd.f32 %v1502_v19, %v1415_v1  ;;  %v1580_v57 = vadd.f32 %v1579_v21, %v1423_v2 }
 0x908   : > { %v1606_v23 = vmul.f32 %v1598_v15, %v3370_v6  ;;  %v1608_v24 = vmul.f32 %v1600_v16, %v3372_v8  ;;  %v1594_v27 = vmul.f32 0.044715, %v3381_v17  ;;  %v1596_v28 = vmul.f32 0.044715, %v3383_v18 }
 0x909   : > { %v1595_v29 = vmul.f32 0.044715, %v1503_v22  ;;  %v1597_v30 = vmul.f32 0.044715, %v1580_v57  ;;  %v1607_v62 = vmul.f32 %v1599_v26, %v1497_v11  ;;  %v1609_v41 = vmul.f32 %v1601_v50, %v3374_v12 }
 0x90a   : > { %v1614_v20 = vadd.f32 %v1606_v23, %v3370_v6  ;;  %v1616_v7 = vadd.f32 %v1608_v24, %v3372_v8  ;;  %v1602_v32 = vmul.f32 %v1594_v27, %v3381_v17  ;;  %v1604_v39 = vmul.f32 %v1596_v28, %v3383_v18 }
 0x90b   : > { %v1603_v34 = vmul.f32 %v1595_v29, %v1503_v22  ;;  %v1605_v35 = vmul.f32 %v1597_v30, %v1580_v57  ;;  %v1615_v36 = vadd.f32 %v1607_v62, %v1497_v11  ;;  %v1617_v47 = vadd.f32 %v1609_v41, %v3374_v12  ;;  %v2012_v30 = vld [vmem:[%s3435_s11] ss:$0 sm:$0xff] }
 0x90c   : > { %v1622_v37 = vmul.f32 0.7978846, %v1614_v20  ;;  %v1624_v38 = vmul.f32 0.7978846, %v1616_v7  ;;  %v1610_v48 = vmul.f32 %v1602_v32, %v3381_v17  ;;  %v1612_v46 = vmul.f32 %v1604_v39, %v3383_v18 }
 0x90d   : > { %v1623_v42 = vmul.f32 0.7978846, %v1615_v36  ;;  %v1611_v33 = vmul.f32 %v1603_v34, %v1503_v22  ;;  %v1613_v43 = vmul.f32 %v1605_v35, %v1580_v57  ;;  %v1625_v44 = vmul.f32 0.7978846, %v1617_v47 }
 0x90e   : > { %2538 = vtanh.f32 %v1622_v37  ;;  %v1618_v45 = vadd.f32 %v1610_v48, %v3381_v17  ;;  %v1620_v56 = vadd.f32 %v1612_v46, %v3383_v18  ;;  %v1583_v1 = vmul.f32 0.5, %v1497_v11 }
 0x90f   : > { %2540 = vtanh.f32 %v1624_v38  ;;  %v1619_v49 = vadd.f32 %v1611_v33, %v1503_v22  ;;  %v1621_v51 = vadd.f32 %v1613_v43, %v1580_v57  ;;  %v1585_v13 = vmul.f32 0.5, %v3374_v12 }
 0x910   : > { %2542 = vtanh.f32 %v1623_v42  ;;  %v1626_v55 = vmul.f32 0.7978846, %v1618_v45  ;;  %v1628_v58 = vmul.f32 0.7978846, %v1620_v56  ;;  %v1584_v3 = vmul.f32 0.5, %v3372_v8 }
 0x911   : > { %v1627_v53 = vmul.f32 0.7978846, %v1619_v49  ;;  %v1629_v54 = vmul.f32 0.7978846, %v1621_v51  ;;  %2544 = vtanh.f32 %v1625_v44  ;;  %v1587_v15 = vmul.f32 0.5, %v1503_v22 }
 0x912   : > { %v1589_v11 = vmul.f32 0.5, %v1580_v57  ;;  %v1586_v24 = vmul.f32 0.5, %v3381_v17  ;;  %v1588_v22 = vmul.f32 0.5, %v3383_v18 }
 0x913   : > { %2546 = vtanh.f32 %v1627_v53 }
 0x914   : > { %2548 = vtanh.f32 %v1629_v54 }
 0x915   : > { %2550 = vtanh.f32 %v1626_v55 }
 0x916   : > { %2552 = vtanh.f32 %v1628_v58 }
 0x918   : > { %v2539_v59 = vpop.eup %2538 }
 0x919   : > { %v2541_v60 = vpop.eup %2540  ;;  %v1638_v0 = vadd.f32 1.0, %v2539_v59 }
 0x91a   : > { %v2543_v63 = vpop.eup %2542  ;;  %v1640_v9 = vadd.f32 1.0, %v2541_v60 }
 0x91b   : > { %v1639_v2 = vadd.f32 1.0, %v2543_v63  ;;  %v2545_v4 = vpop.eup %2544  ;;  %v1646_v14 = vmul.f32 %v1638_v0, %v1582_v5  ;;  %v2013_v63 = vld [vmem:[%s3436_s12] ss:$0 sm:$0xff] }
 0x91c   : > { %v1641_v40 = vadd.f32 1.0, %v2545_v4  ;;  %v1648_v6 = vmul.f32 %v1640_v9, %v1584_v3 }
 0x91d   : > { %v2547_v10 = vpop.eup %2546  ;;  %v1647_v61 = vmul.f32 %v1639_v2, %v1583_v1  ;;  %v2014_v1 = vld [vmem:[%s3437_s13] ss:$0 sm:$0xff] }
 0x91e   : > { %v2549_v52 = vpop.eup %2548  ;;  %v1643_v16 = vadd.f32 1.0, %v2547_v10  ;;  %v1649_v21 = vmul.f32 %v1641_v40, %v1585_v13 }
 0x91f   : > { %v2551_v19 = vpop.eup %2550  ;;  %1789 = vmatprep.mubr.f32.mxu0 %v1647_v61  ;;  %v1645_v26 = vadd.f32 1.0, %v2549_v52 }
 0x920   : > { %v2553_v50 = vpop.eup %2552  ;;  %1790 = vmatmul.mubr.f32.vlgmr.msra.gmra.mrb[16].mxu0 %v1646_v14  ;;  %v1651_v23 = vmul.f32 %v1643_v16, %v1587_v15  ;;  %v1642_v27 = vadd.f32 1.0, %v2551_v19  ;;  %1864 = vmatprep.mubr.f32.mxu1 %v1649_v21 }
 0x921   : > { %v1653_v12 = vmul.f32 %v1645_v26, %v1589_v11  ;;  %v1644_v28 = vadd.f32 1.0, %v2553_v50  ;;  %1865 = vmatmul.mubr.f32.vlgmr.msra.gmra.mrb[8].mxu1 %v1648_v6 }
 0x922   : > { %1794 = vmatprep.mubr.f32.mxu0 %v1651_v23  ;;  %v1650_v8 = vmul.f32 %v1642_v27, %v1586_v24 }
 0x923   : > { %1869 = vmatprep.mubr.f32.mxu1 %v1653_v12  ;;  %v1652_v29 = vmul.f32 %v1644_v28, %v1588_v22 }
 0x924   : > { %1795 = vmatmul.mubr.f32.gmra.mrb[18].mxu0 %v1650_v8 }
 0x925   : > { %1870 = vmatmul.mubr.f32.gmra.mrb[10].mxu1 %v1652_v29 }
 0x9f3   : > { %v2105_v57 = vpop.f32.mrb[16].mxu0 }
 0x9f4   : > { %v2106_v62 = vpop.f32.mrb[17].mxu0  ;;  %v2143_v17 = vpop.f32.mrb[8].mxu1 }
 0x9f5   : > { %v2107_v20 = vadd.f32 %v2106_v62, %v2105_v57  ;;  %v2144_v7 = vpop.f32.mrb[9].mxu1 }
 0x9f6   : > { %v2145_v34 = vadd.f32 %v2144_v7, %v2143_v17 }
 0x9f7   : > { %v1792_v32 = vadd.f32 %v2107_v20, %v2012_v30  ;;  %v2108_v35 = vpop.f32.mrb[18].mxu0 }
 0x9f8   : > { %v2109_v36 = vpop.f32.mrb[19].mxu0  ;;  %v2146_v38 = vpop.f32.mrb[10].mxu1 }
 0x9f9   : > { %v1867_v37 = vadd.f32 %v2145_v34, %v1792_v32  ;;  %v2110_v18 = vadd.f32 %v2109_v36, %v2108_v35  ;;  %v2147_v39 = vpop.f32.mrb[11].mxu1 }
 0x9fa   : > { %v2148_v42 = vadd.f32 %v2147_v39, %v2146_v38 }
 0x9fb   : > { %v1797_v41 = vadd.f32 %v2110_v18, %v2012_v30  ;;  %v1875_v33 = vadd.f32 %v1867_v37, %v3181_v25 }
 0x9fd   : > { %v1872_v43 = vadd.f32 %v2148_v42, %v1797_v41  ;;  %1877 = vadd.xlane.f32.xlu1 %v1875_v33 }
 0x9ff   : > { %v1876_v47 = vadd.f32 %v1872_v43, %v3188_v31 }
 0xa01   : > { %1879 = vadd.xlane.f32.xlu0 %v1876_v47 }
 0xa8a   : > { %v1878_v48 = vpop.xlane.xlu1 %1877 }
 0xa8b   : > { %v1881_v49 = vmul.f32 0.0078125, %v1878_v48 }
 0xa8d   : > { %v1883_v51 = vsub.f32 %v1875_v33, %v1881_v49 }
 0xa8e   : > { %v1880_v44 = vpop.xlane.xlu0 %1879 }
 0xa8f   : > { %v1882_v45 = vmul.f32 0.0078125, %v1880_v44  ;;  %v1885_v46 = vmul.f32 %v1883_v51, %v1883_v51 }
 0xa91   : > { %v1884_v53 = vsub.f32 %v1876_v47, %v1882_v45  ;;  %1887 = vadd.xlane.f32.xlu0 %v1885_v46 }
 0xa93   : > { %v1886_v54 = vmul.f32 %v1884_v53, %v1884_v53 }
 0xa95   : > { %1889 = vadd.xlane.f32.xlu0 %v1886_v54 }
 0xb1e   : > { %v1888_v55 = vpop.xlane.xlu0 %1887 }
 0xb1f   : > { %v1891_v56 = vmul.f32 0.0078125, %v1888_v55 }
 0xb21   : > { %v1893_v58 = vadd.f32 1e-12, %v1891_v56 }
 0xb22   : > { %v1890_v25 = vpop.xlane.xlu0 %1889 }
 0xb23   : > { %2554 = vrsqrt.f32 %v1893_v58  ;;  %v1892_v59 = vmul.f32 0.0078125, %v1890_v25 }
 0xb25   : > { %v1894_v60 = vadd.f32 1e-12, %v1892_v59 }
 0xb27   : > { %2556 = vrsqrt.f32 %v1894_v60 }
 0xb2d   : > { %v2555_v31 = vpop.eup %2554 }
 0xb2e   : > { %v1897_v0 = vmul.f32 %v2555_v31, %v1883_v51 }
 0xb30   : > { %v1906_v2 = vmul.f32 %v2013_v63, %v1897_v0 }
 0xb31   : > { %v2557_v4 = vpop.eup %2556 }
 0xb32   : > { %v1915_v5 = vadd.f32 %v2014_v1, %v1906_v2  ;;  %v1898_v9 = vmul.f32 %v2557_v4, %v1884_v53 }
 0xb34   : > { %1917 = vst [vmem:[%s481_s25] sm:$0xff] %v1915_v5  ;;  %v1907_v10 = vmul.f32 %v2013_v63, %v1898_v9 }
 0xb36   : > { %v1916_v61 = vadd.f32 %v2014_v1, %v1907_v10 }
 0xb38   : > { %1918 = vst [vmem:[%s481_s25 + $0x8] sm:$0xff] %v1916_v61 }
 0xb39 PF: > { %s24_s29 = sadd.s32 1, %s2564_s29  }
 0xb3a   : > { %p21_p4 = scmp.ge.s32.totalorder %s24_s29, 4  }
 0xb3c   :  { %23 = sbr.rel (!%p21_p4) target bundleno = 1 (0x1), region = 109 }

</bundles_post_ra>
